<compile_context>
chip_gen: v7x
topology: tpu7x:2x2x1
jax: 0.10.0
libtpu: 0.0.40
codegen_flags: <defaults>
</compile_context>

<pallas_src>
import functools

import numpy as np

import jax
import jax.numpy as jnp
from jax.experimental import pallas as pl
from jax.experimental.pallas import tpu as pltpu


# ----------------------------------------------------------------------------
# Generic Pallas kernel: fused (N,K)@(K,M) matmul + per-row bias + activation.
# BN scale is pre-folded into the weight rows, so the epilogue is bias + act,
# done in f32 with a single bf16 cast at the store (v5e-friendly).
# Single K block -> no accumulator scratch / pl.when.
# ----------------------------------------------------------------------------
def _conv_mm_kernel(x_ref, w_ref, b_ref, o_ref, *, activation):
    # x_ref: (K, TM) bf16   transposed im2col patches (lane axis = spatial M)
    # w_ref: (N, K)  bf16   scale-folded weights
    # b_ref: (N, 1)  f32    folded bias
    # o_ref: (N, TM) bf16   output (lane-dense along M)
    y = jnp.dot(w_ref[...], x_ref[...], preferred_element_type=jnp.float32)
    y = y + b_ref[...]
    if activation == "relu":
        y = jnp.maximum(y, 0.0)
    elif activation == "tanh":
        y = jnp.tanh(y)
    o_ref[...] = y.astype(o_ref.dtype)


@functools.lru_cache(maxsize=None)
def _cores_per_chip():
    """2 on v7x (two TensorCores per chip), 1 otherwise.  Conservative check."""
    try:
        d = jax.devices()[0]
        if d.platform != "tpu":
            return 1
        return 2 if "v7" in (getattr(d, "device_kind", "") or "").lower() else 1
    except Exception:
        return 1


def _pick_tm(M, cap=1024):
    """Lane tile for the generic conv matmul.

    v5e/v6e: one TensorCore -> single grid step (tm = M) when it fits.
    v7x:     split M into two 'parallel' steps (still a /128 multiple) so both
             TensorCores get work on the FLOP/byte-heavy layers.
    """
    if _cores_per_chip() >= 2 and M >= 256 and (M // 2) % 128 == 0:
        return M // 2
    if M <= cap:
        return M
    for cand in (1024, 512, 256, 128):
        if M % cand == 0:
            return cand
    # Robustness fallback (never hit at the sizes in this script): bounded tile.
    for cand in range(cap, 0, -1):
        if M % cand == 0:
            return cand
    return M


def conv_matmul(patches_t, w_nk, bias, *, activation="none"):
    """act( w_nk @ patches_t + bias ).  patches_t: (K, M), w_nk: (N, K)."""
    K, M = patches_t.shape
    N, K2 = w_nk.shape
    assert K == K2
    tm = _pick_tm(M)
    grid = (M // tm,)

    return pl.pallas_call(
        functools.partial(_conv_mm_kernel, activation=activation),
        out_shape=jax.ShapeDtypeStruct((N, M), jnp.bfloat16),
        grid_spec=pltpu.PrefetchScalarGridSpec(
            num_scalar_prefetch=0,
            grid=grid,
            in_specs=[
                # Full-extent K / N block dims: no HBM padding of small axes.
                pl.BlockSpec((K, tm), lambda m: (0, m)),
                pl.BlockSpec((N, K), lambda m: (0, 0)),
                pl.BlockSpec((N, 1), lambda m: (0, 0)),
            ],
            out_specs=pl.BlockSpec((N, tm), lambda m: (0, m)),
        ),
        compiler_params=pltpu.CompilerParams(
            dimension_semantics=("parallel",)),
    )(patches_t, w_nk, bias)


# ----------------------------------------------------------------------------
# Bottleneck Pallas kernel: down2 conv (stride-2, reflect) + n FFC resnet
# blocks (each: two 3x3 reflect convs + BN + ReLU, then residual add), all
# resident in VMEM.  Convs are tap-decomposed with precomputed 0/1 selection
# matrices so no padding / im2col happens inside the kernel.
# ----------------------------------------------------------------------------
def _bottleneck_kernel(*refs, n_blocks):
    x_ref, sd_ref, st_ref, wd_ref, bd_ref = refs[:5]
    blk_refs = refs[5:5 + 4 * n_blocks]
    o_ref = refs[5 + 4 * n_blocks]

    def tap_conv(x_bf16, s_ref, w_ref, b_ref, res=None):
        # x_bf16: (Ci, Mi) bf16; s_ref: (T, Mi, Mo); w_ref: (T, Co, Ci);
        # b_ref: (Co, 1) f32.  Returns f32 (Co, Mo).
        n_taps, n_out = w_ref.shape[0], w_ref.shape[1]
        m_out = s_ref.shape[2]
        acc = jnp.zeros((n_out, m_out), jnp.float32)
        for t in range(n_taps):
            xt = jnp.dot(x_bf16, s_ref[t],
                         preferred_element_type=jnp.float32).astype(jnp.bfloat16)
            acc = acc + jnp.dot(w_ref[t], xt,
                                preferred_element_type=jnp.float32)
        y = jnp.maximum(acc + b_ref[...], 0.0)       # folded BN bias + ReLU
        if res is not None:
            y = y + res                              # fused residual add
        return y

    # down-sampling layer 2 (fused l2l + l2g, stride 2, reflect pad).
    h_bf = tap_conv(x_ref[...], sd_ref, wd_ref, bd_ref).astype(jnp.bfloat16)

    # FFC resnet trunk, kept resident in VMEM / vregs.
    for b in range(n_blocks):
        w1, b1, w2, b2 = blk_refs[4 * b:4 * b + 4]
        y = tap_conv(h_bf, st_ref, w1, b1).astype(jnp.bfloat16)
        h = tap_conv(y, st_ref, w2, b2, res=h_bf.astype(jnp.float32))
        h_bf = h.astype(jnp.bfloat16)

    o_ref[...] = h_bf


def _full_block(shape):
    nd = len(shape)
    return pl.BlockSpec(tuple(shape), lambda i, _z=(0,) * nd: _z)


def _make_tap_matrices(B, h_in, w_in, h_out, w_out, *, ksize, stride, pad,
                       mode="reflect"):
    """0/1 selection matrices S: (ksize*ksize, B*h_in*w_in, B*h_out*w_out) s.t.
    (x @ S[t])[c, m_out] == x_padded[c, b, i_out*stride + di, j_out*stride + dj]
    for x laid out as (C, B*h_in*w_in).  Built once per shape at trace time."""
    m_in_tot = B * h_in * w_in
    m_out_tot = B * h_out * w_out
    S = np.zeros((ksize * ksize, m_in_tot, m_out_tot), np.float32)

    def src(p, n):
        if 0 <= p < n:
            return p
        if mode == "reflect":
            return -p if p < 0 else 2 * n - 2 - p
        return -1  # zero padding

    for di in range(ksize):
        for dj in range(ksize):
            t = di * ksize + dj
            for b in range(B):
                for io in range(h_out):
                    si = src(io * stride + di - pad, h_in)
                    if si < 0:
                        continue
                    for jo in range(w_out):
                        sj = src(jo * stride + dj - pad, w_in)
                        if sj < 0:
                            continue
                        m_o = (b * h_out + io) * w_out + jo
                        m_i = (b * h_in + si) * w_in + sj
                        S[t, m_i, m_o] = 1.0
    return jnp.asarray(S, jnp.bfloat16)


def ffc_bottleneck(x, wts):
    """x: (Cin, B, H, W) bf16 (down1 output) -> (Ct, B, H/2, W/2) bf16."""
    Cin, B, H, Wd = x.shape
    wd, bd = wts["down2"]
    Ct = wd.shape[1]
    Ho, Wo = H // 2, Wd // 2
    Min, Mt = B * H * Wd, B * Ho * Wo

    s_down = _make_tap_matrices(B, H, Wd, Ho, Wo, ksize=3, stride=2, pad=1,
                                mode="reflect")
    s_trunk = _make_tap_matrices(B, Ho, Wo, Ho, Wo, ksize=3, stride=1, pad=1,
                                 mode="reflect")

    ops = [x.reshape(Cin, Min), s_down, s_trunk, wd, bd]
    for blk in wts["blocks"]:
        ops += [blk["conv1"][0], blk["conv1"][1],
                blk["conv2"][0], blk["conv2"][1]]
    n_blocks = len(wts["blocks"])

    out = pl.pallas_call(
        functools.partial(_bottleneck_kernel, n_blocks=n_blocks),
        out_shape=jax.ShapeDtypeStruct((Ct, Mt), jnp.bfloat16),
        grid_spec=pltpu.PrefetchScalarGridSpec(
            num_scalar_prefetch=0,
            grid=(1,),
            in_specs=[_full_block(op.shape) for op in ops],
            out_specs=_full_block((Ct, Mt)),
        ),
        compiler_params=pltpu.CompilerParams(
            dimension_semantics=("arbitrary",)),
    )(*ops)
    return out.reshape(Ct, B, Ho, Wo)


# ----------------------------------------------------------------------------
# Conv / sub-pixel ConvTranspose via transposed im2col + the Pallas matmul.
# Activations live in CBHW layout: (C, B, H, W), bf16.
# ----------------------------------------------------------------------------
def _im2col_t(x, kh, kw, stride):
    """x: (C, B, Hp, Wp) -> patches (C*kh*kw, B*Ho*Wo), plus (Ho, Wo)."""
    C, B, Hp, Wp = x.shape
    Ho = (Hp - kh) // stride + 1
    Wo = (Wp - kw) // stride + 1
    cols = []
    for i in range(kh):
        for j in range(kw):
            cols.append(x[:, :, i:i + stride * Ho:stride,
                          j:j + stride * Wo:stride])
    # (C, kh*kw, B, Ho, Wo) -> (C*kh*kw, B*Ho*Wo); matches PyTorch weight
    # flattening order (Co, Ci, kh, kw) -> (Co, Ci*kh*kw).
    patches = jnp.stack(cols, axis=1).reshape(C * kh * kw, B * Ho * Wo)
    return patches, Ho, Wo


def conv2d(x, w_nk, bias, *, ksize, stride=1, padding=0, pad_mode="reflect",
           activation="none"):
    """x: (C, B, H, W) bf16;  w_nk: (Co, Ci*kh*kw) bf16 (BN scale folded)."""
    if padding > 0:
        x = jnp.pad(x, ((0, 0), (0, 0), (padding, padding), (padding, padding)),
                    mode=pad_mode)
    B = x.shape[1]
    patches, Ho, Wo = _im2col_t(x, ksize, ksize, stride)
    out = conv_matmul(patches, w_nk, bias, activation=activation)
    return out.reshape(w_nk.shape[0], B, Ho, Wo)


def conv_transpose2d_subpixel(x, w_phase, bias4, *, activation="relu"):
    """ConvTranspose2d(k=3, s=2, p=1, op=1) as a sub-pixel decomposition:
    one matmul with N = 4*Co phase rows over 2x2 zero-padded patches, then an
    interleave of the 4 phases into the 2x-upsampled grid.
    x: (Ci, B, H, W);  w_phase: (4*Co, Ci*4);  bias4: (4*Co, 1)."""
    Ci, B, H, Wd = x.shape
    xp = jnp.pad(x, ((0, 0), (0, 0), (0, 1), (0, 1)))     # zero pad bottom/right
    patches, _, _ = _im2col_t(xp, 2, 2, 1)                # (Ci*4, B*H*W)
    out = conv_matmul(patches, w_phase, bias4, activation=activation)
    Co = w_phase.shape[0] // 4
    out = out.reshape(2, 2, Co, B, H, Wd)                 # (r, s, Co, B, H, W)
    out = jnp.transpose(out, (2, 3, 4, 0, 5, 1)).reshape(Co, B, 2 * H, 2 * Wd)
    return out


# ----------------------------------------------------------------------------
# One-time weight preparation (hoisted out of the forward pass).
# ----------------------------------------------------------------------------
def bn_fold(gamma, beta, mean, var, conv_bias=None, eps=1e-5):
    """Fold eval-mode BatchNorm (and optional conv bias) into scale/bias."""
    scale = gamma / jnp.sqrt(var + eps)
    if conv_bias is None:
        bias = beta - mean * scale
    else:
        bias = (conv_bias - mean) * scale + beta
    return scale, bias


def _prep(w, scale, bias):
    """(Co,Ci,kh,kw) + scale/bias -> (bf16 (Co,K) weights, f32 (Co,1) bias)."""
    Co = w.shape[0]
    w_nk = (w.reshape(Co, -1) * scale[:, None]).astype(jnp.bfloat16)
    return w_nk, bias.reshape(Co, 1).astype(jnp.float32)


def _prep_taps(w, scale, bias):
    """(Co,Ci,kh,kw) + scale/bias -> ((kh*kw, Co, Ci) bf16, (Co,1) f32)."""
    Co, Ci, kh, kw = w.shape
    w = w * scale[:, None, None, None]
    w_t = jnp.transpose(w.reshape(Co, Ci, kh * kw), (2, 0, 1)).astype(jnp.bfloat16)
    return w_t, bias.reshape(Co, 1).astype(jnp.float32)


def _prep_transpose_subpixel(w_t, conv_b, bn):
    """PyTorch ConvTranspose2d(k=3,s=2,p=1,op=1) weight (Ci, Co, 3, 3) + bias +
    following BN -> sub-pixel phase weights (4*Co, Ci*4) bf16, bias (4*Co, 1)."""
    Ci, Co = w_t.shape[0], w_t.shape[1]
    # Equivalent stride-1 conv kernel: transpose + 180deg flip.
    w_conv = jnp.transpose(w_t, (1, 0, 2, 3))[:, :, ::-1, ::-1]  # (Co, Ci, 3, 3)
    scale, bias_f = bn_fold(*bn, conv_bias=conv_b)
    # Output phase r (row parity): r=0 uses flipped-kernel row 1 on input row i;
    # r=1 uses row 0 on input row i and row 2 on input row i+1.  Same for cols.
    taps = {0: [(1, 0)], 1: [(0, 0), (2, 1)]}
    wp = jnp.zeros((4, Co, Ci, 2, 2), jnp.float32)
    for r in (0, 1):
        for s in (0, 1):
            ph = r * 2 + s
            for (ka, pi) in taps[r]:
                for (kb, pj) in taps[s]:
                    wp = wp.at[ph, :, :, pi, pj].set(w_conv[:, :, ka, kb])
    wp = wp * scale[None, :, None, None, None]
    w_phase = wp.reshape(4 * Co, Ci * 4).astype(jnp.bfloat16)
    bias4 = jnp.tile(bias_f, 4).reshape(4 * Co, 1).astype(jnp.float32)
    return w_phase, bias4


def prepare_lama_weights(P):
    W = {}
    W["down0"] = _prep(P["down0_w"], *bn_fold(*P["down0_bn"]))
    W["down1"] = _prep(P["down1_w"], *bn_fold(*P["down1_bn"]))

    # down layer 2 (ratio_gin=0, ratio_gout=0.75): convl2l and convl2g both
    # read x_l -> fuse along output channels, order [local ; global].
    s_l, b_l = bn_fold(*P["down2_bn_l"])
    s_g, b_g = bn_fold(*P["down2_bn_g"])
    w2 = jnp.concatenate([P["down2_w_l2l"], P["down2_w_l2g"]], axis=0)
    W["down2"] = _prep_taps(w2, jnp.concatenate([s_l, s_g]),
                            jnp.concatenate([b_l, b_g]))

    # FFC resnet blocks: fuse l2l+g2l (local out) and l2g+g2g (global out) into
    # one conv over the concatenated [local ; global] input; tap layout.
    blocks = []
    for blk in P["blocks"]:
        pb = {}
        for name in ("conv1", "conv2"):
            c = blk[name]
            cg = c["w_l2g"].shape[0]
            w_loc = jnp.concatenate([c["w_l2l"], c["w_g2l"]], axis=1)
            # 1x1 convg2g embedded at the centre of a 3x3 kernel (identical
            # result under pad=1 / stride 1 — only the centre tap is nonzero).
            w_g2g3 = jnp.zeros((cg, cg, 3, 3), jnp.float32).at[:, :, 1, 1].set(
                c["w_g2g"][:, :, 0, 0])
            w_glob = jnp.concatenate([c["w_l2g"], w_g2g3], axis=1)
            w_full = jnp.concatenate([w_loc, w_glob], axis=0)
            s_l, b_l = bn_fold(*c["bn_l"])
            s_g, b_g = bn_fold(*c["bn_g"])
            pb[name] = _prep_taps(w_full, jnp.concatenate([s_l, s_g]),
                                  jnp.concatenate([b_l, b_g]))
        blocks.append(pb)
    W["blocks"] = blocks

    # ConvTranspose2d -> sub-pixel phase weights (conv bias folded with BN).
    W["up0"] = _prep_transpose_subpixel(P["up0_wT"], P["up0_b"], P["up0_bn"])
    W["up1"] = _prep_transpose_subpixel(P["up1_wT"], P["up1_b"], P["up1_bn"])

    out_c = P["final_w"].shape[0]
    W["final"] = _prep(P["final_w"], jnp.ones((out_c,), jnp.float32),
                       P["final_b"])
    return W


# ----------------------------------------------------------------------------
# Deterministic parameter init (PyTorch-layout weights).
# ----------------------------------------------------------------------------
class ParamGen:
    def __init__(self, key):
        self.key = key

    def normal(self, shape, scl=0.1):
        self.key, sub = jax.random.split(self.key)
        return scl * jax.random.normal(sub, shape, dtype=jnp.float32)

    def bn(self, c):
        gamma = 1.0 + self.normal((c,), 0.05)
        beta = self.normal((c,), 0.05)
        mean = self.normal((c,), 0.05)
        var = 1.0 + jnp.abs(self.normal((c,), 0.05))
        return (gamma, beta, mean, var)


def init_lama_params(key, input_nc=4, output_nc=3, ngf=8,
                     n_downsampling=2, n_blocks=2):
    g = ParamGen(key)
    P = {}
    # initial FFC_BN_ACT (ratio 0/0): 7x7 conv input_nc -> ngf
    P["down0_w"] = g.normal((ngf, input_nc, 7, 7))
    P["down0_bn"] = g.bn(ngf)
    # downsampling layer 0 (ratio 0/0): 3x3 s2, ngf -> 2*ngf
    P["down1_w"] = g.normal((2 * ngf, ngf, 3, 3))
    P["down1_bn"] = g.bn(2 * ngf)
    # downsampling layer 1 (ratio_gin=0, ratio_gout=0.75): 2*ngf -> 4*ngf
    c_out = 4 * ngf
    out_cg = int(c_out * 0.75)
    out_cl = c_out - out_cg
    P["down2_w_l2l"] = g.normal((out_cl, 2 * ngf, 3, 3))
    P["down2_bn_l"] = g.bn(out_cl)
    P["down2_w_l2g"] = g.normal((out_cg, 2 * ngf, 3, 3))
    P["down2_bn_g"] = g.bn(out_cg)
    # resnet blocks, dim = 4*ngf, ratio 0.75/0.75
    dim = 4 * ngf
    cg = int(dim * 0.75)
    cl = dim - cg
    blocks = []
    for _ in range(n_blocks):
        blk = {}
        for name in ("conv1", "conv2"):
            blk[name] = {
                "w_l2l": g.normal((cl, cl, 3, 3)),
                "w_g2l": g.normal((cl, cg, 3, 3)),
                "w_l2g": g.normal((cg, cl, 3, 3)),
                "w_g2g": g.normal((cg, cg, 1, 1)),  # use_convolutions=True -> 1x1
                "bn_l": g.bn(cl),
                "bn_g": g.bn(cg),
            }
        blocks.append(blk)
    P["blocks"] = blocks
    # upsampling: ConvTranspose2d(4*ngf -> 2*ngf), ConvTranspose2d(2*ngf -> ngf)
    P["up0_wT"] = g.normal((4 * ngf, 2 * ngf, 3, 3))
    P["up0_b"] = g.normal((2 * ngf,))
    P["up0_bn"] = g.bn(2 * ngf)
    P["up1_wT"] = g.normal((2 * ngf, ngf, 3, 3))
    P["up1_b"] = g.normal((ngf,))
    P["up1_bn"] = g.bn(ngf)
    # final: ReflectionPad2d(3) + Conv2d(ngf -> output_nc, 7x7, bias=True), tanh
    P["final_w"] = g.normal((output_nc, ngf, 7, 7))
    P["final_b"] = g.normal((output_nc,))
    return P


# ----------------------------------------------------------------------------
# LaMa forward.  Input/output NCHW; internal layout CBHW bf16.
# ----------------------------------------------------------------------------
def lama_forward(x_nchw, wts):
    x = jnp.transpose(x_nchw, (1, 0, 2, 3)).astype(jnp.bfloat16)  # -> CBHW

    # self.reflect = nn.ReflectionPad2d(3)
    x = jnp.pad(x, ((0, 0), (0, 0), (3, 3), (3, 3)), mode="reflect")

    # down layer 0: 7x7 conv (ratio 0/0), BN, ReLU
    x = conv2d(x, *wts["down0"], ksize=7, stride=1, padding=0,
               activation="relu")
    # down layer 1: 3x3 s2 reflect-pad conv, BN, ReLU
    x = conv2d(x, *wts["down1"], ksize=3, stride=2, padding=1,
               pad_mode="reflect", activation="relu")

    # Bottleneck: down layer 2 (fused local+global outputs, channel order
    # [local; global]) + both FFC resnet blocks + residual adds, ONE kernel.
    # ConcatTupleLayer is a no-op: the trunk is already [local; global].
    x = ffc_bottleneck(x, wts)

    # up layers: ConvTranspose2d + BN + ReLU (sub-pixel lowering)
    x = conv_transpose2d_subpixel(x, *wts["up0"], activation="relu")
    x = conv_transpose2d_subpixel(x, *wts["up1"], activation="relu")

    # final: ReflectionPad2d(3) + Conv2d(7x7, bias) + tanh (add_out_act=True)
    x = jnp.pad(x, ((0, 0), (0, 0), (3, 3), (3, 3)), mode="reflect")
    x = conv2d(x, *wts["final"], ksize=7, stride=1, padding=0,
               activation="tanh")

    return jnp.transpose(x, (1, 0, 2, 3)).astype(jnp.float32)  # -> NCHW


# ----------------------------------------------------------------------------
if __name__ == "__main__":
    B, C_IN, H, W = 2, 4, 16, 16
    C_OUT = 3

    key = jax.random.PRNGKey(0)
    k_in, k_par = jax.random.split(key)
    x = jax.random.normal(k_in, (B, C_IN, H, W), dtype=jnp.float32)

    params = init_lama_params(k_par, input_nc=C_IN, output_nc=C_OUT,
                              ngf=8, n_downsampling=2, n_blocks=2)
    weights = prepare_lama_weights(params)   # one-time weight prep (hoisted)

    fwd = jax.jit(lama_forward)
    out = jax.block_until_ready(fwd(x, weights))

    assert out.shape == (B, C_OUT, H, W), out.shape
    assert bool(jnp.all(jnp.isfinite(out)))
    print("KERNEL_OK")
</pallas_src>

<mosaic_0001>
module attributes {stable_mosaic.version = 11 : i64} {
  func.func @_conv_mm_kernel(%arg0: i32, %arg1: memref<196x512xbf16, #tpu.memory_space<vmem>>, %arg2: memref<8x196xbf16, #tpu.memory_space<vmem>>, %arg3: memref<8x1xf32, #tpu.memory_space<vmem>>, %arg4: memref<8x512xbf16, #tpu.memory_space<vmem>>) attributes {dimension_semantics = [#tpu.dimension_semantics<parallel>], iteration_bounds = array<i64: 1>, scalar_prefetch = 0 : i64, scratch_operands = 0 : i64, tpu.core_type = #tpu.core_type<tc>, window_params = [{transform_indices = @transform_0, window_bounds = array<i64: 196, 512>}, {pipeline_mode = #tpu.pipeline_mode<synchronous>, transform_indices = @transform_1, window_bounds = array<i64: 8, 196>}, {pipeline_mode = #tpu.pipeline_mode<synchronous>, transform_indices = @transform_2, window_bounds = array<i64: 8, 1>}, {transform_indices = @transform_3, window_bounds = array<i64: 8, 512>}]} {
    %c0 = arith.constant 0 : index
    %c0_0 = arith.constant 0 : index
    %0 = vector.load %arg2[%c0, %c0_0] : memref<8x196xbf16, #tpu.memory_space<vmem>>, vector<8x196xbf16>
    %c0_1 = arith.constant 0 : index
    %c0_2 = arith.constant 0 : index
    %1 = vector.load %arg1[%c0_1, %c0_2] : memref<196x512xbf16, #tpu.memory_space<vmem>>, vector<196x512xbf16>
    %cst = arith.constant dense<0.000000e+00> : vector<8x512xf32>
    %2 = tpu.matmul %0, %1, %cst {dimension_numbers = #tpu.dot_dimension_numbers<[1], [0], [0], [1], [0, 0, 1, 1], [], []>} : vector<8x196xbf16>, vector<196x512xbf16>, vector<8x512xf32> -> vector<8x512xf32>
    %c0_3 = arith.constant 0 : index
    %c0_4 = arith.constant 0 : index
    %3 = vector.load %arg3[%c0_3, %c0_4] : memref<8x1xf32, #tpu.memory_space<vmem>>, vector<8x1xf32>
    %4 = vector.broadcast %3 : vector<8x1xf32> to vector<8x512xf32>
    %5 = arith.addf %2, %4 : vector<8x512xf32>
    %cst_5 = arith.constant 0.000000e+00 : f32
    %6 = vector.broadcast %cst_5 : f32 to vector<8x512xf32>
    %7 = arith.maximumf %5, %6 : vector<8x512xf32>
    %8 = arith.truncf %7 : vector<8x512xf32> to vector<8x512xbf16>
    %c0_6 = arith.constant 0 : index
    %c0_7 = arith.constant 0 : index
    %9 = vector.load %arg4[%c0_6, %c0_7] : memref<8x512xbf16, #tpu.memory_space<vmem>>, vector<8x512xbf16>
    tpu.vector_store %arg4[%c0_6, %c0_7], %8 {strides = array<i32>} : memref<8x512xbf16, #tpu.memory_space<vmem>>, vector<8x512xbf16>,
    return
  }
  func.func @transform_0(%arg0: i32) -> (i32, i32) {
    %c0_i32 = arith.constant 0 : i32
    %c0_i32_0 = arith.constant 0 : i32
    return %c0_i32, %arg0 : i32, i32
  }
  func.func @transform_1(%arg0: i32) -> (i32, i32) {
    %c0_i32 = arith.constant 0 : i32
    %c0_i32_0 = arith.constant 0 : i32
    %c0_i32_1 = arith.constant 0 : i32
    return %c0_i32, %c0_i32_0 : i32, i32
  }
  func.func @transform_2(%arg0: i32) -> (i32, i32) {
    %c0_i32 = arith.constant 0 : i32
    %c0_i32_0 = arith.constant 0 : i32
    %c0_i32_1 = arith.constant 0 : i32
    return %c0_i32, %c0_i32_0 : i32, i32
  }
  func.func @transform_3(%arg0: i32) -> (i32, i32) {
    %c0_i32 = arith.constant 0 : i32
    %c0_i32_0 = arith.constant 0 : i32
    return %c0_i32, %arg0 : i32, i32
  }
}

module attributes {stable_mosaic.version = 11 : i64} {
  func.func @_conv_mm_kernel(%arg0: i32, %arg1: memref<72x128xbf16, #tpu.memory_space<vmem>>, %arg2: memref<16x72xbf16, #tpu.memory_space<vmem>>, %arg3: memref<16x1xf32, #tpu.memory_space<vmem>>, %arg4: memref<16x128xbf16, #tpu.memory_space<vmem>>) attributes {dimension_semantics = [#tpu.dimension_semantics<parallel>], iteration_bounds = array<i64: 1>, scalar_prefetch = 0 : i64, scratch_operands = 0 : i64, tpu.core_type = #tpu.core_type<tc>, window_params = [{transform_indices = @transform_0, window_bounds = array<i64: 72, 128>}, {pipeline_mode = #tpu.pipeline_mode<synchronous>, transform_indices = @transform_1, window_bounds = array<i64: 16, 72>}, {pipeline_mode = #tpu.pipeline_mode<synchronous>, transform_indices = @transform_2, window_bounds = array<i64: 16, 1>}, {transform_indices = @transform_3, window_bounds = array<i64: 16, 128>}]} {
    %c0 = arith.constant 0 : index
    %c0_0 = arith.constant 0 : index
    %0 = vector.load %arg2[%c0, %c0_0] : memref<16x72xbf16, #tpu.memory_space<vmem>>, vector<16x72xbf16>
    %c0_1 = arith.constant 0 : index
    %c0_2 = arith.constant 0 : index
    %1 = vector.load %arg1[%c0_1, %c0_2] : memref<72x128xbf16, #tpu.memory_space<vmem>>, vector<72x128xbf16>
    %cst = arith.constant dense<0.000000e+00> : vector<16x128xf32>
    %2 = tpu.matmul %0, %1, %cst {dimension_numbers = #tpu.dot_dimension_numbers<[1], [0], [0], [1], [0, 0, 1, 1], [], []>} : vector<16x72xbf16>, vector<72x128xbf16>, vector<16x128xf32> -> vector<16x128xf32>
    %c0_3 = arith.constant 0 : index
    %c0_4 = arith.constant 0 : index
    %3 = vector.load %arg3[%c0_3, %c0_4] : memref<16x1xf32, #tpu.memory_space<vmem>>, vector<16x1xf32>
    %4 = vector.broadcast %3 : vector<16x1xf32> to vector<16x128xf32>
    %5 = arith.addf %2, %4 : vector<16x128xf32>
    %cst_5 = arith.constant 0.000000e+00 : f32
    %6 = vector.broadcast %cst_5 : f32 to vector<16x128xf32>
    %7 = arith.maximumf %5, %6 : vector<16x128xf32>
    %8 = arith.truncf %7 : vector<16x128xf32> to vector<16x128xbf16>
    %c0_6 = arith.constant 0 : index
    %c0_7 = arith.constant 0 : index
    %9 = vector.load %arg4[%c0_6, %c0_7] : memref<16x128xbf16, #tpu.memory_space<vmem>>, vector<16x128xbf16>
    tpu.vector_store %arg4[%c0_6, %c0_7], %8 {strides = array<i32>} : memref<16x128xbf16, #tpu.memory_space<vmem>>, vector<16x128xbf16>,
    return
  }
  func.func @transform_0(%arg0: i32) -> (i32, i32) {
    %c0_i32 = arith.constant 0 : i32
    %c0_i32_0 = arith.constant 0 : i32
    return %c0_i32, %arg0 : i32, i32
  }
  func.func @transform_1(%arg0: i32) -> (i32, i32) {
    %c0_i32 = arith.constant 0 : i32
    %c0_i32_0 = arith.constant 0 : i32
    %c0_i32_1 = arith.constant 0 : i32
    return %c0_i32, %c0_i32_0 : i32, i32
  }
  func.func @transform_2(%arg0: i32) -> (i32, i32) {
    %c0_i32 = arith.constant 0 : i32
    %c0_i32_0 = arith.constant 0 : i32
    %c0_i32_1 = arith.constant 0 : i32
    return %c0_i32, %c0_i32_0 : i32, i32
  }
  func.func @transform_3(%arg0: i32) -> (i32, i32) {
    %c0_i32 = arith.constant 0 : i32
    %c0_i32_0 = arith.constant 0 : i32
    return %c0_i32, %arg0 : i32, i32
  }
}

module attributes {stable_mosaic.version = 11 : i64} {
  func.func @_bottleneck_kernel(%arg0: i32, %arg1: memref<16x128xbf16, #tpu.memory_space<vmem>>, %arg2: memref<9x128x32xbf16, #tpu.memory_space<vmem>>, %arg3: memref<9x32x32xbf16, #tpu.memory_space<vmem>>, %arg4: memref<9x32x16xbf16, #tpu.memory_space<vmem>>, %arg5: memref<32x1xf32, #tpu.memory_space<vmem>>, %arg6: memref<9x32x32xbf16, #tpu.memory_space<vmem>>, %arg7: memref<32x1xf32, #tpu.memory_space<vmem>>, %arg8: memref<9x32x32xbf16, #tpu.memory_space<vmem>>, %arg9: memref<32x1xf32, #tpu.memory_space<vmem>>, %arg10: memref<9x32x32xbf16, #tpu.memory_space<vmem>>, %arg11: memref<32x1xf32, #tpu.memory_space<vmem>>, %arg12: memref<9x32x32xbf16, #tpu.memory_space<vmem>>, %arg13: memref<32x1xf32, #tpu.memory_space<vmem>>, %arg14: memref<32x32xbf16, #tpu.memory_space<vmem>>) attributes {dimension_semantics = [#tpu.dimension_semantics<arbitrary>], iteration_bounds = array<i64: 1>, scalar_prefetch = 0 : i64, scratch_operands = 0 : i64, tpu.core_type = #tpu.core_type<tc>, window_params = [{pipeline_mode = #tpu.pipeline_mode<synchronous>, transform_indices = @transform_0, window_bounds = array<i64: 16, 128>}, {pipeline_mode = #tpu.pipeline_mode<synchronous>, transform_indices = @transform_1, window_bounds = array<i64: 9, 128, 32>}, {pipeline_mode = #tpu.pipeline_mode<synchronous>, transform_indices = @transform_2, window_bounds = array<i64: 9, 32, 32>}, {pipeline_mode = #tpu.pipeline_mode<synchronous>, transform_indices = @transform_3, window_bounds = array<i64: 9, 32, 16>}, {pipeline_mode = #tpu.pipeline_mode<synchronous>, transform_indices = @transform_4, window_bounds = array<i64: 32, 1>}, {pipeline_mode = #tpu.pipeline_mode<synchronous>, transform_indices = @transform_5, window_bounds = array<i64: 9, 32, 32>}, {pipeline_mode = #tpu.pipeline_mode<synchronous>, transform_indices = @transform_6, window_bounds = array<i64: 32, 1>}, {pipeline_mode = #tpu.pipeline_mode<synchronous>, transform_indices = @transform_7, window_bounds = array<i64: 9, 32, 32>}, {pipeline_mode = #tpu.pipeline_mode<synchronous>, transform_indices = @transform_8, window_bounds = array<i64: 32, 1>}, {pipeline_mode = #tpu.pipeline_mode<synchronous>, transform_indices = @transform_9, window_bounds = array<i64: 9, 32, 32>}, {pipeline_mode = #tpu.pipeline_mode<synchronous>, transform_indices = @transform_10, window_bounds = array<i64: 32, 1>}, {pipeline_mode = #tpu.pipeline_mode<synchronous>, transform_indices = @transform_11, window_bounds = array<i64: 9, 32, 32>}, {pipeline_mode = #tpu.pipeline_mode<synchronous>, transform_indices = @transform_12, window_bounds = array<i64: 32, 1>}, {pipeline_mode = #tpu.pipeline_mode<synchronous>, transform_indices = @transform_13, window_bounds = array<i64: 32, 32>}]} {
    %c0 = arith.constant 0 : index
    %c0_0 = arith.constant 0 : index
    %0 = vector.load %arg1[%c0, %c0_0] : memref<16x128xbf16, #tpu.memory_space<vmem>>, vector<16x128xbf16>
    %cst = arith.constant 0.000000e+00 : f32
    %1 = vector.broadcast %cst : f32 to vector<32x32xf32>
    %c0_1 = arith.constant 0 : index
    %c0_2 = arith.constant 0 : index
    %c0_3 = arith.constant 0 : index
    %2 = vector.load %arg2[%c0_1, %c0_2, %c0_3] : memref<9x128x32xbf16, #tpu.memory_space<vmem>>, vector<1x128x32xbf16>
    %3 = vector.shape_cast %2 : vector<1x128x32xbf16> to vector<128x32xbf16>
    %cst_4 = arith.constant dense<0.000000e+00> : vector<16x32xf32>
    %4 = tpu.matmul %0, %3, %cst_4 {dimension_numbers = #tpu.dot_dimension_numbers<[1], [0], [0], [1], [0, 0, 1, 1], [], []>} : vector<16x128xbf16>, vector<128x32xbf16>, vector<16x32xf32> -> vector<16x32xf32>
    %5 = arith.truncf %4 : vector<16x32xf32> to vector<16x32xbf16>
    %c0_5 = arith.constant 0 : index
    %c0_6 = arith.constant 0 : index
    %c0_7 = arith.constant 0 : index
    %6 = vector.load %arg4[%c0_5, %c0_6, %c0_7] : memref<9x32x16xbf16, #tpu.memory_space<vmem>>, vector<1x32x16xbf16>
    %7 = vector.shape_cast %6 : vector<1x32x16xbf16> to vector<32x16xbf16>
    %cst_8 = arith.constant dense<0.000000e+00> : vector<32x32xf32>
    %8 = tpu.matmul %7, %5, %cst_8 {dimension_numbers = #tpu.dot_dimension_numbers<[1], [0], [0], [1], [0, 0, 1, 1], [], []>} : vector<32x16xbf16>, vector<16x32xbf16>, vector<32x32xf32> -> vector<32x32xf32>
    %9 = arith.addf %1, %8 : vector<32x32xf32>
    %c1 = arith.constant 1 : index
    %c0_9 = arith.constant 0 : index
    %c0_10 = arith.constant 0 : index
    %10 = vector.load %arg2[%c1, %c0_9, %c0_10] : memref<9x128x32xbf16, #tpu.memory_space<vmem>>, vector<1x128x32xbf16>
    %11 = vector.shape_cast %10 : vector<1x128x32xbf16> to vector<128x32xbf16>
    %cst_11 = arith.constant dense<0.000000e+00> : vector<16x32xf32>
    %12 = tpu.matmul %0, %11, %cst_11 {dimension_numbers = #tpu.dot_dimension_numbers<[1], [0], [0], [1], [0, 0, 1, 1], [], []>} : vector<16x128xbf16>, vector<128x32xbf16>, vector<16x32xf32> -> vector<16x32xf32>
    %13 = arith.truncf %12 : vector<16x32xf32> to vector<16x32xbf16>
    %c1_12 = arith.constant 1 : index
    %c0_13 = arith.constant 0 : index
    %c0_14 = arith.constant 0 : index
    %14 = vector.load %arg4[%c1_12, %c0_13, %c0_14] : memref<9x32x16xbf16, #tpu.memory_space<vmem>>, vector<1x32x16xbf16>
    %15 = vector.shape_cast %14 : vector<1x32x16xbf16> to vector<32x16xbf16>
    %cst_15 = arith.constant dense<0.000000e+00> : vector<32x32xf32>
    %16 = tpu.matmul %15, %13, %cst_15 {dimension_numbers = #tpu.dot_dimension_numbers<[1], [0], [0], [1], [0, 0, 1, 1], [], []>} : vector<32x16xbf16>, vector<16x32xbf16>, vector<32x32xf32> -> vector<32x32xf32>
    %17 = arith.addf %9, %16 : vector<32x32xf32>
    %c2 = arith.constant 2 : index
    %c0_16 = arith.constant 0 : index
    %c0_17 = arith.constant 0 : index
    %18 = vector.load %arg2[%c2, %c0_16, %c0_17] : memref<9x128x32xbf16, #tpu.memory_space<vmem>>, vector<1x128x32xbf16>
    %19 = vector.shape_cast %18 : vector<1x128x32xbf16> to vector<128x32xbf16>
    %cst_18 = arith.constant dense<0.000000e+00> : vector<16x32xf32>
    %20 = tpu.matmul %0, %19, %cst_18 {dimension_numbers = #tpu.dot_dimension_numbers<[1], [0], [0], [1], [0, 0, 1, 1], [], []>} : vector<16x128xbf16>, vector<128x32xbf16>, vector<16x32xf32> -> vector<16x32xf32>
    %21 = arith.truncf %20 : vector<16x32xf32> to vector<16x32xbf16>
    %c2_19 = arith.constant 2 : index
    %c0_20 = arith.constant 0 : index
    %c0_21 = arith.constant 0 : index
    %22 = vector.load %arg4[%c2_19, %c0_20, %c0_21] : memref<9x32x16xbf16, #tpu.memory_space<vmem>>, vector<1x32x16xbf16>
    %23 = vector.shape_cast %22 : vector<1x32x16xbf16> to vector<32x16xbf16>
    %cst_22 = arith.constant dense<0.000000e+00> : vector<32x32xf32>
    %24 = tpu.matmul %23, %21, %cst_22 {dimension_numbers = #tpu.dot_dimension_numbers<[1], [0], [0], [1], [0, 0, 1, 1], [], []>} : vector<32x16xbf16>, vector<16x32xbf16>, vector<32x32xf32> -> vector<32x32xf32>
    %25 = arith.addf %17, %24 : vector<32x32xf32>
    %c3 = arith.constant 3 : index
    %c0_23 = arith.constant 0 : index
    %c0_24 = arith.constant 0 : index
    %26 = vector.load %arg2[%c3, %c0_23, %c0_24] : memref<9x128x32xbf16, #tpu.memory_space<vmem>>, vector<1x128x32xbf16>
    %27 = vector.shape_cast %26 : vector<1x128x32xbf16> to vector<128x32xbf16>
    %cst_25 = arith.constant dense<0.000000e+00> : vector<16x32xf32>
    %28 = tpu.matmul %0, %27, %cst_25 {dimension_numbers = #tpu.dot_dimension_numbers<[1], [0], [0], [1], [0, 0, 1, 1], [], []>} : vector<16x128xbf16>, vector<128x32xbf16>, vector<16x32xf32> -> vector<16x32xf32>
    %29 = arith.truncf %28 : vector<16x32xf32> to vector<16x32xbf16>
    %c3_26 = arith.constant 3 : index
    %c0_27 = arith.constant 0 : index
    %c0_28 = arith.constant 0 : index
    %30 = vector.load %arg4[%c3_26, %c0_27, %c0_28] : memref<9x32x16xbf16, #tpu.memory_space<vmem>>, vector<1x32x16xbf16>
    %31 = vector.shape_cast %30 : vector<1x32x16xbf16> to vector<32x16xbf16>
    %cst_29 = arith.constant dense<0.000000e+00> : vector<32x32xf32>
    %32 = tpu.matmul %31, %29, %cst_29 {dimension_numbers = #tpu.dot_dimension_numbers<[1], [0], [0], [1], [0, 0, 1, 1], [], []>} : vector<32x16xbf16>, vector<16x32xbf16>, vector<32x32xf32> -> vector<32x32xf32>
    %33 = arith.addf %25, %32 : vector<32x32xf32>
    %c4 = arith.constant 4 : index
    %c0_30 = arith.constant 0 : index
    %c0_31 = arith.constant 0 : index
    %34 = vector.load %arg2[%c4, %c0_30, %c0_31] : memref<9x128x32xbf16, #tpu.memory_space<vmem>>, vector<1x128x32xbf16>
    %35 = vector.shape_cast %34 : vector<1x128x32xbf16> to vector<128x32xbf16>
    %cst_32 = arith.constant dense<0.000000e+00> : vector<16x32xf32>
    %36 = tpu.matmul %0, %35, %cst_32 {dimension_numbers = #tpu.dot_dimension_numbers<[1], [0], [0], [1], [0, 0, 1, 1], [], []>} : vector<16x128xbf16>, vector<128x32xbf16>, vector<16x32xf32> -> vector<16x32xf32>
    %37 = arith.truncf %36 : vector<16x32xf32> to vector<16x32xbf16>
    %c4_33 = arith.constant 4 : index
    %c0_34 = arith.constant 0 : index
    %c0_35 = arith.constant 0 : index
    %38 = vector.load %arg4[%c4_33, %c0_34, %c0_35] : memref<9x32x16xbf16, #tpu.memory_space<vmem>>, vector<1x32x16xbf16>
    %39 = vector.shape_cast %38 : vector<1x32x16xbf16> to vector<32x16xbf16>
    %cst_36 = arith.constant dense<0.000000e+00> : vector<32x32xf32>
    %40 = tpu.matmul %39, %37, %cst_36 {dimension_numbers = #tpu.dot_dimension_numbers<[1], [0], [0], [1], [0, 0, 1, 1], [], []>} : vector<32x16xbf16>, vector<16x32xbf16>, vector<32x32xf32> -> vector<32x32xf32>
    %41 = arith.addf %33, %40 : vector<32x32xf32>
    %c5 = arith.constant 5 : index
    %c0_37 = arith.constant 0 : index
    %c0_38 = arith.constant 0 : index
    %42 = vector.load %arg2[%c5, %c0_37, %c0_38] : memref<9x128x32xbf16, #tpu.memory_space<vmem>>, vector<1x128x32xbf16>
    %43 = vector.shape_cast %42 : vector<1x128x32xbf16> to vector<128x32xbf16>
    %cst_39 = arith.constant dense<0.000000e+00> : vector<16x32xf32>
    %44 = tpu.matmul %0, %43, %cst_39 {dimension_numbers = #tpu.dot_dimension_numbers<[1], [0], [0], [1], [0, 0, 1, 1], [], []>} : vector<16x128xbf16>, vector<128x32xbf16>, vector<16x32xf32> -> vector<16x32xf32>
    %45 = arith.truncf %44 : vector<16x32xf32> to vector<16x32xbf16>
    %c5_40 = arith.constant 5 : index
    %c0_41 = arith.constant 0 : index
    %c0_42 = arith.constant 0 : index
    %46 = vector.load %arg4[%c5_40, %c0_41, %c0_42] : memref<9x32x16xbf16, #tpu.memory_space<vmem>>, vector<1x32x16xbf16>
    %47 = vector.shape_cast %46 : vector<1x32x16xbf16> to vector<32x16xbf16>
    %cst_43 = arith.constant dense<0.000000e+00> : vector<32x32xf32>
    %48 = tpu.matmul %47, %45, %cst_43 {dimension_numbers = #tpu.dot_dimension_numbers<[1], [0], [0], [1], [0, 0, 1, 1], [], []>} : vector<32x16xbf16>, vector<16x32xbf16>, vector<32x32xf32> -> vector<32x32xf32>
    %49 = arith.addf %41, %48 : vector<32x32xf32>
    %c6 = arith.constant 6 : index
    %c0_44 = arith.constant 0 : index
    %c0_45 = arith.constant 0 : index
    %50 = vector.load %arg2[%c6, %c0_44, %c0_45] : memref<9x128x32xbf16, #tpu.memory_space<vmem>>, vector<1x128x32xbf16>
    %51 = vector.shape_cast %50 : vector<1x128x32xbf16> to vector<128x32xbf16>
    %cst_46 = arith.constant dense<0.000000e+00> : vector<16x32xf32>
    %52 = tpu.matmul %0, %51, %cst_46 {dimension_numbers = #tpu.dot_dimension_numbers<[1], [0], [0], [1], [0, 0, 1, 1], [], []>} : vector<16x128xbf16>, vector<128x32xbf16>, vector<16x32xf32> -> vector<16x32xf32>
    %53 = arith.truncf %52 : vector<16x32xf32> to vector<16x32xbf16>
    %c6_47 = arith.constant 6 : index
    %c0_48 = arith.constant 0 : index
    %c0_49 = arith.constant 0 : index
    %54 = vector.load %arg4[%c6_47, %c0_48, %c0_49] : memref<9x32x16xbf16, #tpu.memory_space<vmem>>, vector<1x32x16xbf16>
    %55 = vector.shape_cast %54 : vector<1x32x16xbf16> to vector<32x16xbf16>
    %cst_50 = arith.constant dense<0.000000e+00> : vector<32x32xf32>
    %56 = tpu.matmul %55, %53, %cst_50 {dimension_numbers = #tpu.dot_dimension_numbers<[1], [0], [0], [1], [0, 0, 1, 1], [], []>} : vector<32x16xbf16>, vector<16x32xbf16>, vector<32x32xf32> -> vector<32x32xf32>
    %57 = arith.addf %49, %56 : vector<32x32xf32>
    %c7 = arith.constant 7 : index
    %c0_51 = arith.constant 0 : index
    %c0_52 = arith.constant 0 : index
    %58 = vector.load %arg2[%c7, %c0_51, %c0_52] : memref<9x128x32xbf16, #tpu.memory_space<vmem>>, vector<1x128x32xbf16>
    %59 = vector.shape_cast %58 : vector<1x128x32xbf16> to vector<128x32xbf16>
    %cst_53 = arith.constant dense<0.000000e+00> : vector<16x32xf32>
    %60 = tpu.matmul %0, %59, %cst_53 {dimension_numbers = #tpu.dot_dimension_numbers<[1], [0], [0], [1], [0, 0, 1, 1], [], []>} : vector<16x128xbf16>, vector<128x32xbf16>, vector<16x32xf32> -> vector<16x32xf32>
    %61 = arith.truncf %60 : vector<16x32xf32> to vector<16x32xbf16>
    %c7_54 = arith.constant 7 : index
    %c0_55 = arith.constant 0 : index
    %c0_56 = arith.constant 0 : index
    %62 = vector.load %arg4[%c7_54, %c0_55, %c0_56] : memref<9x32x16xbf16, #tpu.memory_space<vmem>>, vector<1x32x16xbf16>
    %63 = vector.shape_cast %62 : vector<1x32x16xbf16> to vector<32x16xbf16>
    %cst_57 = arith.constant dense<0.000000e+00> : vector<32x32xf32>
    %64 = tpu.matmul %63, %61, %cst_57 {dimension_numbers = #tpu.dot_dimension_numbers<[1], [0], [0], [1], [0, 0, 1, 1], [], []>} : vector<32x16xbf16>, vector<16x32xbf16>, vector<32x32xf32> -> vector<32x32xf32>
    %65 = arith.addf %57, %64 : vector<32x32xf32>
    %c8 = arith.constant 8 : index
    %c0_58 = arith.constant 0 : index
    %c0_59 = arith.constant 0 : index
    %66 = vector.load %arg2[%c8, %c0_58, %c0_59] : memref<9x128x32xbf16, #tpu.memory_space<vmem>>, vector<1x128x32xbf16>
    %67 = vector.shape_cast %66 : vector<1x128x32xbf16> to vector<128x32xbf16>
    %cst_60 = arith.constant dense<0.000000e+00> : vector<16x32xf32>
    %68 = tpu.matmul %0, %67, %cst_60 {dimension_numbers = #tpu.dot_dimension_numbers<[1], [0], [0], [1], [0, 0, 1, 1], [], []>} : vector<16x128xbf16>, vector<128x32xbf16>, vector<16x32xf32> -> vector<16x32xf32>
    %69 = arith.truncf %68 : vector<16x32xf32> to vector<16x32xbf16>
    %c8_61 = arith.constant 8 : index
    %c0_62 = arith.constant 0 : index
    %c0_63 = arith.constant 0 : index
    %70 = vector.load %arg4[%c8_61, %c0_62, %c0_63] : memref<9x32x16xbf16, #tpu.memory_space<vmem>>, vector<1x32x16xbf16>
    %71 = vector.shape_cast %70 : vector<1x32x16xbf16> to vector<32x16xbf16>
    %cst_64 = arith.constant dense<0.000000e+00> : vector<32x32xf32>
    %72 = tpu.matmul %71, %69, %cst_64 {dimension_numbers = #tpu.dot_dimension_numbers<[1], [0], [0], [1], [0, 0, 1, 1], [], []>} : vector<32x16xbf16>, vector<16x32xbf16>, vector<32x32xf32> -> vector<32x32xf32>
    %73 = arith.addf %65, %72 : vector<32x32xf32>
    %c0_65 = arith.constant 0 : index
    %c0_66 = arith.constant 0 : index
    %74 = vector.load %arg5[%c0_65, %c0_66] : memref<32x1xf32, #tpu.memory_space<vmem>>, vector<32x1xf32>
    %75 = vector.broadcast %74 : vector<32x1xf32> to vector<32x32xf32>
    %76 = arith.addf %73, %75 : vector<32x32xf32>
    %cst_67 = arith.constant 0.000000e+00 : f32
    %77 = vector.broadcast %cst_67 : f32 to vector<32x32xf32>
    %78 = arith.maximumf %76, %77 : vector<32x32xf32>
    %79 = arith.truncf %78 : vector<32x32xf32> to vector<32x32xbf16>
    %cst_68 = arith.constant 0.000000e+00 : f32
    %80 = vector.broadcast %cst_68 : f32 to vector<32x32xf32>
    %c0_69 = arith.constant 0 : index
    %c0_70 = arith.constant 0 : index
    %c0_71 = arith.constant 0 : index
    %81 = vector.load %arg3[%c0_69, %c0_70, %c0_71] : memref<9x32x32xbf16, #tpu.memory_space<vmem>>, vector<1x32x32xbf16>
    %82 = vector.shape_cast %81 : vector<1x32x32xbf16> to vector<32x32xbf16>
    %cst_72 = arith.constant dense<0.000000e+00> : vector<32x32xf32>
    %83 = tpu.matmul %79, %82, %cst_72 {dimension_numbers = #tpu.dot_dimension_numbers<[1], [0], [0], [1], [0, 0, 1, 1], [], []>} : vector<32x32xbf16>, vector<32x32xbf16>, vector<32x32xf32> -> vector<32x32xf32>
    %84 = arith.truncf %83 : vector<32x32xf32> to vector<32x32xbf16>
    %c0_73 = arith.constant 0 : index
    %c0_74 = arith.constant 0 : index
    %c0_75 = arith.constant 0 : index
    %85 = vector.load %arg6[%c0_73, %c0_74, %c0_75] : memref<9x32x32xbf16, #tpu.memory_space<vmem>>, vector<1x32x32xbf16>
    %86 = vector.shape_cast %85 : vector<1x32x32xbf16> to vector<32x32xbf16>
    %cst_76 = arith.constant dense<0.000000e+00> : vector<32x32xf32>
    %87 = tpu.matmul %86, %84, %cst_76 {dimension_numbers = #tpu.dot_dimension_numbers<[1], [0], [0], [1], [0, 0, 1, 1], [], []>} : vector<32x32xbf16>, vector<32x32xbf16>, vector<32x32xf32> -> vector<32x32xf32>
    %88 = arith.addf %80, %87 : vector<32x32xf32>
    %c1_77 = arith.constant 1 : index
    %c0_78 = arith.constant 0 : index
    %c0_79 = arith.constant 0 : index
    %89 = vector.load %arg3[%c1_77, %c0_78, %c0_79] : memref<9x32x32xbf16, #tpu.memory_space<vmem>>, vector<1x32x32xbf16>
    %90 = vector.shape_cast %89 : vector<1x32x32xbf16> to vector<32x32xbf16>
    %cst_80 = arith.constant dense<0.000000e+00> : vector<32x32xf32>
    %91 = tpu.matmul %79, %90, %cst_80 {dimension_numbers = #tpu.dot_dimension_numbers<[1], [0], [0], [1], [0, 0, 1, 1], [], []>} : vector<32x32xbf16>, vector<32x32xbf16>, vector<32x32xf32> -> vector<32x32xf32>
    %92 = arith.truncf %91 : vector<32x32xf32> to vector<32x32xbf16>
    %c1_81 = arith.constant 1 : index
    %c0_82 = arith.constant 0 : index
    %c0_83 = arith.constant 0 : index
    %93 = vector.load %arg6[%c1_81, %c0_82, %c0_83] : memref<9x32x32xbf16, #tpu.memory_space<vmem>>, vector<1x32x32xbf16>
    %94 = vector.shape_cast %93 : vector<1x32x32xbf16> to vector<32x32xbf16>
    %cst_84 = arith.constant dense<0.000000e+00> : vector<32x32xf32>
    %95 = tpu.matmul %94, %92, %cst_84 {dimension_numbers = #tpu.dot_dimension_numbers<[1], [0], [0], [1], [0, 0, 1, 1], [], []>} : vector<32x32xbf16>, vector<32x32xbf16>, vector<32x32xf32> -> vector<32x32xf32>
    %96 = arith.addf %88, %95 : vector<32x32xf32>
    %c2_85 = arith.constant 2 : index
    %c0_86 = arith.constant 0 : index
    %c0_87 = arith.constant 0 : index
    %97 = vector.load %arg3[%c2_85, %c0_86, %c0_87] : memref<9x32x32xbf16, #tpu.memory_space<vmem>>, vector<1x32x32xbf16>
    %98 = vector.shape_cast %97 : vector<1x32x32xbf16> to vector<32x32xbf16>
    %cst_88 = arith.constant dense<0.000000e+00> : vector<32x32xf32>
    %99 = tpu.matmul %79, %98, %cst_88 {dimension_numbers = #tpu.dot_dimension_numbers<[1], [0], [0], [1], [0, 0, 1, 1], [], []>} : vector<32x32xbf16>, vector<32x32xbf16>, vector<32x32xf32> -> vector<32x32xf32>
    %100 = arith.truncf %99 : vector<32x32xf32> to vector<32x32xbf16>
    %c2_89 = arith.constant 2 : index
    %c0_90 = arith.constant 0 : index
    %c0_91 = arith.constant 0 : index
    %101 = vector.load %arg6[%c2_89, %c0_90, %c0_91] : memref<9x32x32xbf16, #tpu.memory_space<vmem>>, vector<1x32x32xbf16>
    %102 = vector.shape_cast %101 : vector<1x32x32xbf16> to vector<32x32xbf16>
    %cst_92 = arith.constant dense<0.000000e+00> : vector<32x32xf32>
    %103 = tpu.matmul %102, %100, %cst_92 {dimension_numbers = #tpu.dot_dimension_numbers<[1], [0], [0], [1], [0, 0, 1, 1], [], []>} : vector<32x32xbf16>, vector<32x32xbf16>, vector<32x32xf32> -> vector<32x32xf32>
    %104 = arith.addf %96, %103 : vector<32x32xf32>
    %c3_93 = arith.constant 3 : index
    %c0_94 = arith.constant 0 : index
    %c0_95 = arith.constant 0 : index
    %105 = vector.load %arg3[%c3_93, %c0_94, %c0_95] : memref<9x32x32xbf16, #tpu.memory_space<vmem>>, vector<1x32x32xbf16>
    %106 = vector.shape_cast %105 : vector<1x32x32xbf16> to vector<32x32xbf16>
    %cst_96 = arith.constant dense<0.000000e+00> : vector<32x32xf32>
    %107 = tpu.matmul %79, %106, %cst_96 {dimension_numbers = #tpu.dot_dimension_numbers<[1], [0], [0], [1], [0, 0, 1, 1], [], []>} : vector<32x32xbf16>, vector<32x32xbf16>, vector<32x32xf32> -> vector<32x32xf32>
    %108 = arith.truncf %107 : vector<32x32xf32> to vector<32x32xbf16>
    %c3_97 = arith.constant 3 : index
    %c0_98 = arith.constant 0 : index
    %c0_99 = arith.constant 0 : index
    %109 = vector.load %arg6[%c3_97, %c0_98, %c0_99] : memref<9x32x32xbf16, #tpu.memory_space<vmem>>, vector<1x32x32xbf16>
    %110 = vector.shape_cast %109 : vector<1x32x32xbf16> to vector<32x32xbf16>
    %cst_100 = arith.constant dense<0.000000e+00> : vector<32x32xf32>
    %111 = tpu.matmul %110, %108, %cst_100 {dimension_numbers = #tpu.dot_dimension_numbers<[1], [0], [0], [1], [0, 0, 1, 1], [], []>} : vector<32x32xbf16>, vector<32x32xbf16>, vector<32x32xf32> -> vector<32x32xf32>
    %112 = arith.addf %104, %111 : vector<32x32xf32>
    %c4_101 = arith.constant 4 : index
    %c0_102 = arith.constant 0 : index
    %c0_103 = arith.constant 0 : index
    %113 = vector.load %arg3[%c4_101, %c0_102, %c0_103] : memref<9x32x32xbf16, #tpu.memory_space<vmem>>, vector<1x32x32xbf16>
    %114 = vector.shape_cast %113 : vector<1x32x32xbf16> to vector<32x32xbf16>
    %cst_104 = arith.constant dense<0.000000e+00> : vector<32x32xf32>
    %115 = tpu.matmul %79, %114, %cst_104 {dimension_numbers = #tpu.dot_dimension_numbers<[1], [0], [0], [1], [0, 0, 1, 1], [], []>} : vector<32x32xbf16>, vector<32x32xbf16>, vector<32x32xf32> -> vector<32x32xf32>
    %116 = arith.truncf %115 : vector<32x32xf32> to vector<32x32xbf16>
    %c4_105 = arith.constant 4 : index
    %c0_106 = arith.constant 0 : index
    %c0_107 = arith.constant 0 : index
    %117 = vector.load %arg6[%c4_105, %c0_106, %c0_107] : memref<9x32x32xbf16, #tpu.memory_space<vmem>>, vector<1x32x32xbf16>
    %118 = vector.shape_cast %117 : vector<1x32x32xbf16> to vector<32x32xbf16>
    %cst_108 = arith.constant dense<0.000000e+00> : vector<32x32xf32>
    %119 = tpu.matmul %118, %116, %cst_108 {dimension_numbers = #tpu.dot_dimension_numbers<[1], [0], [0], [1], [0, 0, 1, 1], [], []>} : vector<32x32xbf16>, vector<32x32xbf16>, vector<32x32xf32> -> vector<32x32xf32>
    %120 = arith.addf %112, %119 : vector<32x32xf32>
    %c5_109 = arith.constant 5 : index
    %c0_110 = arith.constant 0 : index
    %c0_111 = arith.constant 0 : index
    %121 = vector.load %arg3[%c5_109, %c0_110, %c0_111] : memref<9x32x32xbf16, #tpu.memory_space<vmem>>, vector<1x32x32xbf16>
    %122 = vector.shape_cast %121 : vector<1x32x32xbf16> to vector<32x32xbf16>
    %cst_112 = arith.constant dense<0.000000e+00> : vector<32x32xf32>
    %123 = tpu.matmul %79, %122, %cst_112 {dimension_numbers = #tpu.dot_dimension_numbers<[1], [0], [0], [1], [0, 0, 1, 1], [], []>} : vector<32x32xbf16>, vector<32x32xbf16>, vector<32x32xf32> -> vector<32x32xf32>
    %124 = arith.truncf %123 : vector<32x32xf32> to vector<32x32xbf16>
    %c5_113 = arith.constant 5 : index
    %c0_114 = arith.constant 0 : index
    %c0_115 = arith.constant 0 : index
    %125 = vector.load %arg6[%c5_113, %c0_114, %c0_115] : memref<9x32x32xbf16, #tpu.memory_space<vmem>>, vector<1x32x32xbf16>
    %126 = vector.shape_cast %125 : vector<1x32x32xbf16> to vector<32x32xbf16>
    %cst_116 = arith.constant dense<0.000000e+00> : vector<32x32xf32>
    %127 = tpu.matmul %126, %124, %cst_116 {dimension_numbers = #tpu.dot_dimension_numbers<[1], [0], [0], [1], [0, 0, 1, 1], [], []>} : vector<32x32xbf16>, vector<32x32xbf16>, vector<32x32xf32> -> vector<32x32xf32>
    %128 = arith.addf %120, %127 : vector<32x32xf32>
    %c6_117 = arith.constant 6 : index
    %c0_118 = arith.constant 0 : index
    %c0_119 = arith.constant 0 : index
    %129 = vector.load %arg3[%c6_117, %c0_118, %c0_119] : memref<9x32x32xbf16, #tpu.memory_space<vmem>>, vector<1x32x32xbf16>
    %130 = vector.shape_cast %129 : vector<1x32x32xbf16> to vector<32x32xbf16>
    %cst_120 = arith.constant dense<0.000000e+00> : vector<32x32xf32>
    %131 = tpu.matmul %79, %130, %cst_120 {dimension_numbers = #tpu.dot_dimension_numbers<[1], [0], [0], [1], [0, 0, 1, 1], [], []>} : vector<32x32xbf16>, vector<32x32xbf16>, vector<32x32xf32> -> vector<32x32xf32>
    %132 = arith.truncf %131 : vector<32x32xf32> to vector<32x32xbf16>
    %c6_121 = arith.constant 6 : index
    %c0_122 = arith.constant 0 : index
    %c0_123 = arith.constant 0 : index
    %133 = vector.load %arg6[%c6_121, %c0_122, %c0_123] : memref<9x32x32xbf16, #tpu.memory_space<vmem>>, vector<1x32x32xbf16>
    %134 = vector.shape_cast %133 : vector<1x32x32xbf16> to vector<32x32xbf16>
    %cst_124 = arith.constant dense<0.000000e+00> : vector<32x32xf32>
    %135 = tpu.matmul %134, %132, %cst_124 {dimension_numbers = #tpu.dot_dimension_numbers<[1], [0], [0], [1], [0, 0, 1, 1], [], []>} : vector<32x32xbf16>, vector<32x32xbf16>, vector<32x32xf32> -> vector<32x32xf32>
    %136 = arith.addf %128, %135 : vector<32x32xf32>
    %c7_125 = arith.constant 7 : index
    %c0_126 = arith.constant 0 : index
    %c0_127 = arith.constant 0 : index
    %137 = vector.load %arg3[%c7_125, %c0_126, %c0_127] : memref<9x32x32xbf16, #tpu.memory_space<vmem>>, vector<1x32x32xbf16>
    %138 = vector.shape_cast %137 : vector<1x32x32xbf16> to vector<32x32xbf16>
    %cst_128 = arith.constant dense<0.000000e+00> : vector<32x32xf32>
    %139 = tpu.matmul %79, %138, %cst_128 {dimension_numbers = #tpu.dot_dimension_numbers<[1], [0], [0], [1], [0, 0, 1, 1], [], []>} : vector<32x32xbf16>, vector<32x32xbf16>, vector<32x32xf32> -> vector<32x32xf32>
    %140 = arith.truncf %139 : vector<32x32xf32> to vector<32x32xbf16>
    %c7_129 = arith.constant 7 : index
    %c0_130 = arith.constant 0 : index
    %c0_131 = arith.constant 0 : index
    %141 = vector.load %arg6[%c7_129, %c0_130, %c0_131] : memref<9x32x32xbf16, #tpu.memory_space<vmem>>, vector<1x32x32xbf16>
    %142 = vector.shape_cast %141 : vector<1x32x32xbf16> to vector<32x32xbf16>
    %cst_132 = arith.constant dense<0.000000e+00> : vector<32x32xf32>
    %143 = tpu.matmul %142, %140, %cst_132 {dimension_numbers = #tpu.dot_dimension_numbers<[1], [0], [0], [1], [0, 0, 1, 1], [], []>} : vector<32x32xbf16>, vector<32x32xbf16>, vector<32x32xf32> -> vector<32x32xf32>
    %144 = arith.addf %136, %143 : vector<32x32xf32>
    %c8_133 = arith.constant 8 : index
    %c0_134 = arith.constant 0 : index
    %c0_135 = arith.constant 0 : index
    %145 = vector.load %arg3[%c8_133, %c0_134, %c0_135] : memref<9x32x32xbf16, #tpu.memory_space<vmem>>, vector<1x32x32xbf16>
    %146 = vector.shape_cast %145 : vector<1x32x32xbf16> to vector<32x32xbf16>
    %cst_136 = arith.constant dense<0.000000e+00> : vector<32x32xf32>
    %147 = tpu.matmul %79, %146, %cst_136 {dimension_numbers = #tpu.dot_dimension_numbers<[1], [0], [0], [1], [0, 0, 1, 1], [], []>} : vector<32x32xbf16>, vector<32x32xbf16>, vector<32x32xf32> -> vector<32x32xf32>
    %148 = arith.truncf %147 : vector<32x32xf32> to vector<32x32xbf16>
    %c8_137 = arith.constant 8 : index
    %c0_138 = arith.constant 0 : index
    %c0_139 = arith.constant 0 : index
    %149 = vector.load %arg6[%c8_137, %c0_138, %c0_139] : memref<9x32x32xbf16, #tpu.memory_space<vmem>>, vector<1x32x32xbf16>
    %150 = vector.shape_cast %149 : vector<1x32x32xbf16> to vector<32x32xbf16>
    %cst_140 = arith.constant dense<0.000000e+00> : vector<32x32xf32>
    %151 = tpu.matmul %150, %148, %cst_140 {dimension_numbers = #tpu.dot_dimension_numbers<[1], [0], [0], [1], [0, 0, 1, 1], [], []>} : vector<32x32xbf16>, vector<32x32xbf16>, vector<32x32xf32> -> vector<32x32xf32>
    %152 = arith.addf %144, %151 : vector<32x32xf32>
    %c0_141 = arith.constant 0 : index
    %c0_142 = arith.constant 0 : index
    %153 = vector.load %arg7[%c0_141, %c0_142] : memref<32x1xf32, #tpu.memory_space<vmem>>, vector<32x1xf32>
    %154 = vector.broadcast %153 : vector<32x1xf32> to vector<32x32xf32>
    %155 = arith.addf %152, %154 : vector<32x32xf32>
    %cst_143 = arith.constant 0.000000e+00 : f32
    %156 = vector.broadcast %cst_143 : f32 to vector<32x32xf32>
    %157 = arith.maximumf %155, %156 : vector<32x32xf32>
    %158 = arith.truncf %157 : vector<32x32xf32> to vector<32x32xbf16>
    %159 = arith.extf %79 : vector<32x32xbf16> to vector<32x32xf32>
    %cst_144 = arith.constant 0.000000e+00 : f32
    %160 = vector.broadcast %cst_144 : f32 to vector<32x32xf32>
    %c0_145 = arith.constant 0 : index
    %c0_146 = arith.constant 0 : index
    %c0_147 = arith.constant 0 : index
    %161 = vector.load %arg3[%c0_145, %c0_146, %c0_147] : memref<9x32x32xbf16, #tpu.memory_space<vmem>>, vector<1x32x32xbf16>
    %162 = vector.shape_cast %161 : vector<1x32x32xbf16> to vector<32x32xbf16>
    %cst_148 = arith.constant dense<0.000000e+00> : vector<32x32xf32>
    %163 = tpu.matmul %158, %162, %cst_148 {dimension_numbers = #tpu.dot_dimension_numbers<[1], [0], [0], [1], [0, 0, 1, 1], [], []>} : vector<32x32xbf16>, vector<32x32xbf16>, vector<32x32xf32> -> vector<32x32xf32>
    %164 = arith.truncf %163 : vector<32x32xf32> to vector<32x32xbf16>
    %c0_149 = arith.constant 0 : index
    %c0_150 = arith.constant 0 : index
    %c0_151 = arith.constant 0 : index
    %165 = vector.load %arg8[%c0_149, %c0_150, %c0_151] : memref<9x32x32xbf16, #tpu.memory_space<vmem>>, vector<1x32x32xbf16>
    %166 = vector.shape_cast %165 : vector<1x32x32xbf16> to vector<32x32xbf16>
    %cst_152 = arith.constant dense<0.000000e+00> : vector<32x32xf32>
    %167 = tpu.matmul %166, %164, %cst_152 {dimension_numbers = #tpu.dot_dimension_numbers<[1], [0], [0], [1], [0, 0, 1, 1], [], []>} : vector<32x32xbf16>, vector<32x32xbf16>, vector<32x32xf32> -> vector<32x32xf32>
    %168 = arith.addf %160, %167 : vector<32x32xf32>
    %c1_153 = arith.constant 1 : index
    %c0_154 = arith.constant 0 : index
    %c0_155 = arith.constant 0 : index
    %169 = vector.load %arg3[%c1_153, %c0_154, %c0_155] : memref<9x32x32xbf16, #tpu.memory_space<vmem>>, vector<1x32x32xbf16>
    %170 = vector.shape_cast %169 : vector<1x32x32xbf16> to vector<32x32xbf16>
    %cst_156 = arith.constant dense<0.000000e+00> : vector<32x32xf32>
    %171 = tpu.matmul %158, %170, %cst_156 {dimension_numbers = #tpu.dot_dimension_numbers<[1], [0], [0], [1], [0, 0, 1, 1], [], []>} : vector<32x32xbf16>, vector<32x32xbf16>, vector<32x32xf32> -> vector<32x32xf32>
    %172 = arith.truncf %171 : vector<32x32xf32> to vector<32x32xbf16>
    %c1_157 = arith.constant 1 : index
    %c0_158 = arith.constant 0 : index
    %c0_159 = arith.constant 0 : index
    %173 = vector.load %arg8[%c1_157, %c0_158, %c0_159] : memref<9x32x32xbf16, #tpu.memory_space<vmem>>, vector<1x32x32xbf16>
    %174 = vector.shape_cast %173 : vector<1x32x32xbf16> to vector<32x32xbf16>
    %cst_160 = arith.constant dense<0.000000e+00> : vector<32x32xf32>
    %175 = tpu.matmul %174, %172, %cst_160 {dimension_numbers = #tpu.dot_dimension_numbers<[1], [0], [0], [1], [0, 0, 1, 1], [], []>} : vector<32x32xbf16>, vector<32x32xbf16>, vector<32x32xf32> -> vector<32x32xf32>
    %176 = arith.addf %168, %175 : vector<32x32xf32>
    %c2_161 = arith.constant 2 : index
    %c0_162 = arith.constant 0 : index
    %c0_163 = arith.constant 0 : index
    %177 = vector.load %arg3[%c2_161, %c0_162, %c0_163] : memref<9x32x32xbf16, #tpu.memory_space<vmem>>, vector<1x32x32xbf16>
    %178 = vector.shape_cast %177 : vector<1x32x32xbf16> to vector<32x32xbf16>
    %cst_164 = arith.constant dense<0.000000e+00> : vector<32x32xf32>
    %179 = tpu.matmul %158, %178, %cst_164 {dimension_numbers = #tpu.dot_dimension_numbers<[1], [0], [0], [1], [0, 0, 1, 1], [], []>} : vector<32x32xbf16>, vector<32x32xbf16>, vector<32x32xf32> -> vector<32x32xf32>
    %180 = arith.truncf %179 : vector<32x32xf32> to vector<32x32xbf16>
    %c2_165 = arith.constant 2 : index
    %c0_166 = arith.constant 0 : index
    %c0_167 = arith.constant 0 : index
    %181 = vector.load %arg8[%c2_165, %c0_166, %c0_167] : memref<9x32x32xbf16, #tpu.memory_space<vmem>>, vector<1x32x32xbf16>
    %182 = vector.shape_cast %181 : vector<1x32x32xbf16> to vector<32x32xbf16>
    %cst_168 = arith.constant dense<0.000000e+00> : vector<32x32xf32>
    %183 = tpu.matmul %182, %180, %cst_168 {dimension_numbers = #tpu.dot_dimension_numbers<[1], [0], [0], [1], [0, 0, 1, 1], [], []>} : vector<32x32xbf16>, vector<32x32xbf16>, vector<32x32xf32> -> vector<32x32xf32>
    %184 = arith.addf %176, %183 : vector<32x32xf32>
    %c3_169 = arith.constant 3 : index
    %c0_170 = arith.constant 0 : index
    %c0_171 = arith.constant 0 : index
    %185 = vector.load %arg3[%c3_169, %c0_170, %c0_171] : memref<9x32x32xbf16, #tpu.memory_space<vmem>>, vector<1x32x32xbf16>
    %186 = vector.shape_cast %185 : vector<1x32x32xbf16> to vector<32x32xbf16>
    %cst_172 = arith.constant dense<0.000000e+00> : vector<32x32xf32>
    %187 = tpu.matmul %158, %186, %cst_172 {dimension_numbers = #tpu.dot_dimension_numbers<[1], [0], [0], [1], [0, 0, 1, 1], [], []>} : vector<32x32xbf16>, vector<32x32xbf16>, vector<32x32xf32> -> vector<32x32xf32>
    %188 = arith.truncf %187 : vector<32x32xf32> to vector<32x32xbf16>
    %c3_173 = arith.constant 3 : index
    %c0_174 = arith.constant 0 : index
    %c0_175 = arith.constant 0 : index
    %189 = vector.load %arg8[%c3_173, %c0_174, %c0_175] : memref<9x32x32xbf16, #tpu.memory_space<vmem>>, vector<1x32x32xbf16>
    %190 = vector.shape_cast %189 : vector<1x32x32xbf16> to vector<32x32xbf16>
    %cst_176 = arith.constant dense<0.000000e+00> : vector<32x32xf32>
    %191 = tpu.matmul %190, %188, %cst_176 {dimension_numbers = #tpu.dot_dimension_numbers<[1], [0], [0], [1], [0, 0, 1, 1], [], []>} : vector<32x32xbf16>, vector<32x32xbf16>, vector<32x32xf32> -> vector<32x32xf32>
    %192 = arith.addf %184, %191 : vector<32x32xf32>
    %c4_177 = arith.constant 4 : index
    %c0_178 = arith.constant 0 : index
    %c0_179 = arith.constant 0 : index
    %193 = vector.load %arg3[%c4_177, %c0_178, %c0_179] : memref<9x32x32xbf16, #tpu.memory_space<vmem>>, vector<1x32x32xbf16>
    %194 = vector.shape_cast %193 : vector<1x32x32xbf16> to vector<32x32xbf16>
    %cst_180 = arith.constant dense<0.000000e+00> : vector<32x32xf32>
    %195 = tpu.matmul %158, %194, %cst_180 {dimension_numbers = #tpu.dot_dimension_numbers<[1], [0], [0], [1], [0, 0, 1, 1], [], []>} : vector<32x32xbf16>, vector<32x32xbf16>, vector<32x32xf32> -> vector<32x32xf32>
    %196 = arith.truncf %195 : vector<32x32xf32> to vector<32x32xbf16>
    %c4_181 = arith.constant 4 : index
    %c0_182 = arith.constant 0 : index
    %c0_183 = arith.constant 0 : index
    %197 = vector.load %arg8[%c4_181, %c0_182, %c0_183] : memref<9x32x32xbf16, #tpu.memory_space<vmem>>, vector<1x32x32xbf16>
    %198 = vector.shape_cast %197 : vector<1x32x32xbf16> to vector<32x32xbf16>
    %cst_184 = arith.constant dense<0.000000e+00> : vector<32x32xf32>
    %199 = tpu.matmul %198, %196, %cst_184 {dimension_numbers = #tpu.dot_dimension_numbers<[1], [0], [0], [1], [0, 0, 1, 1], [], []>} : vector<32x32xbf16>, vector<32x32xbf16>, vector<32x32xf32> -> vector<32x32xf32>
    %200 = arith.addf %192, %199 : vector<32x32xf32>
    %c5_185 = arith.constant 5 : index
    %c0_186 = arith.constant 0 : index
    %c0_187 = arith.constant 0 : index
    %201 = vector.load %arg3[%c5_185, %c0_186, %c0_187] : memref<9x32x32xbf16, #tpu.memory_space<vmem>>, vector<1x32x32xbf16>
    %202 = vector.shape_cast %201 : vector<1x32x32xbf16> to vector<32x32xbf16>
    %cst_188 = arith.constant dense<0.000000e+00> : vector<32x32xf32>
    %203 = tpu.matmul %158, %202, %cst_188 {dimension_numbers = #tpu.dot_dimension_numbers<[1], [0], [0], [1], [0, 0, 1, 1], [], []>} : vector<32x32xbf16>, vector<32x32xbf16>, vector<32x32xf32> -> vector<32x32xf32>
    %204 = arith.truncf %203 : vector<32x32xf32> to vector<32x32xbf16>
    %c5_189 = arith.constant 5 : index
    %c0_190 = arith.constant 0 : index
    %c0_191 = arith.constant 0 : index
    %205 = vector.load %arg8[%c5_189, %c0_190, %c0_191] : memref<9x32x32xbf16, #tpu.memory_space<vmem>>, vector<1x32x32xbf16>
    %206 = vector.shape_cast %205 : vector<1x32x32xbf16> to vector<32x32xbf16>
    %cst_192 = arith.constant dense<0.000000e+00> : vector<32x32xf32>
    %207 = tpu.matmul %206, %204, %cst_192 {dimension_numbers = #tpu.dot_dimension_numbers<[1], [0], [0], [1], [0, 0, 1, 1], [], []>} : vector<32x32xbf16>, vector<32x32xbf16>, vector<32x32xf32> -> vector<32x32xf32>
    %208 = arith.addf %200, %207 : vector<32x32xf32>
    %c6_193 = arith.constant 6 : index
    %c0_194 = arith.constant 0 : index
    %c0_195 = arith.constant 0 : index
    %209 = vector.load %arg3[%c6_193, %c0_194, %c0_195] : memref<9x32x32xbf16, #tpu.memory_space<vmem>>, vector<1x32x32xbf16>
    %210 = vector.shape_cast %209 : vector<1x32x32xbf16> to vector<32x32xbf16>
    %cst_196 = arith.constant dense<0.000000e+00> : vector<32x32xf32>
    %211 = tpu.matmul %158, %210, %cst_196 {dimension_numbers = #tpu.dot_dimension_numbers<[1], [0], [0], [1], [0, 0, 1, 1], [], []>} : vector<32x32xbf16>, vector<32x32xbf16>, vector<32x32xf32> -> vector<32x32xf32>
    %212 = arith.truncf %211 : vector<32x32xf32> to vector<32x32xbf16>
    %c6_197 = arith.constant 6 : index
    %c0_198 = arith.constant 0 : index
    %c0_199 = arith.constant 0 : index
    %213 = vector.load %arg8[%c6_197, %c0_198, %c0_199] : memref<9x32x32xbf16, #tpu.memory_space<vmem>>, vector<1x32x32xbf16>
    %214 = vector.shape_cast %213 : vector<1x32x32xbf16> to vector<32x32xbf16>
    %cst_200 = arith.constant dense<0.000000e+00> : vector<32x32xf32>
    %215 = tpu.matmul %214, %212, %cst_200 {dimension_numbers = #tpu.dot_dimension_numbers<[1], [0], [0], [1], [0, 0, 1, 1], [], []>} : vector<32x32xbf16>, vector<32x32xbf16>, vector<32x32xf32> -> vector<32x32xf32>
    %216 = arith.addf %208, %215 : vector<32x32xf32>
    %c7_201 = arith.constant 7 : index
    %c0_202 = arith.constant 0 : index
    %c0_203 = arith.constant 0 : index
    %217 = vector.load %arg3[%c7_201, %c0_202, %c0_203] : memref<9x32x32xbf16, #tpu.memory_space<vmem>>, vector<1x32x32xbf16>
    %218 = vector.shape_cast %217 : vector<1x32x32xbf16> to vector<32x32xbf16>
    %cst_204 = arith.constant dense<0.000000e+00> : vector<32x32xf32>
    %219 = tpu.matmul %158, %218, %cst_204 {dimension_numbers = #tpu.dot_dimension_numbers<[1], [0], [0], [1], [0, 0, 1, 1], [], []>} : vector<32x32xbf16>, vector<32x32xbf16>, vector<32x32xf32> -> vector<32x32xf32>
    %220 = arith.truncf %219 : vector<32x32xf32> to vector<32x32xbf16>
    %c7_205 = arith.constant 7 : index
    %c0_206 = arith.constant 0 : index
    %c0_207 = arith.constant 0 : index
    %221 = vector.load %arg8[%c7_205, %c0_206, %c0_207] : memref<9x32x32xbf16, #tpu.memory_space<vmem>>, vector<1x32x32xbf16>
    %222 = vector.shape_cast %221 : vector<1x32x32xbf16> to vector<32x32xbf16>
    %cst_208 = arith.constant dense<0.000000e+00> : vector<32x32xf32>
    %223 = tpu.matmul %222, %220, %cst_208 {dimension_numbers = #tpu.dot_dimension_numbers<[1], [0], [0], [1], [0, 0, 1, 1], [], []>} : vector<32x32xbf16>, vector<32x32xbf16>, vector<32x32xf32> -> vector<32x32xf32>
    %224 = arith.addf %216, %223 : vector<32x32xf32>
    %c8_209 = arith.constant 8 : index
    %c0_210 = arith.constant 0 : index
    %c0_211 = arith.constant 0 : index
    %225 = vector.load %arg3[%c8_209, %c0_210, %c0_211] : memref<9x32x32xbf16, #tpu.memory_space<vmem>>, vector<1x32x32xbf16>
    %226 = vector.shape_cast %225 : vector<1x32x32xbf16> to vector<32x32xbf16>
    %cst_212 = arith.constant dense<0.000000e+00> : vector<32x32xf32>
    %227 = tpu.matmul %158, %226, %cst_212 {dimension_numbers = #tpu.dot_dimension_numbers<[1], [0], [0], [1], [0, 0, 1, 1], [], []>} : vector<32x32xbf16>, vector<32x32xbf16>, vector<32x32xf32> -> vector<32x32xf32>
    %228 = arith.truncf %227 : vector<32x32xf32> to vector<32x32xbf16>
    %c8_213 = arith.constant 8 : index
    %c0_214 = arith.constant 0 : index
    %c0_215 = arith.constant 0 : index
    %229 = vector.load %arg8[%c8_213, %c0_214, %c0_215] : memref<9x32x32xbf16, #tpu.memory_space<vmem>>, vector<1x32x32xbf16>
    %230 = vector.shape_cast %229 : vector<1x32x32xbf16> to vector<32x32xbf16>
    %cst_216 = arith.constant dense<0.000000e+00> : vector<32x32xf32>
    %231 = tpu.matmul %230, %228, %cst_216 {dimension_numbers = #tpu.dot_dimension_numbers<[1], [0], [0], [1], [0, 0, 1, 1], [], []>} : vector<32x32xbf16>, vector<32x32xbf16>, vector<32x32xf32> -> vector<32x32xf32>
    %232 = arith.addf %224, %231 : vector<32x32xf32>
    %c0_217 = arith.constant 0 : index
    %c0_218 = arith.constant 0 : index
    %233 = vector.load %arg9[%c0_217, %c0_218] : memref<32x1xf32, #tpu.memory_space<vmem>>, vector<32x1xf32>
    %234 = vector.broadcast %233 : vector<32x1xf32> to vector<32x32xf32>
    %235 = arith.addf %232, %234 : vector<32x32xf32>
    %cst_219 = arith.constant 0.000000e+00 : f32
    %236 = vector.broadcast %cst_219 : f32 to vector<32x32xf32>
    %237 = arith.maximumf %235, %236 : vector<32x32xf32>
    %238 = arith.addf %237, %159 : vector<32x32xf32>
    %239 = arith.truncf %238 : vector<32x32xf32> to vector<32x32xbf16>
    %cst_220 = arith.constant 0.000000e+00 : f32
    %240 = vector.broadcast %cst_220 : f32 to vector<32x32xf32>
    %c0_221 = arith.constant 0 : index
    %c0_222 = arith.constant 0 : index
    %c0_223 = arith.constant 0 : index
    %241 = vector.load %arg3[%c0_221, %c0_222, %c0_223] : memref<9x32x32xbf16, #tpu.memory_space<vmem>>, vector<1x32x32xbf16>
    %242 = vector.shape_cast %241 : vector<1x32x32xbf16> to vector<32x32xbf16>
    %cst_224 = arith.constant dense<0.000000e+00> : vector<32x32xf32>
    %243 = tpu.matmul %239, %242, %cst_224 {dimension_numbers = #tpu.dot_dimension_numbers<[1], [0], [0], [1], [0, 0, 1, 1], [], []>} : vector<32x32xbf16>, vector<32x32xbf16>, vector<32x32xf32> -> vector<32x32xf32>
    %244 = arith.truncf %243 : vector<32x32xf32> to vector<32x32xbf16>
    %c0_225 = arith.constant 0 : index
    %c0_226 = arith.constant 0 : index
    %c0_227 = arith.constant 0 : index
    %245 = vector.load %arg10[%c0_225, %c0_226, %c0_227] : memref<9x32x32xbf16, #tpu.memory_space<vmem>>, vector<1x32x32xbf16>
    %246 = vector.shape_cast %245 : vector<1x32x32xbf16> to vector<32x32xbf16>
    %cst_228 = arith.constant dense<0.000000e+00> : vector<32x32xf32>
    %247 = tpu.matmul %246, %244, %cst_228 {dimension_numbers = #tpu.dot_dimension_numbers<[1], [0], [0], [1], [0, 0, 1, 1], [], []>} : vector<32x32xbf16>, vector<32x32xbf16>, vector<32x32xf32> -> vector<32x32xf32>
    %248 = arith.addf %240, %247 : vector<32x32xf32>
    %c1_229 = arith.constant 1 : index
    %c0_230 = arith.constant 0 : index
    %c0_231 = arith.constant 0 : index
    %249 = vector.load %arg3[%c1_229, %c0_230, %c0_231] : memref<9x32x32xbf16, #tpu.memory_space<vmem>>, vector<1x32x32xbf16>
    %250 = vector.shape_cast %249 : vector<1x32x32xbf16> to vector<32x32xbf16>
    %cst_232 = arith.constant dense<0.000000e+00> : vector<32x32xf32>
    %251 = tpu.matmul %239, %250, %cst_232 {dimension_numbers = #tpu.dot_dimension_numbers<[1], [0], [0], [1], [0, 0, 1, 1], [], []>} : vector<32x32xbf16>, vector<32x32xbf16>, vector<32x32xf32> -> vector<32x32xf32>
    %252 = arith.truncf %251 : vector<32x32xf32> to vector<32x32xbf16>
    %c1_233 = arith.constant 1 : index
    %c0_234 = arith.constant 0 : index
    %c0_235 = arith.constant 0 : index
    %253 = vector.load %arg10[%c1_233, %c0_234, %c0_235] : memref<9x32x32xbf16, #tpu.memory_space<vmem>>, vector<1x32x32xbf16>
    %254 = vector.shape_cast %253 : vector<1x32x32xbf16> to vector<32x32xbf16>
    %cst_236 = arith.constant dense<0.000000e+00> : vector<32x32xf32>
    %255 = tpu.matmul %254, %252, %cst_236 {dimension_numbers = #tpu.dot_dimension_numbers<[1], [0], [0], [1], [0, 0, 1, 1], [], []>} : vector<32x32xbf16>, vector<32x32xbf16>, vector<32x32xf32> -> vector<32x32xf32>
    %256 = arith.addf %248, %255 : vector<32x32xf32>
    %c2_237 = arith.constant 2 : index
    %c0_238 = arith.constant 0 : index
    %c0_239 = arith.constant 0 : index
    %257 = vector.load %arg3[%c2_237, %c0_238, %c0_239] : memref<9x32x32xbf16, #tpu.memory_space<vmem>>, vector<1x32x32xbf16>
    %258 = vector.shape_cast %257 : vector<1x32x32xbf16> to vector<32x32xbf16>
    %cst_240 = arith.constant dense<0.000000e+00> : vector<32x32xf32>
    %259 = tpu.matmul %239, %258, %cst_240 {dimension_numbers = #tpu.dot_dimension_numbers<[1], [0], [0], [1], [0, 0, 1, 1], [], []>} : vector<32x32xbf16>, vector<32x32xbf16>, vector<32x32xf32> -> vector<32x32xf32>
    %260 = arith.truncf %259 : vector<32x32xf32> to vector<32x32xbf16>
    %c2_241 = arith.constant 2 : index
    %c0_242 = arith.constant 0 : index
    %c0_243 = arith.constant 0 : index
    %261 = vector.load %arg10[%c2_241, %c0_242, %c0_243] : memref<9x32x32xbf16, #tpu.memory_space<vmem>>, vector<1x32x32xbf16>
    %262 = vector.shape_cast %261 : vector<1x32x32xbf16> to vector<32x32xbf16>
    %cst_244 = arith.constant dense<0.000000e+00> : vector<32x32xf32>
    %263 = tpu.matmul %262, %260, %cst_244 {dimension_numbers = #tpu.dot_dimension_numbers<[1], [0], [0], [1], [0, 0, 1, 1], [], []>} : vector<32x32xbf16>, vector<32x32xbf16>, vector<32x32xf32> -> vector<32x32xf32>
    %264 = arith.addf %256, %263 : vector<32x32xf32>
    %c3_245 = arith.constant 3 : index
    %c0_246 = arith.constant 0 : index
    %c0_247 = arith.constant 0 : index
    %265 = vector.load %arg3[%c3_245, %c0_246, %c0_247] : memref<9x32x32xbf16, #tpu.memory_space<vmem>>, vector<1x32x32xbf16>
    %266 = vector.shape_cast %265 : vector<1x32x32xbf16> to vector<32x32xbf16>
    %cst_248 = arith.constant dense<0.000000e+00> : vector<32x32xf32>
    %267 = tpu.matmul %239, %266, %cst_248 {dimension_numbers = #tpu.dot_dimension_numbers<[1], [0], [0], [1], [0, 0, 1, 1], [], []>} : vector<32x32xbf16>, vector<32x32xbf16>, vector<32x32xf32> -> vector<32x32xf32>
    %268 = arith.truncf %267 : vector<32x32xf32> to vector<32x32xbf16>
    %c3_249 = arith.constant 3 : index
    %c0_250 = arith.constant 0 : index
    %c0_251 = arith.constant 0 : index
    %269 = vector.load %arg10[%c3_249, %c0_250, %c0_251] : memref<9x32x32xbf16, #tpu.memory_space<vmem>>, vector<1x32x32xbf16>
    %270 = vector.shape_cast %269 : vector<1x32x32xbf16> to vector<32x32xbf16>
    %cst_252 = arith.constant dense<0.000000e+00> : vector<32x32xf32>
    %271 = tpu.matmul %270, %268, %cst_252 {dimension_numbers = #tpu.dot_dimension_numbers<[1], [0], [0], [1], [0, 0, 1, 1], [], []>} : vector<32x32xbf16>, vector<32x32xbf16>, vector<32x32xf32> -> vector<32x32xf32>
    %272 = arith.addf %264, %271 : vector<32x32xf32>
    %c4_253 = arith.constant 4 : index
    %c0_254 = arith.constant 0 : index
    %c0_255 = arith.constant 0 : index
    %273 = vector.load %arg3[%c4_253, %c0_254, %c0_255] : memref<9x32x32xbf16, #tpu.memory_space<vmem>>, vector<1x32x32xbf16>
    %274 = vector.shape_cast %273 : vector<1x32x32xbf16> to vector<32x32xbf16>
    %cst_256 = arith.constant dense<0.000000e+00> : vector<32x32xf32>
    %275 = tpu.matmul %239, %274, %cst_256 {dimension_numbers = #tpu.dot_dimension_numbers<[1], [0], [0], [1], [0, 0, 1, 1], [], []>} : vector<32x32xbf16>, vector<32x32xbf16>, vector<32x32xf32> -> vector<32x32xf32>
    %276 = arith.truncf %275 : vector<32x32xf32> to vector<32x32xbf16>
    %c4_257 = arith.constant 4 : index
    %c0_258 = arith.constant 0 : index
    %c0_259 = arith.constant 0 : index
    %277 = vector.load %arg10[%c4_257, %c0_258, %c0_259] : memref<9x32x32xbf16, #tpu.memory_space<vmem>>, vector<1x32x32xbf16>
    %278 = vector.shape_cast %277 : vector<1x32x32xbf16> to vector<32x32xbf16>
    %cst_260 = arith.constant dense<0.000000e+00> : vector<32x32xf32>
    %279 = tpu.matmul %278, %276, %cst_260 {dimension_numbers = #tpu.dot_dimension_numbers<[1], [0], [0], [1], [0, 0, 1, 1], [], []>} : vector<32x32xbf16>, vector<32x32xbf16>, vector<32x32xf32> -> vector<32x32xf32>
    %280 = arith.addf %272, %279 : vector<32x32xf32>
    %c5_261 = arith.constant 5 : index
    %c0_262 = arith.constant 0 : index
    %c0_263 = arith.constant 0 : index
    %281 = vector.load %arg3[%c5_261, %c0_262, %c0_263] : memref<9x32x32xbf16, #tpu.memory_space<vmem>>, vector<1x32x32xbf16>
    %282 = vector.shape_cast %281 : vector<1x32x32xbf16> to vector<32x32xbf16>
    %cst_264 = arith.constant dense<0.000000e+00> : vector<32x32xf32>
    %283 = tpu.matmul %239, %282, %cst_264 {dimension_numbers = #tpu.dot_dimension_numbers<[1], [0], [0], [1], [0, 0, 1, 1], [], []>} : vector<32x32xbf16>, vector<32x32xbf16>, vector<32x32xf32> -> vector<32x32xf32>
    %284 = arith.truncf %283 : vector<32x32xf32> to vector<32x32xbf16>
    %c5_265 = arith.constant 5 : index
    %c0_266 = arith.constant 0 : index
    %c0_267 = arith.constant 0 : index
    %285 = vector.load %arg10[%c5_265, %c0_266, %c0_267] : memref<9x32x32xbf16, #tpu.memory_space<vmem>>, vector<1x32x32xbf16>
    %286 = vector.shape_cast %285 : vector<1x32x32xbf16> to vector<32x32xbf16>
    %cst_268 = arith.constant dense<0.000000e+00> : vector<32x32xf32>
    %287 = tpu.matmul %286, %284, %cst_268 {dimension_numbers = #tpu.dot_dimension_numbers<[1], [0], [0], [1], [0, 0, 1, 1], [], []>} : vector<32x32xbf16>, vector<32x32xbf16>, vector<32x32xf32> -> vector<32x32xf32>
    %288 = arith.addf %280, %287 : vector<32x32xf32>
    %c6_269 = arith.constant 6 : index
    %c0_270 = arith.constant 0 : index
    %c0_271 = arith.constant 0 : index
    %289 = vector.load %arg3[%c6_269, %c0_270, %c0_271] : memref<9x32x32xbf16, #tpu.memory_space<vmem>>, vector<1x32x32xbf16>
    %290 = vector.shape_cast %289 : vector<1x32x32xbf16> to vector<32x32xbf16>
    %cst_272 = arith.constant dense<0.000000e+00> : vector<32x32xf32>
    %291 = tpu.matmul %239, %290, %cst_272 {dimension_numbers = #tpu.dot_dimension_numbers<[1], [0], [0], [1], [0, 0, 1, 1], [], []>} : vector<32x32xbf16>, vector<32x32xbf16>, vector<32x32xf32> -> vector<32x32xf32>
    %292 = arith.truncf %291 : vector<32x32xf32> to vector<32x32xbf16>
    %c6_273 = arith.constant 6 : index
    %c0_274 = arith.constant 0 : index
    %c0_275 = arith.constant 0 : index
    %293 = vector.load %arg10[%c6_273, %c0_274, %c0_275] : memref<9x32x32xbf16, #tpu.memory_space<vmem>>, vector<1x32x32xbf16>
    %294 = vector.shape_cast %293 : vector<1x32x32xbf16> to vector<32x32xbf16>
    %cst_276 = arith.constant dense<0.000000e+00> : vector<32x32xf32>
    %295 = tpu.matmul %294, %292, %cst_276 {dimension_numbers = #tpu.dot_dimension_numbers<[1], [0], [0], [1], [0, 0, 1, 1], [], []>} : vector<32x32xbf16>, vector<32x32xbf16>, vector<32x32xf32> -> vector<32x32xf32>
    %296 = arith.addf %288, %295 : vector<32x32xf32>
    %c7_277 = arith.constant 7 : index
    %c0_278 = arith.constant 0 : index
    %c0_279 = arith.constant 0 : index
    %297 = vector.load %arg3[%c7_277, %c0_278, %c0_279] : memref<9x32x32xbf16, #tpu.memory_space<vmem>>, vector<1x32x32xbf16>
    %298 = vector.shape_cast %297 : vector<1x32x32xbf16> to vector<32x32xbf16>
    %cst_280 = arith.constant dense<0.000000e+00> : vector<32x32xf32>
    %299 = tpu.matmul %239, %298, %cst_280 {dimension_numbers = #tpu.dot_dimension_numbers<[1], [0], [0], [1], [0, 0, 1, 1], [], []>} : vector<32x32xbf16>, vector<32x32xbf16>, vector<32x32xf32> -> vector<32x32xf32>
    %300 = arith.truncf %299 : vector<32x32xf32> to vector<32x32xbf16>
    %c7_281 = arith.constant 7 : index
    %c0_282 = arith.constant 0 : index
    %c0_283 = arith.constant 0 : index
    %301 = vector.load %arg10[%c7_281, %c0_282, %c0_283] : memref<9x32x32xbf16, #tpu.memory_space<vmem>>, vector<1x32x32xbf16>
    %302 = vector.shape_cast %301 : vector<1x32x32xbf16> to vector<32x32xbf16>
    %cst_284 = arith.constant dense<0.000000e+00> : vector<32x32xf32>
    %303 = tpu.matmul %302, %300, %cst_284 {dimension_numbers = #tpu.dot_dimension_numbers<[1], [0], [0], [1], [0, 0, 1, 1], [], []>} : vector<32x32xbf16>, vector<32x32xbf16>, vector<32x32xf32> -> vector<32x32xf32>
    %304 = arith.addf %296, %303 : vector<32x32xf32>
    %c8_285 = arith.constant 8 : index
    %c0_286 = arith.constant 0 : index
    %c0_287 = arith.constant 0 : index
    %305 = vector.load %arg3[%c8_285, %c0_286, %c0_287] : memref<9x32x32xbf16, #tpu.memory_space<vmem>>, vector<1x32x32xbf16>
    %306 = vector.shape_cast %305 : vector<1x32x32xbf16> to vector<32x32xbf16>
    %cst_288 = arith.constant dense<0.000000e+00> : vector<32x32xf32>
    %307 = tpu.matmul %239, %306, %cst_288 {dimension_numbers = #tpu.dot_dimension_numbers<[1], [0], [0], [1], [0, 0, 1, 1], [], []>} : vector<32x32xbf16>, vector<32x32xbf16>, vector<32x32xf32> -> vector<32x32xf32>
    %308 = arith.truncf %307 : vector<32x32xf32> to vector<32x32xbf16>
    %c8_289 = arith.constant 8 : index
    %c0_290 = arith.constant 0 : index
    %c0_291 = arith.constant 0 : index
    %309 = vector.load %arg10[%c8_289, %c0_290, %c0_291] : memref<9x32x32xbf16, #tpu.memory_space<vmem>>, vector<1x32x32xbf16>
    %310 = vector.shape_cast %309 : vector<1x32x32xbf16> to vector<32x32xbf16>
    %cst_292 = arith.constant dense<0.000000e+00> : vector<32x32xf32>
    %311 = tpu.matmul %310, %308, %cst_292 {dimension_numbers = #tpu.dot_dimension_numbers<[1], [0], [0], [1], [0, 0, 1, 1], [], []>} : vector<32x32xbf16>, vector<32x32xbf16>, vector<32x32xf32> -> vector<32x32xf32>
    %312 = arith.addf %304, %311 : vector<32x32xf32>
    %c0_293 = arith.constant 0 : index
    %c0_294 = arith.constant 0 : index
    %313 = vector.load %arg11[%c0_293, %c0_294] : memref<32x1xf32, #tpu.memory_space<vmem>>, vector<32x1xf32>
    %314 = vector.broadcast %313 : vector<32x1xf32> to vector<32x32xf32>
    %315 = arith.addf %312, %314 : vector<32x32xf32>
    %cst_295 = arith.constant 0.000000e+00 : f32
    %316 = vector.broadcast %cst_295 : f32 to vector<32x32xf32>
    %317 = arith.maximumf %315, %316 : vector<32x32xf32>
    %318 = arith.truncf %317 : vector<32x32xf32> to vector<32x32xbf16>
    %319 = arith.extf %239 : vector<32x32xbf16> to vector<32x32xf32>
    %cst_296 = arith.constant 0.000000e+00 : f32
    %320 = vector.broadcast %cst_296 : f32 to vector<32x32xf32>
    %c0_297 = arith.constant 0 : index
    %c0_298 = arith.constant 0 : index
    %c0_299 = arith.constant 0 : index
    %321 = vector.load %arg3[%c0_297, %c0_298, %c0_299] : memref<9x32x32xbf16, #tpu.memory_space<vmem>>, vector<1x32x32xbf16>
    %322 = vector.shape_cast %321 : vector<1x32x32xbf16> to vector<32x32xbf16>
    %cst_300 = arith.constant dense<0.000000e+00> : vector<32x32xf32>
    %323 = tpu.matmul %318, %322, %cst_300 {dimension_numbers = #tpu.dot_dimension_numbers<[1], [0], [0], [1], [0, 0, 1, 1], [], []>} : vector<32x32xbf16>, vector<32x32xbf16>, vector<32x32xf32> -> vector<32x32xf32>
    %324 = arith.truncf %323 : vector<32x32xf32> to vector<32x32xbf16>
    %c0_301 = arith.constant 0 : index
    %c0_302 = arith.constant 0 : index
    %c0_303 = arith.constant 0 : index
    %325 = vector.load %arg12[%c0_301, %c0_302, %c0_303] : memref<9x32x32xbf16, #tpu.memory_space<vmem>>, vector<1x32x32xbf16>
    %326 = vector.shape_cast %325 : vector<1x32x32xbf16> to vector<32x32xbf16>
    %cst_304 = arith.constant dense<0.000000e+00> : vector<32x32xf32>
    %327 = tpu.matmul %326, %324, %cst_304 {dimension_numbers = #tpu.dot_dimension_numbers<[1], [0], [0], [1], [0, 0, 1, 1], [], []>} : vector<32x32xbf16>, vector<32x32xbf16>, vector<32x32xf32> -> vector<32x32xf32>
    %328 = arith.addf %320, %327 : vector<32x32xf32>
    %c1_305 = arith.constant 1 : index
    %c0_306 = arith.constant 0 : index
    %c0_307 = arith.constant 0 : index
    %329 = vector.load %arg3[%c1_305, %c0_306, %c0_307] : memref<9x32x32xbf16, #tpu.memory_space<vmem>>, vector<1x32x32xbf16>
    %330 = vector.shape_cast %329 : vector<1x32x32xbf16> to vector<32x32xbf16>
    %cst_308 = arith.constant dense<0.000000e+00> : vector<32x32xf32>
    %331 = tpu.matmul %318, %330, %cst_308 {dimension_numbers = #tpu.dot_dimension_numbers<[1], [0], [0], [1], [0, 0, 1, 1], [], []>} : vector<32x32xbf16>, vector<32x32xbf16>, vector<32x32xf32> -> vector<32x32xf32>
    %332 = arith.truncf %331 : vector<32x32xf32> to vector<32x32xbf16>
    %c1_309 = arith.constant 1 : index
    %c0_310 = arith.constant 0 : index
    %c0_311 = arith.constant 0 : index
    %333 = vector.load %arg12[%c1_309, %c0_310, %c0_311] : memref<9x32x32xbf16, #tpu.memory_space<vmem>>, vector<1x32x32xbf16>
    %334 = vector.shape_cast %333 : vector<1x32x32xbf16> to vector<32x32xbf16>
    %cst_312 = arith.constant dense<0.000000e+00> : vector<32x32xf32>
    %335 = tpu.matmul %334, %332, %cst_312 {dimension_numbers = #tpu.dot_dimension_numbers<[1], [0], [0], [1], [0, 0, 1, 1], [], []>} : vector<32x32xbf16>, vector<32x32xbf16>, vector<32x32xf32> -> vector<32x32xf32>
    %336 = arith.addf %328, %335 : vector<32x32xf32>
    %c2_313 = arith.constant 2 : index
    %c0_314 = arith.constant 0 : index
    %c0_315 = arith.constant 0 : index
    %337 = vector.load %arg3[%c2_313, %c0_314, %c0_315] : memref<9x32x32xbf16, #tpu.memory_space<vmem>>, vector<1x32x32xbf16>
    %338 = vector.shape_cast %337 : vector<1x32x32xbf16> to vector<32x32xbf16>
    %cst_316 = arith.constant dense<0.000000e+00> : vector<32x32xf32>
    %339 = tpu.matmul %318, %338, %cst_316 {dimension_numbers = #tpu.dot_dimension_numbers<[1], [0], [0], [1], [0, 0, 1, 1], [], []>} : vector<32x32xbf16>, vector<32x32xbf16>, vector<32x32xf32> -> vector<32x32xf32>
    %340 = arith.truncf %339 : vector<32x32xf32> to vector<32x32xbf16>
    %c2_317 = arith.constant 2 : index
    %c0_318 = arith.constant 0 : index
    %c0_319 = arith.constant 0 : index
    %341 = vector.load %arg12[%c2_317, %c0_318, %c0_319] : memref<9x32x32xbf16, #tpu.memory_space<vmem>>, vector<1x32x32xbf16>
    %342 = vector.shape_cast %341 : vector<1x32x32xbf16> to vector<32x32xbf16>
    %cst_320 = arith.constant dense<0.000000e+00> : vector<32x32xf32>
    %343 = tpu.matmul %342, %340, %cst_320 {dimension_numbers = #tpu.dot_dimension_numbers<[1], [0], [0], [1], [0, 0, 1, 1], [], []>} : vector<32x32xbf16>, vector<32x32xbf16>, vector<32x32xf32> -> vector<32x32xf32>
    %344 = arith.addf %336, %343 : vector<32x32xf32>
    %c3_321 = arith.constant 3 : index
    %c0_322 = arith.constant 0 : index
    %c0_323 = arith.constant 0 : index
    %345 = vector.load %arg3[%c3_321, %c0_322, %c0_323] : memref<9x32x32xbf16, #tpu.memory_space<vmem>>, vector<1x32x32xbf16>
    %346 = vector.shape_cast %345 : vector<1x32x32xbf16> to vector<32x32xbf16>
    %cst_324 = arith.constant dense<0.000000e+00> : vector<32x32xf32>
    %347 = tpu.matmul %318, %346, %cst_324 {dimension_numbers = #tpu.dot_dimension_numbers<[1], [0], [0], [1], [0, 0, 1, 1], [], []>} : vector<32x32xbf16>, vector<32x32xbf16>, vector<32x32xf32> -> vector<32x32xf32>
    %348 = arith.truncf %347 : vector<32x32xf32> to vector<32x32xbf16>
    %c3_325 = arith.constant 3 : index
    %c0_326 = arith.constant 0 : index
    %c0_327 = arith.constant 0 : index
    %349 = vector.load %arg12[%c3_325, %c0_326, %c0_327] : memref<9x32x32xbf16, #tpu.memory_space<vmem>>, vector<1x32x32xbf16>
    %350 = vector.shape_cast %349 : vector<1x32x32xbf16> to vector<32x32xbf16>
    %cst_328 = arith.constant dense<0.000000e+00> : vector<32x32xf32>
    %351 = tpu.matmul %350, %348, %cst_328 {dimension_numbers = #tpu.dot_dimension_numbers<[1], [0], [0], [1], [0, 0, 1, 1], [], []>} : vector<32x32xbf16>, vector<32x32xbf16>, vector<32x32xf32> -> vector<32x32xf32>
    %352 = arith.addf %344, %351 : vector<32x32xf32>
    %c4_329 = arith.constant 4 : index
    %c0_330 = arith.constant 0 : index
    %c0_331 = arith.constant 0 : index
    %353 = vector.load %arg3[%c4_329, %c0_330, %c0_331] : memref<9x32x32xbf16, #tpu.memory_space<vmem>>, vector<1x32x32xbf16>
    %354 = vector.shape_cast %353 : vector<1x32x32xbf16> to vector<32x32xbf16>
    %cst_332 = arith.constant dense<0.000000e+00> : vector<32x32xf32>
    %355 = tpu.matmul %318, %354, %cst_332 {dimension_numbers = #tpu.dot_dimension_numbers<[1], [0], [0], [1], [0, 0, 1, 1], [], []>} : vector<32x32xbf16>, vector<32x32xbf16>, vector<32x32xf32> -> vector<32x32xf32>
    %356 = arith.truncf %355 : vector<32x32xf32> to vector<32x32xbf16>
    %c4_333 = arith.constant 4 : index
    %c0_334 = arith.constant 0 : index
    %c0_335 = arith.constant 0 : index
    %357 = vector.load %arg12[%c4_333, %c0_334, %c0_335] : memref<9x32x32xbf16, #tpu.memory_space<vmem>>, vector<1x32x32xbf16>
    %358 = vector.shape_cast %357 : vector<1x32x32xbf16> to vector<32x32xbf16>
    %cst_336 = arith.constant dense<0.000000e+00> : vector<32x32xf32>
    %359 = tpu.matmul %358, %356, %cst_336 {dimension_numbers = #tpu.dot_dimension_numbers<[1], [0], [0], [1], [0, 0, 1, 1], [], []>} : vector<32x32xbf16>, vector<32x32xbf16>, vector<32x32xf32> -> vector<32x32xf32>
    %360 = arith.addf %352, %359 : vector<32x32xf32>
    %c5_337 = arith.constant 5 : index
    %c0_338 = arith.constant 0 : index
    %c0_339 = arith.constant 0 : index
    %361 = vector.load %arg3[%c5_337, %c0_338, %c0_339] : memref<9x32x32xbf16, #tpu.memory_space<vmem>>, vector<1x32x32xbf16>
    %362 = vector.shape_cast %361 : vector<1x32x32xbf16> to vector<32x32xbf16>
    %cst_340 = arith.constant dense<0.000000e+00> : vector<32x32xf32>
    %363 = tpu.matmul %318, %362, %cst_340 {dimension_numbers = #tpu.dot_dimension_numbers<[1], [0], [0], [1], [0, 0, 1, 1], [], []>} : vector<32x32xbf16>, vector<32x32xbf16>, vector<32x32xf32> -> vector<32x32xf32>
    %364 = arith.truncf %363 : vector<32x32xf32> to vector<32x32xbf16>
    %c5_341 = arith.constant 5 : index
    %c0_342 = arith.constant 0 : index
    %c0_343 = arith.constant 0 : index
    %365 = vector.load %arg12[%c5_341, %c0_342, %c0_343] : memref<9x32x32xbf16, #tpu.memory_space<vmem>>, vector<1x32x32xbf16>
    %366 = vector.shape_cast %365 : vector<1x32x32xbf16> to vector<32x32xbf16>
    %cst_344 = arith.constant dense<0.000000e+00> : vector<32x32xf32>
    %367 = tpu.matmul %366, %364, %cst_344 {dimension_numbers = #tpu.dot_dimension_numbers<[1], [0], [0], [1], [0, 0, 1, 1], [], []>} : vector<32x32xbf16>, vector<32x32xbf16>, vector<32x32xf32> -> vector<32x32xf32>
    %368 = arith.addf %360, %367 : vector<32x32xf32>
    %c6_345 = arith.constant 6 : index
    %c0_346 = arith.constant 0 : index
    %c0_347 = arith.constant 0 : index
    %369 = vector.load %arg3[%c6_345, %c0_346, %c0_347] : memref<9x32x32xbf16, #tpu.memory_space<vmem>>, vector<1x32x32xbf16>
    %370 = vector.shape_cast %369 : vector<1x32x32xbf16> to vector<32x32xbf16>
    %cst_348 = arith.constant dense<0.000000e+00> : vector<32x32xf32>
    %371 = tpu.matmul %318, %370, %cst_348 {dimension_numbers = #tpu.dot_dimension_numbers<[1], [0], [0], [1], [0, 0, 1, 1], [], []>} : vector<32x32xbf16>, vector<32x32xbf16>, vector<32x32xf32> -> vector<32x32xf32>
    %372 = arith.truncf %371 : vector<32x32xf32> to vector<32x32xbf16>
    %c6_349 = arith.constant 6 : index
    %c0_350 = arith.constant 0 : index
    %c0_351 = arith.constant 0 : index
    %373 = vector.load %arg12[%c6_349, %c0_350, %c0_351] : memref<9x32x32xbf16, #tpu.memory_space<vmem>>, vector<1x32x32xbf16>
    %374 = vector.shape_cast %373 : vector<1x32x32xbf16> to vector<32x32xbf16>
    %cst_352 = arith.constant dense<0.000000e+00> : vector<32x32xf32>
    %375 = tpu.matmul %374, %372, %cst_352 {dimension_numbers = #tpu.dot_dimension_numbers<[1], [0], [0], [1], [0, 0, 1, 1], [], []>} : vector<32x32xbf16>, vector<32x32xbf16>, vector<32x32xf32> -> vector<32x32xf32>
    %376 = arith.addf %368, %375 : vector<32x32xf32>
    %c7_353 = arith.constant 7 : index
    %c0_354 = arith.constant 0 : index
    %c0_355 = arith.constant 0 : index
    %377 = vector.load %arg3[%c7_353, %c0_354, %c0_355] : memref<9x32x32xbf16, #tpu.memory_space<vmem>>, vector<1x32x32xbf16>
    %378 = vector.shape_cast %377 : vector<1x32x32xbf16> to vector<32x32xbf16>
    %cst_356 = arith.constant dense<0.000000e+00> : vector<32x32xf32>
    %379 = tpu.matmul %318, %378, %cst_356 {dimension_numbers = #tpu.dot_dimension_numbers<[1], [0], [0], [1], [0, 0, 1, 1], [], []>} : vector<32x32xbf16>, vector<32x32xbf16>, vector<32x32xf32> -> vector<32x32xf32>
    %380 = arith.truncf %379 : vector<32x32xf32> to vector<32x32xbf16>
    %c7_357 = arith.constant 7 : index
    %c0_358 = arith.constant 0 : index
    %c0_359 = arith.constant 0 : index
    %381 = vector.load %arg12[%c7_357, %c0_358, %c0_359] : memref<9x32x32xbf16, #tpu.memory_space<vmem>>, vector<1x32x32xbf16>
    %382 = vector.shape_cast %381 : vector<1x32x32xbf16> to vector<32x32xbf16>
    %cst_360 = arith.constant dense<0.000000e+00> : vector<32x32xf32>
    %383 = tpu.matmul %382, %380, %cst_360 {dimension_numbers = #tpu.dot_dimension_numbers<[1], [0], [0], [1], [0, 0, 1, 1], [], []>} : vector<32x32xbf16>, vector<32x32xbf16>, vector<32x32xf32> -> vector<32x32xf32>
    %384 = arith.addf %376, %383 : vector<32x32xf32>
    %c8_361 = arith.constant 8 : index
    %c0_362 = arith.constant 0 : index
    %c0_363 = arith.constant 0 : index
    %385 = vector.load %arg3[%c8_361, %c0_362, %c0_363] : memref<9x32x32xbf16, #tpu.memory_space<vmem>>, vector<1x32x32xbf16>
    %386 = vector.shape_cast %385 : vector<1x32x32xbf16> to vector<32x32xbf16>
    %cst_364 = arith.constant dense<0.000000e+00> : vector<32x32xf32>
    %387 = tpu.matmul %318, %386, %cst_364 {dimension_numbers = #tpu.dot_dimension_numbers<[1], [0], [0], [1], [0, 0, 1, 1], [], []>} : vector<32x32xbf16>, vector<32x32xbf16>, vector<32x32xf32> -> vector<32x32xf32>
    %388 = arith.truncf %387 : vector<32x32xf32> to vector<32x32xbf16>
    %c8_365 = arith.constant 8 : index
    %c0_366 = arith.constant 0 : index
    %c0_367 = arith.constant 0 : index
    %389 = vector.load %arg12[%c8_365, %c0_366, %c0_367] : memref<9x32x32xbf16, #tpu.memory_space<vmem>>, vector<1x32x32xbf16>
    %390 = vector.shape_cast %389 : vector<1x32x32xbf16> to vector<32x32xbf16>
    %cst_368 = arith.constant dense<0.000000e+00> : vector<32x32xf32>
    %391 = tpu.matmul %390, %388, %cst_368 {dimension_numbers = #tpu.dot_dimension_numbers<[1], [0], [0], [1], [0, 0, 1, 1], [], []>} : vector<32x32xbf16>, vector<32x32xbf16>, vector<32x32xf32> -> vector<32x32xf32>
    %392 = arith.addf %384, %391 : vector<32x32xf32>
    %c0_369 = arith.constant 0 : index
    %c0_370 = arith.constant 0 : index
    %393 = vector.load %arg13[%c0_369, %c0_370] : memref<32x1xf32, #tpu.memory_space<vmem>>, vector<32x1xf32>
    %394 = vector.broadcast %393 : vector<32x1xf32> to vector<32x32xf32>
    %395 = arith.addf %392, %394 : vector<32x32xf32>
    %cst_371 = arith.constant 0.000000e+00 : f32
    %396 = vector.broadcast %cst_371 : f32 to vector<32x32xf32>
    %397 = arith.maximumf %395, %396 : vector<32x32xf32>
    %398 = arith.addf %397, %319 : vector<32x32xf32>
    %399 = arith.truncf %398 : vector<32x32xf32> to vector<32x32xbf16>
    %c0_372 = arith.constant 0 : index
    %c0_373 = arith.constant 0 : index
    %400 = vector.load %arg14[%c0_372, %c0_373] : memref<32x32xbf16, #tpu.memory_space<vmem>>, vector<32x32xbf16>
    tpu.vector_store %arg14[%c0_372, %c0_373], %399 {strides = array<i32>} : memref<32x32xbf16, #tpu.memory_space<vmem>>, vector<32x32xbf16>,
    return
  }
  func.func @transform_0(%arg0: i32) -> (i32, i32) {
    %c0_i32 = arith.constant 0 : i32
    %c0_i32_0 = arith.constant 0 : i32
    %c0_i32_1 = arith.constant 0 : i32
    return %c0_i32, %c0_i32_0 : i32, i32
  }
  func.func @transform_1(%arg0: i32) -> (i32, i32, i32) {
    %c0_i32 = arith.constant 0 : i32
    %c0_i32_0 = arith.constant 0 : i32
    %c0_i32_1 = arith.constant 0 : i32
    %c0_i32_2 = arith.constant 0 : i32
    return %c0_i32, %c0_i32_0, %c0_i32_1 : i32, i32, i32
  }
  func.func @transform_2(%arg0: i32) -> (i32, i32, i32) {
    %c0_i32 = arith.constant 0 : i32
    %c0_i32_0 = arith.constant 0 : i32
    %c0_i32_1 = arith.constant 0 : i32
    %c0_i32_2 = arith.constant 0 : i32
    return %c0_i32, %c0_i32_0, %c0_i32_1 : i32, i32, i32
  }
  func.func @transform_3(%arg0: i32) -> (i32, i32, i32) {
    %c0_i32 = arith.constant 0 : i32
    %c0_i32_0 = arith.constant 0 : i32
    %c0_i32_1 = arith.constant 0 : i32
    %c0_i32_2 = arith.constant 0 : i32
    return %c0_i32, %c0_i32_0, %c0_i32_1 : i32, i32, i32
  }
  func.func @transform_4(%arg0: i32) -> (i32, i32) {
    %c0_i32 = arith.constant 0 : i32
    %c0_i32_0 = arith.constant 0 : i32
    %c0_i32_1 = arith.constant 0 : i32
    return %c0_i32, %c0_i32_0 : i32, i32
  }
  func.func @transform_5(%arg0: i32) -> (i32, i32, i32) {
    %c0_i32 = arith.constant 0 : i32
    %c0_i32_0 = arith.constant 0 : i32
    %c0_i32_1 = arith.constant 0 : i32
    %c0_i32_2 = arith.constant 0 : i32
    return %c0_i32, %c0_i32_0, %c0_i32_1 : i32, i32, i32
  }
  func.func @transform_6(%arg0: i32) -> (i32, i32) {
    %c0_i32 = arith.constant 0 : i32
    %c0_i32_0 = arith.constant 0 : i32
    %c0_i32_1 = arith.constant 0 : i32
    return %c0_i32, %c0_i32_0 : i32, i32
  }
  func.func @transform_7(%arg0: i32) -> (i32, i32, i32) {
    %c0_i32 = arith.constant 0 : i32
    %c0_i32_0 = arith.constant 0 : i32
    %c0_i32_1 = arith.constant 0 : i32
    %c0_i32_2 = arith.constant 0 : i32
    return %c0_i32, %c0_i32_0, %c0_i32_1 : i32, i32, i32
  }
  func.func @transform_8(%arg0: i32) -> (i32, i32) {
    %c0_i32 = arith.constant 0 : i32
    %c0_i32_0 = arith.constant 0 : i32
    %c0_i32_1 = arith.constant 0 : i32
    return %c0_i32, %c0_i32_0 : i32, i32
  }
  func.func @transform_9(%arg0: i32) -> (i32, i32, i32) {
    %c0_i32 = arith.constant 0 : i32
    %c0_i32_0 = arith.constant 0 : i32
    %c0_i32_1 = arith.constant 0 : i32
    %c0_i32_2 = arith.constant 0 : i32
    return %c0_i32, %c0_i32_0, %c0_i32_1 : i32, i32, i32
  }
  func.func @transform_10(%arg0: i32) -> (i32, i32) {
    %c0_i32 = arith.constant 0 : i32
    %c0_i32_0 = arith.constant 0 : i32
    %c0_i32_1 = arith.constant 0 : i32
    return %c0_i32, %c0_i32_0 : i32, i32
  }
  func.func @transform_11(%arg0: i32) -> (i32, i32, i32) {
    %c0_i32 = arith.constant 0 : i32
    %c0_i32_0 = arith.constant 0 : i32
    %c0_i32_1 = arith.constant 0 : i32
    %c0_i32_2 = arith.constant 0 : i32
    return %c0_i32, %c0_i32_0, %c0_i32_1 : i32, i32, i32
  }
  func.func @transform_12(%arg0: i32) -> (i32, i32) {
    %c0_i32 = arith.constant 0 : i32
    %c0_i32_0 = arith.constant 0 : i32
    %c0_i32_1 = arith.constant 0 : i32
    return %c0_i32, %c0_i32_0 : i32, i32
  }
  func.func @transform_13(%arg0: i32) -> (i32, i32) {
    %c0_i32 = arith.constant 0 : i32
    %c0_i32_0 = arith.constant 0 : i32
    %c0_i32_1 = arith.constant 0 : i32
    return %c0_i32, %c0_i32_0 : i32, i32
  }
}

module attributes {stable_mosaic.version = 11 : i64} {
  func.func @_conv_mm_kernel(%arg0: i32, %arg1: memref<128x32xbf16, #tpu.memory_space<vmem>>, %arg2: memref<64x128xbf16, #tpu.memory_space<vmem>>, %arg3: memref<64x1xf32, #tpu.memory_space<vmem>>, %arg4: memref<64x32xbf16, #tpu.memory_space<vmem>>) attributes {dimension_semantics = [#tpu.dimension_semantics<parallel>], iteration_bounds = array<i64: 1>, scalar_prefetch = 0 : i64, scratch_operands = 0 : i64, tpu.core_type = #tpu.core_type<tc>, window_params = [{transform_indices = @transform_0, window_bounds = array<i64: 128, 32>}, {pipeline_mode = #tpu.pipeline_mode<synchronous>, transform_indices = @transform_1, window_bounds = array<i64: 64, 128>}, {pipeline_mode = #tpu.pipeline_mode<synchronous>, transform_indices = @transform_2, window_bounds = array<i64: 64, 1>}, {transform_indices = @transform_3, window_bounds = array<i64: 64, 32>}]} {
    %c0 = arith.constant 0 : index
    %c0_0 = arith.constant 0 : index
    %0 = vector.load %arg2[%c0, %c0_0] : memref<64x128xbf16, #tpu.memory_space<vmem>>, vector<64x128xbf16>
    %c0_1 = arith.constant 0 : index
    %c0_2 = arith.constant 0 : index
    %1 = vector.load %arg1[%c0_1, %c0_2] : memref<128x32xbf16, #tpu.memory_space<vmem>>, vector<128x32xbf16>
    %cst = arith.constant dense<0.000000e+00> : vector<64x32xf32>
    %2 = tpu.matmul %0, %1, %cst {dimension_numbers = #tpu.dot_dimension_numbers<[1], [0], [0], [1], [0, 0, 1, 1], [], []>} : vector<64x128xbf16>, vector<128x32xbf16>, vector<64x32xf32> -> vector<64x32xf32>
    %c0_3 = arith.constant 0 : index
    %c0_4 = arith.constant 0 : index
    %3 = vector.load %arg3[%c0_3, %c0_4] : memref<64x1xf32, #tpu.memory_space<vmem>>, vector<64x1xf32>
    %4 = vector.broadcast %3 : vector<64x1xf32> to vector<64x32xf32>
    %5 = arith.addf %2, %4 : vector<64x32xf32>
    %cst_5 = arith.constant 0.000000e+00 : f32
    %6 = vector.broadcast %cst_5 : f32 to vector<64x32xf32>
    %7 = arith.maximumf %5, %6 : vector<64x32xf32>
    %8 = arith.truncf %7 : vector<64x32xf32> to vector<64x32xbf16>
    %c0_6 = arith.constant 0 : index
    %c0_7 = arith.constant 0 : index
    %9 = vector.load %arg4[%c0_6, %c0_7] : memref<64x32xbf16, #tpu.memory_space<vmem>>, vector<64x32xbf16>
    tpu.vector_store %arg4[%c0_6, %c0_7], %8 {strides = array<i32>} : memref<64x32xbf16, #tpu.memory_space<vmem>>, vector<64x32xbf16>,
    return
  }
  func.func @transform_0(%arg0: i32) -> (i32, i32) {
    %c0_i32 = arith.constant 0 : i32
    %c0_i32_0 = arith.constant 0 : i32
    return %c0_i32, %arg0 : i32, i32
  }
  func.func @transform_1(%arg0: i32) -> (i32, i32) {
    %c0_i32 = arith.constant 0 : i32
    %c0_i32_0 = arith.constant 0 : i32
    %c0_i32_1 = arith.constant 0 : i32
    return %c0_i32, %c0_i32_0 : i32, i32
  }
  func.func @transform_2(%arg0: i32) -> (i32, i32) {
    %c0_i32 = arith.constant 0 : i32
    %c0_i32_0 = arith.constant 0 : i32
    %c0_i32_1 = arith.constant 0 : i32
    return %c0_i32, %c0_i32_0 : i32, i32
  }
  func.func @transform_3(%arg0: i32) -> (i32, i32) {
    %c0_i32 = arith.constant 0 : i32
    %c0_i32_0 = arith.constant 0 : i32
    return %c0_i32, %arg0 : i32, i32
  }
}

module attributes {stable_mosaic.version = 11 : i64} {
  func.func @_conv_mm_kernel(%arg0: i32, %arg1: memref<64x128xbf16, #tpu.memory_space<vmem>>, %arg2: memref<32x64xbf16, #tpu.memory_space<vmem>>, %arg3: memref<32x1xf32, #tpu.memory_space<vmem>>, %arg4: memref<32x128xbf16, #tpu.memory_space<vmem>>) attributes {dimension_semantics = [#tpu.dimension_semantics<parallel>], iteration_bounds = array<i64: 1>, scalar_prefetch = 0 : i64, scratch_operands = 0 : i64, tpu.core_type = #tpu.core_type<tc>, window_params = [{transform_indices = @transform_0, window_bounds = array<i64: 64, 128>}, {pipeline_mode = #tpu.pipeline_mode<synchronous>, transform_indices = @transform_1, window_bounds = array<i64: 32, 64>}, {pipeline_mode = #tpu.pipeline_mode<synchronous>, transform_indices = @transform_2, window_bounds = array<i64: 32, 1>}, {transform_indices = @transform_3, window_bounds = array<i64: 32, 128>}]} {
    %c0 = arith.constant 0 : index
    %c0_0 = arith.constant 0 : index
    %0 = vector.load %arg2[%c0, %c0_0] : memref<32x64xbf16, #tpu.memory_space<vmem>>, vector<32x64xbf16>
    %c0_1 = arith.constant 0 : index
    %c0_2 = arith.constant 0 : index
    %1 = vector.load %arg1[%c0_1, %c0_2] : memref<64x128xbf16, #tpu.memory_space<vmem>>, vector<64x128xbf16>
    %cst = arith.constant dense<0.000000e+00> : vector<32x128xf32>
    %2 = tpu.matmul %0, %1, %cst {dimension_numbers = #tpu.dot_dimension_numbers<[1], [0], [0], [1], [0, 0, 1, 1], [], []>} : vector<32x64xbf16>, vector<64x128xbf16>, vector<32x128xf32> -> vector<32x128xf32>
    %c0_3 = arith.constant 0 : index
    %c0_4 = arith.constant 0 : index
    %3 = vector.load %arg3[%c0_3, %c0_4] : memref<32x1xf32, #tpu.memory_space<vmem>>, vector<32x1xf32>
    %4 = vector.broadcast %3 : vector<32x1xf32> to vector<32x128xf32>
    %5 = arith.addf %2, %4 : vector<32x128xf32>
    %cst_5 = arith.constant 0.000000e+00 : f32
    %6 = vector.broadcast %cst_5 : f32 to vector<32x128xf32>
    %7 = arith.maximumf %5, %6 : vector<32x128xf32>
    %8 = arith.truncf %7 : vector<32x128xf32> to vector<32x128xbf16>
    %c0_6 = arith.constant 0 : index
    %c0_7 = arith.constant 0 : index
    %9 = vector.load %arg4[%c0_6, %c0_7] : memref<32x128xbf16, #tpu.memory_space<vmem>>, vector<32x128xbf16>
    tpu.vector_store %arg4[%c0_6, %c0_7], %8 {strides = array<i32>} : memref<32x128xbf16, #tpu.memory_space<vmem>>, vector<32x128xbf16>,
    return
  }
  func.func @transform_0(%arg0: i32) -> (i32, i32) {
    %c0_i32 = arith.constant 0 : i32
    %c0_i32_0 = arith.constant 0 : i32
    return %c0_i32, %arg0 : i32, i32
  }
  func.func @transform_1(%arg0: i32) -> (i32, i32) {
    %c0_i32 = arith.constant 0 : i32
    %c0_i32_0 = arith.constant 0 : i32
    %c0_i32_1 = arith.constant 0 : i32
    return %c0_i32, %c0_i32_0 : i32, i32
  }
  func.func @transform_2(%arg0: i32) -> (i32, i32) {
    %c0_i32 = arith.constant 0 : i32
    %c0_i32_0 = arith.constant 0 : i32
    %c0_i32_1 = arith.constant 0 : i32
    return %c0_i32, %c0_i32_0 : i32, i32
  }
  func.func @transform_3(%arg0: i32) -> (i32, i32) {
    %c0_i32 = arith.constant 0 : i32
    %c0_i32_0 = arith.constant 0 : i32
    return %c0_i32, %arg0 : i32, i32
  }
}

module attributes {stable_mosaic.version = 11 : i64} {
  func.func @_conv_mm_kernel(%arg0: i32, %arg1: memref<392x512xbf16, #tpu.memory_space<vmem>>, %arg2: memref<3x392xbf16, #tpu.memory_space<vmem>>, %arg3: memref<3x1xf32, #tpu.memory_space<vmem>>, %arg4: memref<3x512xbf16, #tpu.memory_space<vmem>>) attributes {dimension_semantics = [#tpu.dimension_semantics<parallel>], iteration_bounds = array<i64: 1>, scalar_prefetch = 0 : i64, scratch_operands = 0 : i64, tpu.core_type = #tpu.core_type<tc>, window_params = [{transform_indices = @transform_0, window_bounds = array<i64: 392, 512>}, {pipeline_mode = #tpu.pipeline_mode<synchronous>, transform_indices = @transform_1, window_bounds = array<i64: 3, 392>}, {pipeline_mode = #tpu.pipeline_mode<synchronous>, transform_indices = @transform_2, window_bounds = array<i64: 3, 1>}, {transform_indices = @transform_3, window_bounds = array<i64: 3, 512>}]} {
    %c0 = arith.constant 0 : index
    %c0_0 = arith.constant 0 : index
    %0 = vector.load %arg2[%c0, %c0_0] : memref<3x392xbf16, #tpu.memory_space<vmem>>, vector<3x392xbf16>
    %c0_1 = arith.constant 0 : index
    %c0_2 = arith.constant 0 : index
    %1 = vector.load %arg1[%c0_1, %c0_2] : memref<392x512xbf16, #tpu.memory_space<vmem>>, vector<392x512xbf16>
    %cst = arith.constant dense<0.000000e+00> : vector<3x512xf32>
    %2 = tpu.matmul %0, %1, %cst {dimension_numbers = #tpu.dot_dimension_numbers<[1], [0], [0], [1], [0, 0, 1, 1], [], []>} : vector<3x392xbf16>, vector<392x512xbf16>, vector<3x512xf32> -> vector<3x512xf32>
    %c0_3 = arith.constant 0 : index
    %c0_4 = arith.constant 0 : index
    %3 = vector.load %arg3[%c0_3, %c0_4] : memref<3x1xf32, #tpu.memory_space<vmem>>, vector<3x1xf32>
    %4 = vector.broadcast %3 : vector<3x1xf32> to vector<3x512xf32>
    %5 = arith.addf %2, %4 : vector<3x512xf32>
    %6 = math.tanh %5 : vector<3x512xf32>
    %7 = arith.truncf %6 : vector<3x512xf32> to vector<3x512xbf16>
    %c0_5 = arith.constant 0 : index
    %c0_6 = arith.constant 0 : index
    %8 = vector.load %arg4[%c0_5, %c0_6] : memref<3x512xbf16, #tpu.memory_space<vmem>>, vector<3x512xbf16>
    tpu.vector_store %arg4[%c0_5, %c0_6], %7 {strides = array<i32>} : memref<3x512xbf16, #tpu.memory_space<vmem>>, vector<3x512xbf16>,
    return
  }
  func.func @transform_0(%arg0: i32) -> (i32, i32) {
    %c0_i32 = arith.constant 0 : i32
    %c0_i32_0 = arith.constant 0 : i32
    return %c0_i32, %arg0 : i32, i32
  }
  func.func @transform_1(%arg0: i32) -> (i32, i32) {
    %c0_i32 = arith.constant 0 : i32
    %c0_i32_0 = arith.constant 0 : i32
    %c0_i32_1 = arith.constant 0 : i32
    return %c0_i32, %c0_i32_0 : i32, i32
  }
  func.func @transform_2(%arg0: i32) -> (i32, i32) {
    %c0_i32 = arith.constant 0 : i32
    %c0_i32_0 = arith.constant 0 : i32
    %c0_i32_1 = arith.constant 0 : i32
    return %c0_i32, %c0_i32_0 : i32, i32
  }
  func.func @transform_3(%arg0: i32) -> (i32, i32) {
    %c0_i32 = arith.constant 0 : i32
    %c0_i32_0 = arith.constant 0 : i32
    return %c0_i32, %arg0 : i32, i32
  }
}

</mosaic_0001>

<bundles_post_ra>
// kernel: lama_forward.6
= control target key start
LH: loop header
LB: loop body
LE: loop exit
PB: predicated region body
PF: predicated region fallthrough
CT: control target
= control target key end

     0   :  { %v595_v1 = vmov 0   ;;  %vm328_vm0 = vcmask 556032   ;;  %vm332_vm1 = vcmask 1041408   ;;  %s778_s0 = inlined_call_operand.vmem [shape: bf16[196,512], index: 0, kind: input, shape index: {}]   ;;  %s779_s1 = inlined_call_operand.vmem [shape: bf16[8,196], index: 1, kind: input, shape index: {}]   ;;  %s780_s2 = inlined_call_operand.vmem [shape: f32[8,1], index: 2, kind: input, shape index: {}]   ;;  %s781_s3 = inlined_call_operand.vmem [shape: bf16[8,512], index: 3, kind: output, shape index: {}]  }
   0x1   :  { %v517_v0 = vld [vmem:[%s778_s0 + $0x4] ss:$16 sps:$4 sm:$0xff]   ;;  %516 = vset.pattern.permute.xlu0 %v595_v1  ;;  %v519_v2 = vld [vmem:[%s778_s0 + $0xc] ss:$16 sps:$4 sm:$0xff]   ;;  %v521_v3 = vld [vmem:[%s778_s0] ss:$16 sps:$4 sm:$0xff]  }
   0x2   :  { %345 = vmatprep.subr.bf16.mxu0 %v517_v0  ;;  %v522_v4 = vld [vmem:[%s778_s0 + $0x8] ss:$16 sps:$4 sm:$0xff]   ;;  %386 = vmatprep.subr.bf16.mxu1 %v519_v2  ;;  %v523_v5 = vld [vmem:[%s778_s0 + $0x24] ss:$16 sps:$4 sm:$0xff]   ;;  %v525_v6 = vld [vmem:[%s778_s0 + $0x2c] ss:$16 sps:$4 sm:$0xff]  }
   0x3   :  { %346 = vmatpush1.bf16.msra.mxu0 %v521_v3  ;;  %387 = vmatpush1.bf16.msra.mxu1 %v522_v4  ;;  %v527_v7 = vld [vmem:[%s778_s0 + $0x20] ss:$16 sps:$4 sm:$0xff]   ;;  %v528_v8 = vld [vmem:[%s778_s0 + $0x28] ss:$16 sps:$4 sm:$0xff]   ;;  %v529_v9 = vld [vmem:[%s778_s0 + $0x44] ss:$16 sps:$4 sm:$0xff]  }
   0x4   :  { %347 = vmatprep.subr.bf16.mxu0 %v523_v5  ;;  %388 = vmatprep.subr.bf16.mxu1 %v525_v6  ;;  %v531_v10 = vld [vmem:[%s778_s0 + $0x4c] ss:$16 sps:$4 sm:$0xff]   ;;  %v533_v11 = vld [vmem:[%s778_s0 + $0x40] ss:$16 sps:$4 sm:$0xff]   ;;  %v534_v12 = vld [vmem:[%s778_s0 + $0x48] ss:$16 sps:$4 sm:$0xff]  }
   0x5   :  { %v535_v13 = vld [vmem:[%s778_s0 + $0x64] ss:$16 sps:$4 sm:$0xff]   ;;  %v537_v14 = vld [vmem:[%s778_s0 + $0x6c] ss:$16 sps:$4 sm:$0xff]   ;;  %v539_v15 = vld [vmem:[%s778_s0 + $0x60] ss:$16 sps:$4 sm:$0xff]  }
   0x6   :  { %v540_v16 = vld [vmem:[%s778_s0 + $0x68] ss:$16 sps:$4 sm:$0xff]   ;;  %v541_v17 = vld [vmem:[%s778_s0 + $0x84] ss:$16 sps:$4 sm:$0xff]   ;;  %v543_v18 = vld [vmem:[%s778_s0 + $0x8c] ss:$16 sps:$4 sm:$0xff]  }
   0x7   :  { %348 = vmatpush1.bf16.msra.mxu0 %v527_v7  ;;  %389 = vmatpush1.bf16.msra.mxu1 %v528_v8  ;;  %v545_v19 = vld [vmem:[%s778_s0 + $0x80] ss:$16 sps:$4 sm:$0xff]   ;;  %v546_v20 = vld [vmem:[%s778_s0 + $0x88] ss:$16 sps:$4 sm:$0xff]   ;;  %v547_v21 = vld [vmem:[%s778_s0 + $0xa4] ss:$16 sps:$4 sm:$0xff]  }
   0x8   :  { %349 = vmatprep.subr.bf16.mxu0 %v529_v9  ;;  %390 = vmatprep.subr.bf16.mxu1 %v531_v10  ;;  %v549_v22 = vld [vmem:[%s778_s0 + $0xac] ss:$16 sps:$4 sm:$0xff]   ;;  %v551_v23 = vld [vmem:[%s778_s0 + $0xa0] ss:$16 sps:$4 sm:$0xff]   ;;  %v552_v24 = vld [vmem:[%s778_s0 + $0xa8] ss:$16 sps:$4 sm:$0xff]  }
   0x9   :  { %v553_v25 = vld [vmem:[%s778_s0 + $0xc4] ss:$16 sps:$4 sm:$0xff]   ;;  %v555_v26 = vld [vmem:[%s778_s0 + $0xcc] ss:$16 sps:$4 sm:$0xff]   ;;  %v557_v27 = vld [vmem:[%s778_s0 + $0xc0] ss:$16 sps:$4 sm:$0xff]  }
   0xa   :  { %v558_v28 = vld [vmem:[%s778_s0 + $0xc8] ss:$16 sps:$4 sm:$0xff]   ;;  %v559_v29 = vld [vmem:[%s778_s0 + $0xe4] ss:$16 sps:$4 sm:$0xff]   ;;  %v561_v30 = vld [vmem:[%s778_s0 + $0xec] ss:$16 sps:$4 sm:$0xff]  }
   0xb   :  { %350 = vmatpush1.bf16.msra.mxu0 %v533_v11  ;;  %391 = vmatpush1.bf16.msra.mxu1 %v534_v12  ;;  %v563_v31 = vld [vmem:[%s778_s0 + $0xe0] ss:$16 sps:$4 sm:$0xff]   ;;  %v564_v32 = vld [vmem:[%s778_s0 + $0xe8] ss:$16 sps:$4 sm:$0xff]   ;;  %v565_v33 = vld [vmem:[%s778_s0 + $0x104] ss:$16 sps:$4 sm:$0xff]  }
   0xc   :  { %351 = vmatprep.subr.bf16.mxu0 %v535_v13  ;;  %392 = vmatprep.subr.bf16.mxu1 %v537_v14  ;;  %v567_v34 = vld [vmem:[%s778_s0 + $0x10c] ss:$16 sps:$4 sm:$0xff]   ;;  %v569_v35 = vld [vmem:[%s778_s0 + $0x100] ss:$16 sps:$4 sm:$0xff]   ;;  %v570_v36 = vld [vmem:[%s778_s0 + $0x108] ss:$16 sps:$4 sm:$0xff]  }
   0xd   :  { %v15_v37 = vld [vmem:[%s779_s1] sm:$0xff]  ;;  %v573_v39 = vld [vmem:[%s778_s0 + $0x12c] ss:$16 sps:$4 sm:$0xff]   ;;  %v576_v43 = vld [vmem:[%s778_s0 + $0x128] ss:$16 sps:$4 sm:$0xff]  }
   0xe   :  { %v571_v38 = vld [vmem:[%s778_s0 + $0x124] ss:$16 sps:$4 sm:$0xff]   ;;  %v454_v41 = vcombine.high %v15_v37, %v15_v37  ;;  %v575_v42 = vld [vmem:[%s778_s0 + $0x120] ss:$16 sps:$4 sm:$0xff]   ;;  %v579_v45 = vld [vmem:[%s778_s0 + $0x14c] ss:$16 sps:$4 sm:$0xff]   ;;  %v453_v60 = vcombine.low %v15_v37, %v15_v37 }
   0xf   :  { %352 = vmatpush1.bf16.msra.mxu0 %v539_v15  ;;  %393 = vmatpush1.bf16.msra.mxu1 %v540_v16  ;;  %v66_v40 = vld [vmem:[%s780_s2] sm:$0xff]  ;;  %v582_v47 = vld [vmem:[%s778_s0 + $0x148] ss:$16 sps:$4 sm:$0xff]   ;;  %v585_v49 = vld [vmem:[%s778_s0 + $0x16c] ss:$16 sps:$4 sm:$0xff]  }
  0x10   :  { %353 = vmatprep.subr.bf16.mxu0 %v541_v17  ;;  %394 = vmatprep.subr.bf16.mxu1 %v543_v18  ;;  %v577_v44 = vld [vmem:[%s778_s0 + $0x144] ss:$16 sps:$4 sm:$0xff]   ;;  %v581_v46 = vld [vmem:[%s778_s0 + $0x140] ss:$16 sps:$4 sm:$0xff]   ;;  %v65_v51 = vld [vmem:[%s778_s0 + $0x188] sm:$0x33] }
  0x11   :  { %69 = vperm.xlu0 %516, %v66_v40   ;;  %508 = vmatprep.mubr.msk.bf16.mxu0 %vm328_vm0, %v454_v41  ;;  %v583_v48 = vld [vmem:[%s778_s0 + $0x164] ss:$16 sps:$4 sm:$0xff]   ;;  %v587_v52 = vld [vmem:[%s778_s0 + $0x160] ss:$16 sps:$4 sm:$0xff]   ;;  %v588_v53 = vld [vmem:[%s778_s0 + $0x168] ss:$16 sps:$4 sm:$0xff]   ;;  %v506_v55 = vcombine.high %v65_v51, %v65_v51  ;;  %v505_v57 = vcombine.low %v65_v51, %v65_v51 }
  0x12   :  { %510 = vmatprep.mubr.msk.bf16.mxu1 %vm328_vm0, %v454_v41  ;;  %v64_v50 = vld [vmem:[%s778_s0 + $0x180] sm:$0x33] }
  0x13   :  { %354 = vmatpush1.bf16.msra.mxu0 %v545_v19  ;;  %395 = vmatpush1.bf16.msra.mxu1 %v546_v20  ;;  %v504_v54 = vcombine.high %v64_v50, %v64_v50  ;;  %v503_v56 = vcombine.low %v64_v50, %v64_v50  ;;  %v340_v59 = vsel %vm332_vm1, %v505_v57, 0 }
  0x14   :  { %355 = vmatprep.subr.bf16.mxu0 %v547_v21  ;;  %396 = vmatprep.subr.bf16.mxu1 %v549_v22 }
  0x15   :  { %v334_v58 = vsel %vm332_vm1, %v503_v56, 0 }
  0x17   :  { %356 = vmatpush1.bf16.msra.mxu0 %v551_v23  ;;  %397 = vmatpush1.bf16.msra.mxu1 %v552_v24 }
  0x18   :  { %357 = vmatprep.subr.bf16.mxu0 %v553_v25  ;;  %398 = vmatprep.subr.bf16.mxu1 %v555_v26 }
  0x1b   :  { %358 = vmatpush1.bf16.msra.mxu0 %v557_v27  ;;  %399 = vmatpush1.bf16.msra.mxu1 %v558_v28 }
  0x1c   :  { %359 = vmatprep.subr.bf16.mxu0 %v559_v29  ;;  %400 = vmatprep.subr.bf16.mxu1 %v561_v30 }
  0x1f   :  { %360 = vmatpush1.bf16.msra.mxu0 %v563_v31  ;;  %401 = vmatpush1.bf16.msra.mxu1 %v564_v32 }
  0x20   :  { %361 = vmatprep.subr.bf16.mxu0 %v565_v33  ;;  %402 = vmatprep.subr.bf16.mxu1 %v567_v34 }
  0x23   :  { %362 = vmatpush1.bf16.msra.mxu0 %v569_v35  ;;  %403 = vmatpush1.bf16.msra.mxu1 %v570_v36 }
  0x24   :  { %363 = vmatprep.subr.bf16.mxu0 %v571_v38  ;;  %404 = vmatprep.subr.bf16.mxu1 %v573_v39 }
  0x27   :  { %364 = vmatpush1.bf16.msra.mxu0 %v575_v42  ;;  %405 = vmatpush1.bf16.msra.mxu1 %v576_v43 }
  0x28   :  { %365 = vmatprep.subr.bf16.mxu0 %v577_v44  ;;  %406 = vmatprep.subr.bf16.mxu1 %v579_v45 }
  0x2b   :  { %366 = vmatpush1.bf16.msra.mxu0 %v581_v46  ;;  %407 = vmatpush1.bf16.msra.mxu1 %v582_v47 }
  0x2c   :  { %367 = vmatprep.subr.bf16.mxu0 %v583_v48  ;;  %408 = vmatprep.subr.bf16.mxu1 %v585_v49 }
  0x2f   :  { %368 = vmatpush1.bf16.msra.mxu0 %v587_v52  ;;  %409 = vmatpush1.bf16.msra.mxu1 %v588_v53 }
  0x30   :  { %507 = vmatprep.subr.msk.bf16.mxu0 %vm332_vm1, %v504_v54  ;;  %509 = vmatprep.subr.msk.bf16.mxu1 %vm332_vm1, %v506_v55 }
  0x33   :  { %370 = vmatpush1.bf16.msra.mxu0 %v334_v58  ;;  %411 = vmatpush1.bf16.msra.mxu1 %v340_v59 }
  0x36   :  { %378 = vmatmul.mubr.bf16.vlgmr.msra.gmra.mrb[0].mxu0 %v453_v60  ;;  %419 = vmatmul.mubr.bf16.vlgmr.msra.gmra.mrb[0].mxu1 %v453_v60 }
  0x90   :  { %v70_v61 = vpop.permute.xlu0 %69 }
 0x109   :  { %v379_v62 = vpop.f32.mrb[0].mxu0  ;;  %v420_v63 = vpop.f32.mrb[0].mxu1 }
 0x10a   :  { %v380_v0 = vadd.f32 %v379_v62, %v70_v61  ;;  %v421_v1 = vadd.f32 %v420_v63, %v70_v61  ;;  %v381_v2 = vpop.f32.mrb[1].mxu0  ;;  %v422_v3 = vpop.f32.mrb[1].mxu1 }
 0x10b   :  { %v382_v4 = vadd.f32 %v381_v2, %v70_v61  ;;  %v423_v5 = vadd.f32 %v422_v3, %v70_v61  ;;  %v383_v6 = vpop.f32.mrb[2].mxu0  ;;  %v424_v7 = vpop.f32.mrb[2].mxu1 }
 0x10c   :  { %v427_v8 = vmax.f32 %v380_v0, 0.0  ;;  %v429_v9 = vmax.f32 %v421_v1, 0.0  ;;  %v384_v10 = vpop.f32.mrb[3].mxu0  ;;  %v425_v11 = vpop.f32.mrb[3].mxu1 }
 0x10d   :  { %v428_v12 = vmax.f32 %v382_v4, 0.0  ;;  %v430_v13 = vmax.f32 %v423_v5, 0.0 }
 0x10f   :  { %v513_v14 = vpack.c.bf16 %v428_v12, %v427_v8  ;;  %v514_v15 = vpack.c.bf16 %v430_v13, %v429_v9 }
 0x111   :  { %447 = vst [vmem:[%s781_s3] sm:$0xff] %v513_v14  ;;  %448 = vst [vmem:[%s781_s3 + $0x8] sm:$0xff] %v514_v15 }

// kernel: lama_forward.7
= control target key start
LH: loop header
LB: loop body
LE: loop exit
PB: predicated region body
PF: predicated region fallthrough
CT: control target
= control target key end

     0   :  { %v181_v0 = vmov 0.0   ;;  %vm182_vm0 = vmmov 0   ;;  %v183_v2 = vmov 0   ;;  %vm74_vm1 = vcmask 1043456   ;;  %s231_s0 = inlined_call_operand.vmem [shape: bf16[72,128], index: 0, kind: input, shape index: {}]   ;;  %s232_s2 = inlined_call_operand.vmem [shape: f32[16,1], index: 2, kind: input, shape index: {}]   ;;  %s233_s1 = inlined_call_operand.vmem [shape: bf16[16,72], index: 1, kind: input, shape index: {}]   ;;  %s234_s3 = inlined_call_operand.vmem [shape: bf16[16,128], index: 3, kind: output, shape index: {}]  }
   0x1   :  { %157 = vmatprep.subr.bf16.mxu0 %v181_v0  ;;  %v175_v1 = vld [vmem:[%s231_s0] sm:$0xff]   ;;  %167 = vmatprep.mubr.msk.bf16.mxu0 %vm182_vm0, %v181_v0  ;;  %v176_v3 = vld [vmem:[%s231_s0 + $0x8] sm:$0xff]   ;;  %v177_v5 = vld [vmem:[%s231_s0 + $0x10] sm:$0xff]   ;;  %vm70_vm2 = vcmask 588800  }
   0x2   :  { %174 = vset.pattern.permute.xlu0 %v183_v2  ;;  %158 = vmatpush3.bf16.msra.mxu0 %v175_v1  ;;  %v26_v4 = vld [vmem:[%s232_s2] sm:$0xff]  ;;  %v27_v6 = vld [vmem:[%s232_s2 + $0x8] sm:$0xff]  ;;  %v178_v7 = vld [vmem:[%s231_s0 + $0x18] sm:$0xff]  }
   0x3   :  { %159 = vmatprep.subr.bf16.mxu0 %v181_v0  ;;  %30 = vperm.xlu0 %174, %v26_v4   ;;  %v179_v8 = vld [vmem:[%s231_s0 + $0x20] ss:$0 sps:$4 sm:$0xff]  }
   0x4   :  { %v76_v9 = vsel %vm74_vm1, %v179_v8, 0  ;;  %v180_v10 = vld [vmem:[%s233_s1] sm:$0xff]  }
   0x6   :  { %160 = vmatpush3.bf16.msra.mxu0 %v176_v3 }
   0x7   :  { %161 = vmatprep.subr.bf16.mxu0 %v181_v0  ;;  %35 = vperm.xlu0 %174, %v27_v6  }
   0xa   :  { %162 = vmatpush3.bf16.msra.mxu0 %v177_v5 }
   0xb   :  { %163 = vmatprep.subr.bf16.mxu0 %v181_v0 }
   0xe   :  { %164 = vmatpush3.bf16.msra.mxu0 %v178_v7 }
   0xf   :  { %165 = vmatprep.subr.bf16.mxu0 %v181_v0 }
  0x12   :  { %166 = vmatpush3.bf16.msra.mxu0 %v76_v9 }
  0x15   :  { %168 = vmatmul.mubr.msk.bf16.vlgmr.msra.gmra.mrb[0].mxu0 %vm70_vm2, %v180_v10 }
  0x82   :  { %v31_v11 = vpop.permute.xlu0 %30 }
  0x86   :  { %v36_v15 = vpop.permute.xlu0 %35 }
  0xe8   :  { %v112_v12 = vpop.f32.mrb[0].mxu0 }
  0xe9   :  { %v113_v13 = vadd.f32 %v112_v12, %v31_v11  ;;  %v169_v14 = vpop.f32.mrb[1].mxu0 }
  0xea   :  { %v115_v16 = vpop.f32.mrb[2].mxu0 }
  0xeb   :  { %v116_v17 = vadd.f32 %v115_v16, %v36_v15  ;;  %v170_v18 = vpop.f32.mrb[3].mxu0  ;;  %v119_v19 = vmax.f32 %v113_v13, 0.0 }
  0xed   :  { %v120_v20 = vmax.f32 %v116_v17, 0.0 }
  0xef   :  { %v149_v21 = vpack.c.bf16 %v120_v20, %v119_v19 }
  0xf1   :  { %150 = vst [vmem:[%s234_s3] sm:$0xff] %v149_v21  }

// kernel: lama_forward.9
= control target key start
LH: loop header
LB: loop body
LE: loop exit
PB: predicated region body
PF: predicated region fallthrough
CT: control target
= control target key end

     0   :  { %v372_v1 = vmov 0   ;;  %vm264_vm0 = vcmask 257024   ;;  %s485_s0 = inlined_call_operand.vmem [shape: bf16[128,32], index: 0, kind: input, shape index: {}]   ;;  %s486_s1 = inlined_call_operand.vmem [shape: bf16[64,128], index: 1, kind: input, shape index: {}]   ;;  %s487_s2 = inlined_call_operand.vmem [shape: f32[64,1], index: 2, kind: input, shape index: {}]   ;;  %s488_s3 = inlined_call_operand.vmem [shape: bf16[64,32], index: 3, kind: output, shape index: {}]  }
   0x1   :  { %v360_v0 = vld [vmem:[%s485_s0] sm:$0xff]   ;;  %359 = vset.pattern.permute.xlu1 %v372_v1  ;;  %358 = vset.pattern.permute.xlu0 %v372_v1  ;;  %v361_v2 = vld [vmem:[%s485_s0 + $0x8] sm:$0xff]   ;;  %v362_v3 = vld [vmem:[%s485_s0 + $0x10] sm:$0xff]  }
   0x2   :  { %317 = vmatprep.subr.bf16.mxu0 %v360_v0  ;;  %341 = vmatprep.subr.bf16.mxu1 %v360_v0  ;;  %v363_v4 = vld [vmem:[%s485_s0 + $0x18] sm:$0xff]   ;;  %v368_v5 = vld [vmem:[%s486_s1] sm:$0xff]   ;;  %v369_v6 = vld [vmem:[%s486_s1 + $0x10] sm:$0xff]  }
   0x3   :  { %318 = vmatpush3.bf16.msra.mxu0 %v360_v0  ;;  %349 = vmatpush3.bf16.msra.mxu1 %v360_v0  ;;  %v364_v7 = vld [vmem:[%s485_s0 + $0x20] sm:$0xff]   ;;  %v41_v8 = vld [vmem:[%s487_s2 + $0x10] sm:$0xff]  ;;  %v42_v10 = vld [vmem:[%s487_s2 + $0x18] sm:$0xff] }
   0x4   :  { %319 = vmatprep.subr.bf16.mxu0 %v361_v2  ;;  %342 = vmatprep.subr.bf16.mxu1 %v361_v2  ;;  %v39_v9 = vld [vmem:[%s487_s2] sm:$0xff]  ;;  %v40_v11 = vld [vmem:[%s487_s2 + $0x8] sm:$0xff]  ;;  %v366_v15 = vld [vmem:[%s485_s0 + $0x30] sm:$0xff]  }
   0x5   :  { %333 = vmatprep.mubr.bf16.mxu0 %v368_v5  ;;  %337 = vmatprep.mubr.bf16.mxu1 %v369_v6  ;;  %v365_v12 = vld [vmem:[%s485_s0 + $0x28] sm:$0xff]   ;;  %v43_v14 = vld [vmem:[%s487_s2 + $0x20] sm:$0xff]  ;;  %v46_v16 = vld [vmem:[%s487_s2 + $0x38] sm:$0xff] }
   0x6   :  { %59 = vperm.xlu1 %359, %v41_v8   ;;  %49 = vperm.xlu0 %358, %v39_v9   ;;  %v44_v13 = vld [vmem:[%s487_s2 + $0x28] sm:$0xff]  ;;  %v45_v17 = vld [vmem:[%s487_s2 + $0x30] sm:$0xff]  ;;  %v367_v18 = vld [vmem:[%s485_s0 + $0x38] sm:$0xff]  }
   0x7   :  { %320 = vmatpush3.bf16.msra.mxu0 %v361_v2  ;;  %350 = vmatpush3.bf16.msra.mxu1 %v361_v2  ;;  %v370_v19 = vld [vmem:[%s486_s1 + $0x8] sm:$0xff]   ;;  %v371_v20 = vld [vmem:[%s486_s1 + $0x18] sm:$0xff]  }
   0x8   :  { %321 = vmatprep.subr.bf16.mxu0 %v362_v3  ;;  %343 = vmatprep.subr.bf16.mxu1 %v362_v3 }
   0xa   :  { %64 = vperm.xlu1 %359, %v42_v10   ;;  %54 = vperm.xlu0 %358, %v40_v11  }
   0xb   :  { %322 = vmatpush3.bf16.msra.mxu0 %v362_v3  ;;  %351 = vmatpush3.bf16.msra.mxu1 %v362_v3 }
   0xc   :  { %323 = vmatprep.subr.bf16.mxu0 %v363_v4  ;;  %344 = vmatprep.subr.bf16.mxu1 %v363_v4 }
   0xe   :  { %74 = vperm.xlu1 %359, %v44_v13   ;;  %69 = vperm.xlu0 %358, %v43_v14  }
   0xf   :  { %324 = vmatpush3.bf16.msra.mxu0 %v363_v4  ;;  %352 = vmatpush3.bf16.msra.mxu1 %v363_v4 }
  0x10   :  { %325 = vmatprep.subr.bf16.mxu0 %v364_v7  ;;  %345 = vmatprep.subr.bf16.mxu1 %v364_v7 }
  0x12   :  { %84 = vperm.xlu1 %359, %v46_v16   ;;  %79 = vperm.xlu0 %358, %v45_v17  }
  0x13   :  { %326 = vmatpush3.bf16.msra.mxu0 %v364_v7  ;;  %353 = vmatpush3.bf16.msra.mxu1 %v364_v7 }
  0x14   :  { %327 = vmatprep.subr.bf16.mxu0 %v365_v12  ;;  %346 = vmatprep.subr.bf16.mxu1 %v365_v12 }
  0x17   :  { %328 = vmatpush3.bf16.msra.mxu0 %v365_v12  ;;  %354 = vmatpush3.bf16.msra.mxu1 %v365_v12 }
  0x18   :  { %329 = vmatprep.subr.bf16.mxu0 %v366_v15  ;;  %347 = vmatprep.subr.bf16.mxu1 %v366_v15 }
  0x1b   :  { %330 = vmatpush3.bf16.msra.mxu0 %v366_v15  ;;  %355 = vmatpush3.bf16.msra.mxu1 %v366_v15 }
  0x1c   :  { %331 = vmatprep.subr.bf16.mxu0 %v367_v18  ;;  %348 = vmatprep.subr.bf16.mxu1 %v367_v18 }
  0x1f   :  { %332 = vmatpush3.bf16.msra.mxu0 %v367_v18  ;;  %356 = vmatpush3.bf16.msra.mxu1 %v367_v18 }
  0x22   :  { %334 = vmatmul.mubr.bf16.vlgmr.msra.gmra.mrb[0].mxu0 %v370_v19  ;;  %338 = vmatmul.mubr.bf16.vlgmr.msra.gmra.mrb[0].mxu1 %v371_v20 }
  0x85   :  { %v60_v21 = vpop.permute.xlu1 %59  ;;  %v50_v22 = vpop.permute.xlu0 %49 }
  0x89   :  { %v65_v23 = vpop.permute.xlu1 %64  ;;  %v55_v24 = vpop.permute.xlu0 %54 }
  0x8d   :  { %v75_v25 = vpop.permute.xlu1 %74  ;;  %v70_v26 = vpop.permute.xlu0 %69 }
  0x91   :  { %v85_v27 = vpop.permute.xlu1 %84  ;;  %v80_v28 = vpop.permute.xlu0 %79 }
  0xf5   :  { %v335_v29 = vpop.f32.mrb[0].mxu0  ;;  %v339_v30 = vpop.f32.mrb[0].mxu1 }
  0xf6   :  { %v202_v31 = vadd.f32 %v335_v29, %v60_v21  ;;  %v218_v32 = vadd.f32 %v339_v30, %v80_v28  ;;  %v193_v33 = vpop.f32.mrb[1].mxu0  ;;  %v209_v34 = vpop.f32.mrb[1].mxu1 }
  0xf7   :  { %v194_v35 = vadd.f32 %v193_v33, %v50_v22  ;;  %v210_v36 = vadd.f32 %v209_v34, %v70_v26  ;;  %v336_v37 = vpop.f32.mrb[2].mxu0  ;;  %v340_v38 = vpop.f32.mrb[2].mxu1 }
  0xf8   :  { %v226_v39 = vmax.f32 %v202_v31, 0.0  ;;  %v230_v40 = vmax.f32 %v218_v32, 0.0  ;;  %v205_v41 = vadd.f32 %v336_v37, %v65_v23  ;;  %v221_v42 = vadd.f32 %v340_v38, %v85_v27  ;;  %v196_v43 = vpop.f32.mrb[3].mxu0  ;;  %v212_v44 = vpop.f32.mrb[3].mxu1 }
  0xf9   :  { %v224_v45 = vmax.f32 %v194_v35, 0.0  ;;  %v228_v46 = vmax.f32 %v210_v36, 0.0  ;;  %v197_v47 = vadd.f32 %v196_v43, %v55_v24  ;;  %v213_v48 = vadd.f32 %v212_v44, %v75_v25 }
  0xfa   :  { %v299_v49 = vpack.c.bf16 %v226_v39, %v226_v39  ;;  %v303_v50 = vpack.c.bf16 %v230_v40, %v230_v40  ;;  %v227_v51 = vmax.f32 %v205_v41, 0.0  ;;  %v231_v52 = vmax.f32 %v221_v42, 0.0 }
  0xfb   :  { %v297_v53 = vpack.c.bf16 %v224_v45, %v224_v45  ;;  %v301_v54 = vpack.c.bf16 %v228_v46, %v228_v46  ;;  %v225_v55 = vmax.f32 %v197_v47, 0.0  ;;  %v229_v56 = vmax.f32 %v213_v48, 0.0 }
  0xfc   :  { %267 = vst.msk [vmem:[%s488_s3 + $0x8] sm:$0xf] %vm264_vm0, %v299_v49  ;;  %271 = vst.msk [vmem:[%s488_s3 + $0x18] sm:$0xf] %vm264_vm0, %v303_v50  ;;  %v300_v57 = vpack.c.bf16 %v227_v51, %v227_v51  ;;  %v304_v58 = vpack.c.bf16 %v231_v52, %v231_v52 }
  0xfd   :  { %265 = vst.msk [vmem:[%s488_s3] sm:$0xf] %vm264_vm0, %v297_v53  ;;  %269 = vst.msk [vmem:[%s488_s3 + $0x10] sm:$0xf] %vm264_vm0, %v301_v54  ;;  %v298_v59 = vpack.c.bf16 %v225_v55, %v225_v55  ;;  %v302_v60 = vpack.c.bf16 %v229_v56, %v229_v56 }
  0xfe   :  { %268 = vst.msk [vmem:[%s488_s3 + $0xc] sm:$0xf] %vm264_vm0, %v300_v57  ;;  %272 = vst.msk [vmem:[%s488_s3 + $0x1c] sm:$0xf] %vm264_vm0, %v304_v58 }
  0xff   :  { %266 = vst.msk [vmem:[%s488_s3 + $0x4] sm:$0xf] %vm264_vm0, %v298_v59  ;;  %270 = vst.msk [vmem:[%s488_s3 + $0x14] sm:$0xf] %vm264_vm0, %v302_v60 }

// kernel: lama_forward.8
= control target key start
LH: loop header
LB: loop body
LE: loop exit
PB: predicated region body
PF: predicated region fallthrough
CT: control target
= control target key end

     0   :  { %v8764_v0 = vmov 0.0   ;;  %vm8765_vm0 = vmmov 0   ;;  %vm285_vm1 = vcmask 130048   ;;  %vm1723_vm2 = vcmask 261120   ;;  %s10009_s1 = inlined_call_operand.vmem [shape: bf16[9,128,32], index: 1, kind: input, shape index: {}]   ;;  %s10010_s0 = inlined_call_operand.vmem [shape: bf16[16,128], index: 0, kind: input, shape index: {}]   ;;  %s10011_s3 = inlined_call_operand.vmem [shape: bf16[9,32,16], index: 3, kind: input, shape index: {}]   ;;  %s10012_s4 = inlined_call_operand.vmem [shape: f32[32,1], index: 4, kind: input, shape index: {}]   ;;  %s10013_s6 = inlined_call_operand.vmem [shape: f32[32,1], index: 6, kind: input, shape index: {}]   ;;  %s10014_s8 = inlined_call_operand.vmem [shape: f32[32,1], index: 8, kind: input, shape index: {}]   ;;  %s10015_s10 = inlined_call_operand.vmem [shape: f32[32,1], index: 10, kind: input, shape index: {}]   ;;  %s10016_s12 = inlined_call_operand.vmem [shape: f32[32,1], index: 12, kind: input, shape index: {}]   ;;  %s10017_s2 = inlined_call_operand.vmem [shape: bf16[9,32,32], index: 2, kind: input, shape index: {}]   ;;  %s10018_s5 = inlined_call_operand.vmem [shape: bf16[9,32,32], index: 5, kind: input, shape index: {}]   ;;  %s10019_s7 = inlined_call_operand.vmem [shape: bf16[9,32,32], index: 7, kind: input, shape index: {}]   ;;  %s10020_s9 = inlined_call_operand.vmem [shape: bf16[9,32,32], index: 9, kind: input, shape index: {}]   ;;  %s10021_s11 = inlined_call_operand.vmem [shape: bf16[9,32,32], index: 11, kind: input, shape index: {}]   ;;  %s10022_s13 = inlined_call_operand.vmem [shape: bf16[32,32], index: 13, kind: output, shape index: {}]  }
   0x1   :  { %7610 = vmatprep.subr.bf16.mxu1 %v8764_v0  ;;  %v8565_v1 = vld [vmem:[%s10009_s1 + $0x40] sm:$0xff]   ;;  %7590 = vmatprep.subr.bf16.mxu0 %v8764_v0  ;;  %v8566_v2 = vld [vmem:[%s10009_s1 + $0x48] sm:$0xff]   ;;  %v8567_v4 = vld [vmem:[%s10009_s1 + $0x50] sm:$0xff]   ;;  %vm6514_vm3 = vcmask 257024  }
   0x2   :  { %7626 = vmatprep.mubr.msk.bf16.mxu1 %vm8765_vm0, %v8764_v0  ;;  %7606 = vmatprep.mubr.msk.bf16.mxu0 %vm8765_vm0, %v8764_v0  ;;  %v8570_v3 = vld [vmem:[%s10009_s1] sm:$0xff]   ;;  %v8572_v5 = vld [vmem:[%s10009_s1 + $0x8] sm:$0xff]   ;;  %v8568_v6 = vld [vmem:[%s10009_s1 + $0x58] sm:$0xff]  }
   0x3   :  { %7611 = vmatpush3.bf16.msra.mxu1 %v8565_v1  ;;  %7591 = vmatpush3.bf16.msra.mxu0 %v8570_v3  ;;  %v8574_v7 = vld [vmem:[%s10009_s1 + $0x10] sm:$0xff]   ;;  %v8569_v8 = vld [vmem:[%s10009_s1 + $0x60] sm:$0xff]   ;;  %v8576_v9 = vld [vmem:[%s10009_s1 + $0x18] sm:$0xff]  }
   0x4   :  { %7612 = vmatprep.subr.bf16.mxu1 %v8764_v0  ;;  %7592 = vmatprep.subr.bf16.mxu0 %v8764_v0  ;;  %v8571_v10 = vld [vmem:[%s10009_s1 + $0x68] sm:$0xff]   ;;  %v8579_v11 = vld [vmem:[%s10009_s1 + $0x20] sm:$0xff]   ;;  %v8573_v12 = vld [vmem:[%s10009_s1 + $0x70] sm:$0xff]  }
   0x5   :  { %v8581_v13 = vld [vmem:[%s10009_s1 + $0x28] sm:$0xff]   ;;  %v8575_v14 = vld [vmem:[%s10009_s1 + $0x78] sm:$0xff]   ;;  %v8583_v15 = vld [vmem:[%s10009_s1 + $0x30] sm:$0xff]  }
   0x6   :  { %v8903_v16 = vld [vmem:[%s10010_s0] sm:$0xff]   ;;  %v8585_v18 = vld [vmem:[%s10009_s1 + $0x38] sm:$0xff]   ;;  %v8580_v19 = vld [vmem:[%s10009_s1 + $0x88] sm:$0xff]  }
   0x7   :  { %7613 = vmatpush3.bf16.msra.mxu1 %v8566_v2  ;;  %7593 = vmatpush3.bf16.msra.mxu0 %v8572_v5  ;;  %v8578_v17 = vld [vmem:[%s10009_s1 + $0x80] sm:$0xff]   ;;  %v8582_v20 = vld [vmem:[%s10009_s1 + $0x90] sm:$0xff]   ;;  %v8584_v21 = vld [vmem:[%s10009_s1 + $0x98] sm:$0xff]  }
   0x8   :  { %7614 = vmatprep.subr.bf16.mxu1 %v8764_v0  ;;  %7594 = vmatprep.subr.bf16.mxu0 %v8764_v0  ;;  %v8586_v22 = vld [vmem:[%s10009_s1 + $0xa0] sm:$0xff]   ;;  %v8587_v23 = vld [vmem:[%s10009_s1 + $0xa8] sm:$0xff]   ;;  %v8588_v24 = vld [vmem:[%s10009_s1 + $0xb0] sm:$0xff]  }
   0x9   :  { %v8589_v25 = vld [vmem:[%s10009_s1 + $0xb8] sm:$0xff]   ;;  %v8590_v26 = vld [vmem:[%s10011_s3 + $0x10] sm:$0xff]   ;;  %v8594_v27 = vld [vmem:[%s10009_s1 + $0x100] sm:$0xff]  }
   0xa   :  { %v8595_v28 = vld [vmem:[%s10009_s1 + $0x108] sm:$0xff]   ;;  %v8596_v29 = vld [vmem:[%s10009_s1 + $0x110] sm:$0xff]   ;;  %v8600_v30 = vld [vmem:[%s10009_s1 + $0x118] sm:$0xff]  }
   0xb   :  { %7615 = vmatpush3.bf16.msra.mxu1 %v8567_v4  ;;  %7595 = vmatpush3.bf16.msra.mxu0 %v8574_v7  ;;  %v8602_v31 = vld [vmem:[%s10009_s1 + $0x120] sm:$0xff]   ;;  %v8604_v32 = vld [vmem:[%s10009_s1 + $0x128] sm:$0xff]   ;;  %v8606_v33 = vld [vmem:[%s10009_s1 + $0x130] sm:$0xff]  }
   0xc   :  { %7616 = vmatprep.subr.bf16.mxu1 %v8764_v0  ;;  %7596 = vmatprep.subr.bf16.mxu0 %v8764_v0  ;;  %v8608_v34 = vld [vmem:[%s10009_s1 + $0x138] sm:$0xff]   ;;  %v8610_v35 = vld [vmem:[%s10009_s1 + $0x140] sm:$0xff]   ;;  %v8612_v36 = vld [vmem:[%s10009_s1 + $0x148] sm:$0xff]  }
   0xd   :  { %v8614_v37 = vld [vmem:[%s10009_s1 + $0x150] sm:$0xff]   ;;  %v8615_v38 = vld [vmem:[%s10009_s1 + $0x158] sm:$0xff]   ;;  %v8616_v39 = vld [vmem:[%s10009_s1 + $0x160] sm:$0xff]  }
   0xe   :  { %v8617_v40 = vld [vmem:[%s10009_s1 + $0x168] sm:$0xff]   ;;  %v8618_v41 = vld [vmem:[%s10009_s1 + $0x170] sm:$0xff]   ;;  %v8619_v42 = vld [vmem:[%s10009_s1 + $0x178] sm:$0xff]  }
   0xf   :  { %7617 = vmatpush3.bf16.msra.mxu1 %v8568_v6  ;;  %7597 = vmatpush3.bf16.msra.mxu0 %v8576_v9  ;;  %v8591_v49 = vld [vmem:[%s10011_s3 + $0x18] sm:$0xff]   ;;  %v8592_v51 = vld [vmem:[%s10011_s3] sm:$0xff]   ;;  %v8593_v55 = vld [vmem:[%s10011_s3 + $0x8] sm:$0xff]  }
  0x10   :  { %7618 = vmatprep.subr.bf16.mxu1 %v8764_v0  ;;  %7598 = vmatprep.subr.bf16.mxu0 %v8764_v0  ;;  %v8597_v56 = vld [vmem:[%s10011_s3 + $0x20] sm:$0xff]   ;;  %v8598_v62 = vld [vmem:[%s10011_s3 + $0x28] sm:$0xff]   ;;  %v8603_v2 = vld [vmem:[%s10009_s1 + $0xd0] sm:$0xff]  }
  0x11   :  { %v8599_v63 = vld [vmem:[%s10009_s1 + $0xc0] sm:$0xff]   ;;  %v8601_v1 = vld [vmem:[%s10009_s1 + $0xc8] sm:$0xff]   ;;  %v8605_v3 = vld [vmem:[%s10009_s1 + $0xd8] sm:$0xff]  }
  0x12   :  { %v8607_v4 = vld [vmem:[%s10009_s1 + $0xe0] sm:$0xff]   ;;  %v8609_v5 = vld [vmem:[%s10009_s1 + $0xe8] sm:$0xff]   ;;  %v8611_v6 = vld [vmem:[%s10009_s1 + $0xf0] sm:$0xff]  }
  0x13   :  { %7619 = vmatpush3.bf16.msra.mxu1 %v8569_v8  ;;  %7599 = vmatpush3.bf16.msra.mxu0 %v8579_v11  ;;  %v8613_v7 = vld [vmem:[%s10009_s1 + $0xf8] sm:$0xff]  }
  0x14   :  { %7620 = vmatprep.subr.bf16.mxu1 %v8764_v0  ;;  %7600 = vmatprep.subr.bf16.mxu0 %v8764_v0 }
  0x17   :  { %7621 = vmatpush3.bf16.msra.mxu1 %v8571_v10  ;;  %7601 = vmatpush3.bf16.msra.mxu0 %v8581_v13  ;;  %v8620_v13 = vld [vmem:[%s10011_s3 + $0x30] sm:$0xff]  }
  0x18   :  { %7622 = vmatprep.subr.bf16.mxu1 %v8764_v0  ;;  %7602 = vmatprep.subr.bf16.mxu0 %v8764_v0 }
  0x1b   :  { %7623 = vmatpush3.bf16.msra.mxu1 %v8573_v12  ;;  %7603 = vmatpush3.bf16.msra.mxu0 %v8583_v15 }
  0x1c   :  { %7624 = vmatprep.subr.bf16.mxu1 %v8764_v0  ;;  %7604 = vmatprep.subr.bf16.mxu0 %v8764_v0 }
  0x1f   :  { %7625 = vmatpush3.bf16.msra.mxu1 %v8575_v14  ;;  %7605 = vmatpush3.bf16.msra.mxu0 %v8585_v18 }
  0x20   :  { %7642 = vmatprep.subr.bf16.mxu1 %v8764_v0 }
  0x22   :  { %7627 = vmatmul.mubr.bf16.vlgmr.msra.gmra.mrb[0].mxu1 %v8903_v16  ;;  %7607 = vmatmul.mubr.bf16.vlgmr.msra.gmra.mrb[0].mxu0 %v8903_v16 }
  0x23   :  { %7643 = vmatpush3.bf16.msra.mxu1 %v8578_v17  ;;  %7658 = vmatprep.mubr.msk.bf16.mxu1 %vm8765_vm0, %v8764_v0 }
  0x24   :  { %7644 = vmatprep.subr.bf16.mxu1 %v8764_v0  ;;  %7632 = vmatprep.mubr.msk.bf16.mxu0 %vm285_vm1, %v8590_v26  ;;  %v8640_v26 = vld [vmem:[%s10009_s1 + $0x1f0] sm:$0xff]  }
  0x27   :  { %7645 = vmatpush3.bf16.msra.mxu1 %v8580_v19 }
  0x28   :  { %7646 = vmatprep.subr.bf16.mxu1 %v8764_v0 }
  0x2b   :  { %7647 = vmatpush3.bf16.msra.mxu1 %v8582_v20  ;;  %v8629_v20 = vld [vmem:[%s10009_s1 + $0x1c0] sm:$0xff]  }
  0x2c   :  { %7648 = vmatprep.subr.bf16.mxu1 %v8764_v0 }
  0x2f   :  { %7649 = vmatpush3.bf16.msra.mxu1 %v8584_v21  ;;  %v8631_v21 = vld [vmem:[%s10009_s1 + $0x1c8] sm:$0xff]  }
  0x30   :  { %7650 = vmatprep.subr.bf16.mxu1 %v8764_v0 }
  0x33   :  { %7651 = vmatpush3.bf16.msra.mxu1 %v8586_v22  ;;  %v8633_v22 = vld [vmem:[%s10009_s1 + $0x1d0] sm:$0xff]  }
  0x34   :  { %7652 = vmatprep.subr.bf16.mxu1 %v8764_v0 }
  0x37   :  { %7653 = vmatpush3.bf16.msra.mxu1 %v8587_v23  ;;  %v8635_v23 = vld [vmem:[%s10009_s1 + $0x1d8] sm:$0xff]  }
  0x38   :  { %7654 = vmatprep.subr.bf16.mxu1 %v8764_v0 }
  0x3b   :  { %7655 = vmatpush3.bf16.msra.mxu1 %v8588_v24  ;;  %v8637_v24 = vld [vmem:[%s10009_s1 + $0x1e0] sm:$0xff]  }
  0x3c   :  { %7656 = vmatprep.subr.bf16.mxu1 %v8764_v0 }
  0x3f   :  { %7657 = vmatpush3.bf16.msra.mxu1 %v8589_v25  ;;  %v8639_v25 = vld [vmem:[%s10009_s1 + $0x1e8] sm:$0xff]  }
  0x40   :  { %7694 = vmatprep.subr.bf16.mxu1 %v8764_v0 }
  0x42   :  { %7659 = vmatmul.mubr.bf16.vlgmr.msra.gmra.mrb[4].mxu1 %v8903_v16 }
  0x43   :  { %7710 = vmatprep.mubr.msk.bf16.mxu1 %vm8765_vm0, %v8764_v0  ;;  %7695 = vmatpush3.bf16.msra.mxu1 %v8594_v27  ;;  %v8641_v27 = vld [vmem:[%s10009_s1 + $0x1f8] sm:$0xff]  }
  0x44   :  { %7696 = vmatprep.subr.bf16.mxu1 %v8764_v0 }
  0x47   :  { %7697 = vmatpush3.bf16.msra.mxu1 %v8595_v28 }
  0x48   :  { %7698 = vmatprep.subr.bf16.mxu1 %v8764_v0 }
  0x4b   :  { %7699 = vmatpush3.bf16.msra.mxu1 %v8596_v29 }
  0x4c   :  { %7700 = vmatprep.subr.bf16.mxu1 %v8764_v0 }
  0x4f   :  { %7701 = vmatpush3.bf16.msra.mxu1 %v8600_v30 }
  0x50   :  { %7702 = vmatprep.subr.bf16.mxu1 %v8764_v0 }
  0x53   :  { %7703 = vmatpush3.bf16.msra.mxu1 %v8602_v31 }
  0x54   :  { %7704 = vmatprep.subr.bf16.mxu1 %v8764_v0 }
  0x57   :  { %7705 = vmatpush3.bf16.msra.mxu1 %v8604_v32 }
  0x58   :  { %7706 = vmatprep.subr.bf16.mxu1 %v8764_v0 }
  0x5b   :  { %7707 = vmatpush3.bf16.msra.mxu1 %v8606_v33  ;;  %v8621_v33 = vld [vmem:[%s10011_s3 + $0x38] sm:$0xff]  }
  0x5c   :  { %7708 = vmatprep.subr.bf16.mxu1 %v8764_v0 }
  0x5f   :  { %7709 = vmatpush3.bf16.msra.mxu1 %v8608_v34  ;;  %v8622_v34 = vld [vmem:[%s10011_s3 + $0x40] sm:$0xff]  }
  0x60   :  { %7720 = vmatprep.subr.bf16.mxu1 %v8764_v0 }
  0x62   :  { %7711 = vmatmul.mubr.bf16.vlgmr.msra.gmra.mrb[8].mxu1 %v8903_v16 }
  0x63   :  { %7721 = vmatpush3.bf16.msra.mxu1 %v8610_v35  ;;  %7736 = vmatprep.mubr.msk.bf16.mxu1 %vm8765_vm0, %v8764_v0  ;;  %v8623_v35 = vld [vmem:[%s10011_s3 + $0x48] sm:$0xff]  }
  0x64   :  { %7722 = vmatprep.subr.bf16.mxu1 %v8764_v0 }
  0x67   :  { %7723 = vmatpush3.bf16.msra.mxu1 %v8612_v36  ;;  %v8624_v36 = vld [vmem:[%s10011_s3 + $0x50] sm:$0xff]  }
  0x68   :  { %7724 = vmatprep.subr.bf16.mxu1 %v8764_v0 }
  0x6b   :  { %7725 = vmatpush3.bf16.msra.mxu1 %v8614_v37  ;;  %v8625_v37 = vld [vmem:[%s10011_s3 + $0x58] sm:$0xff]  }
  0x6c   :  { %7726 = vmatprep.subr.bf16.mxu1 %v8764_v0 }
  0x6f   :  { %7727 = vmatpush3.bf16.msra.mxu1 %v8615_v38  ;;  %v8626_v38 = vld [vmem:[%s10009_s1 + $0x180] sm:$0xff]  }
  0x70   :  { %7728 = vmatprep.subr.bf16.mxu1 %v8764_v0 }
  0x73   :  { %7729 = vmatpush3.bf16.msra.mxu1 %v8616_v39  ;;  %v8627_v39 = vld [vmem:[%s10009_s1 + $0x188] sm:$0xff]  }
  0x74   :  { %7730 = vmatprep.subr.bf16.mxu1 %v8764_v0 }
  0x77   :  { %7731 = vmatpush3.bf16.msra.mxu1 %v8617_v40  ;;  %v8628_v40 = vld [vmem:[%s10009_s1 + $0x190] sm:$0xff]  }
  0x78   :  { %7732 = vmatprep.subr.bf16.mxu1 %v8764_v0 }
  0x7b   :  { %7733 = vmatpush3.bf16.msra.mxu1 %v8618_v41  ;;  %v8630_v41 = vld [vmem:[%s10009_s1 + $0x198] sm:$0xff]  }
  0x7c   :  { %7734 = vmatprep.subr.bf16.mxu1 %v8764_v0 }
  0x7f   :  { %7735 = vmatpush3.bf16.msra.mxu1 %v8619_v42  ;;  %v8632_v42 = vld [vmem:[%s10009_s1 + $0x1a0] sm:$0xff]  }
  0x80   :  { %7772 = vmatprep.subr.bf16.mxu1 %v8764_v0 }
  0x82   :  { %7737 = vmatmul.mubr.bf16.vlgmr.msra.gmra.mrb[12].mxu1 %v8903_v16 }
  0x83   :  { %7788 = vmatprep.mubr.msk.bf16.mxu1 %vm8765_vm0, %v8764_v0  ;;  %7773 = vmatpush3.bf16.msra.mxu1 %v8629_v20  ;;  %v5304_v20 = vld [vmem:[%s10015_s10 + $0x10] sm:$0xff] }
  0x84   :  { %7774 = vmatprep.subr.bf16.mxu1 %v8764_v0 }
  0x87   :  { %7775 = vmatpush3.bf16.msra.mxu1 %v8631_v21  ;;  %v5305_v21 = vld [vmem:[%s10015_s10 + $0x18] sm:$0xff] }
  0x88   :  { %7776 = vmatprep.subr.bf16.mxu1 %v8764_v0 }
  0x8b   :  { %7777 = vmatpush3.bf16.msra.mxu1 %v8633_v22  ;;  %v6462_v22 = vld [vmem:[%s10016_s12] sm:$0xff] }
  0x8c   :  { %7778 = vmatprep.subr.bf16.mxu1 %v8764_v0 }
  0x8f   :  { %7779 = vmatpush3.bf16.msra.mxu1 %v8635_v23  ;;  %v6463_v23 = vld [vmem:[%s10016_s12 + $0x8] sm:$0xff] }
  0x90   :  { %7780 = vmatprep.subr.bf16.mxu1 %v8764_v0 }
  0x93   :  { %7781 = vmatpush3.bf16.msra.mxu1 %v8637_v24  ;;  %v6464_v24 = vld [vmem:[%s10016_s12 + $0x10] sm:$0xff] }
  0x94   :  { %7782 = vmatprep.subr.bf16.mxu1 %v8764_v0 }
  0x97   :  { %7783 = vmatpush3.bf16.msra.mxu1 %v8639_v25  ;;  %v6465_v25 = vld [vmem:[%s10016_s12 + $0x18] sm:$0xff] }
  0x98   :  { %7784 = vmatprep.subr.bf16.mxu1 %v8764_v0 }
  0x9b   :  { %7785 = vmatpush3.bf16.msra.mxu1 %v8640_v26 }
  0x9c   :  { %7786 = vmatprep.subr.bf16.mxu1 %v8764_v0 }
  0x9f   :  { %7787 = vmatpush3.bf16.msra.mxu1 %v8641_v27 }
  0xa2   :  { %7789 = vmatmul.mubr.bf16.vlgmr.msra.gmra.mrb[16].mxu1 %v8903_v16 }
  0xf5   :  { %v262_v43 = vpop.f32.mrb[0].mxu1  ;;  %v151_v48 = vpop.f32.mrb[0].mxu0 }
  0xf6   :  { %v7628_v44 = vpop.f32.mrb[1].mxu1  ;;  %v7608_v50 = vpop.f32.mrb[1].mxu0 }
  0xf7   :  { %v265_v45 = vpop.f32.mrb[2].mxu1  ;;  %v154_v52 = vpop.f32.mrb[2].mxu0  ;;  %v8636_v44 = vld [vmem:[%s10009_s1 + $0x1b0] sm:$0xff]  }
  0xf8   :  { %v269_v46 = vpack.c.bf16 %v265_v45, %v262_v43  ;;  %v7629_v47 = vpop.f32.mrb[3].mxu1  ;;  %v158_v53 = vpack.c.bf16 %v154_v52, %v151_v48  ;;  %v7609_v54 = vpop.f32.mrb[3].mxu0  ;;  %v8634_v43 = vld [vmem:[%s10009_s1 + $0x1a8] sm:$0xff]   ;;  %v8638_v45 = vld [vmem:[%s10009_s1 + $0x1b8] sm:$0xff]  }
  0xfa   :  { %7630 = vmatprep.subr.bf16.mxu0 %v269_v46 }
  0xfb   :  { %7631 = vmatpush3.bf16.msra.mxu0 %v269_v46  ;;  %v8642_v46 = vld [vmem:[%s10011_s3 + $0x60] sm:$0xff]  }
  0xfc   :  { %7636 = vmatprep.subr.bf16.mxu0 %v158_v53 }
  0xfe   :  { %7633 = vmatmul.mubr.msk.bf16.vlgmr.msra.gmra.mrb[4].mxu0 %vm285_vm1, %v8591_v49 }
  0xff   :  { %7638 = vmatprep.mubr.msk.bf16.mxu0 %vm285_vm1, %v8592_v51  ;;  %7637 = vmatpush3.bf16.msra.mxu0 %v158_v53 }
 0x10a   :  { %7639 = vmatmul.mubr.msk.bf16.vlgmr.msra.gmra.mrb[4].mxu0 %vm285_vm1, %v8593_v55 }
 0x10b   :  { %7664 = vmatprep.mubr.msk.bf16.mxu0 %vm285_vm1, %v8597_v56 }
 0x115   :  { %v505_v57 = vpop.f32.mrb[4].mxu1 }
 0x116   :  { %v7660_v58 = vpop.f32.mrb[5].mxu1 }
 0x117   :  { %v508_v59 = vpop.f32.mrb[6].mxu1  ;;  %v8644_v58 = vld [vmem:[%s10011_s3 + $0x70] sm:$0xff]  }
 0x118   :  { %v512_v60 = vpack.c.bf16 %v508_v59, %v505_v57  ;;  %v7661_v61 = vpop.f32.mrb[7].mxu1  ;;  %v8643_v57 = vld [vmem:[%s10011_s3 + $0x68] sm:$0xff]   ;;  %v8645_v59 = vld [vmem:[%s10011_s3 + $0x78] sm:$0xff]  }
 0x119   :  { %v8647_v61 = vld [vmem:[%s10009_s1 + $0x208] sm:$0xff]  }
 0x11a   :  { %7662 = vmatprep.subr.bf16.mxu0 %v512_v60 }
 0x11b   :  { %7663 = vmatpush3.bf16.msra.mxu0 %v512_v60  ;;  %v8646_v60 = vld [vmem:[%s10009_s1 + $0x200] sm:$0xff]  }
 0x11c   :  { %7668 = vmatprep.subr.bf16.mxu0 %v8764_v0 }
 0x11e   :  { %7665 = vmatmul.mubr.msk.bf16.vlgmr.msra.gmra.mrb[4].mxu0 %vm285_vm1, %v8598_v62  ;;  %v8648_v62 = vld [vmem:[%s10009_s1 + $0x210] sm:$0xff]  }
 0x11f   :  { %7669 = vmatpush3.bf16.msra.mxu0 %v8599_v63  ;;  %7684 = vmatprep.mubr.msk.bf16.mxu0 %vm8765_vm0, %v8764_v0  ;;  %v8649_v63 = vld [vmem:[%s10009_s1 + $0x218] sm:$0xff]  }
 0x120   :  { %7670 = vmatprep.subr.bf16.mxu0 %v8764_v0 }
 0x123   :  { %7671 = vmatpush3.bf16.msra.mxu0 %v8601_v1  ;;  %v8650_v1 = vld [vmem:[%s10009_s1 + $0x220] sm:$0xff]  }
 0x124   :  { %7672 = vmatprep.subr.bf16.mxu0 %v8764_v0 }
 0x127   :  { %7673 = vmatpush3.bf16.msra.mxu0 %v8603_v2  ;;  %v8651_v2 = vld [vmem:[%s10009_s1 + $0x228] sm:$0xff]  }
 0x128   :  { %7674 = vmatprep.subr.bf16.mxu0 %v8764_v0 }
 0x12b   :  { %7675 = vmatpush3.bf16.msra.mxu0 %v8605_v3  ;;  %v8652_v3 = vld [vmem:[%s10009_s1 + $0x230] sm:$0xff]  }
 0x12c   :  { %7676 = vmatprep.subr.bf16.mxu0 %v8764_v0 }
 0x12f   :  { %7677 = vmatpush3.bf16.msra.mxu0 %v8607_v4  ;;  %v8653_v4 = vld [vmem:[%s10009_s1 + $0x238] sm:$0xff]  }
 0x130   :  { %7678 = vmatprep.subr.bf16.mxu0 %v8764_v0 }
 0x133   :  { %7679 = vmatpush3.bf16.msra.mxu0 %v8609_v5  ;;  %v8654_v5 = vld [vmem:[%s10011_s3 + $0x80] sm:$0xff]  }
 0x134   :  { %7680 = vmatprep.subr.bf16.mxu0 %v8764_v0 }
 0x135   :  { %v867_v8 = vpop.f32.mrb[8].mxu1 }
 0x136   :  { %v7712_v9 = vpop.f32.mrb[9].mxu1 }
 0x137   :  { %7681 = vmatpush3.bf16.msra.mxu0 %v8611_v6  ;;  %v870_v10 = vpop.f32.mrb[10].mxu1  ;;  %v8766_v6 = vmov 0   ;;  %v2982_v9 = vld [vmem:[%s10013_s6] sm:$0xff] }
 0x138   :  { %7682 = vmatprep.subr.bf16.mxu0 %v8764_v0  ;;  %v874_v11 = vpack.c.bf16 %v870_v10, %v867_v8  ;;  %v7713_v12 = vpop.f32.mrb[11].mxu1  ;;  %8563 = vset.pattern.permute.xlu0 %v8766_v6  ;;  %v1676_v8 = vld [vmem:[%s10012_s4 + $0x18] sm:$0xff]  ;;  %v2983_v10 = vld [vmem:[%s10013_s6 + $0x8] sm:$0xff] }
 0x139   :  { %8564 = vset.pattern.permute.xlu1 %v8766_v6  ;;  %v2985_v12 = vld [vmem:[%s10013_s6 + $0x18] sm:$0xff] }
 0x13b   :  { %7683 = vmatpush3.bf16.msra.mxu0 %v8613_v7  ;;  %v1673_v7 = vld [vmem:[%s10012_s4] sm:$0xff] }
 0x13c   :  { %1679 = vperm.xlu0 %8563, %v1673_v7  }
 0x13e   :  { %7685 = vmatmul.mubr.bf16.vlgmr.msra.gmra.mrb[8].mxu0 %v8903_v16 }
 0x13f   :  { %7690 = vmatprep.mubr.msk.bf16.mxu0 %vm285_vm1, %v8620_v13  ;;  %v4142_v13 = vld [vmem:[%s10014_s8] sm:$0xff] }
 0x155   :  { %v1048_v14 = vpop.f32.mrb[12].mxu1 }
 0x156   :  { %v7738_v15 = vpop.f32.mrb[13].mxu1 }
 0x157   :  { %v1051_v17 = vpop.f32.mrb[14].mxu1  ;;  %v4144_v15 = vld [vmem:[%s10014_s8 + $0x10] sm:$0xff] }
 0x158   :  { %v1055_v18 = vpack.c.bf16 %v1051_v17, %v1048_v14  ;;  %v7739_v19 = vpop.f32.mrb[15].mxu1  ;;  %v4143_v14 = vld [vmem:[%s10014_s8 + $0x8] sm:$0xff]  ;;  %v4145_v17 = vld [vmem:[%s10014_s8 + $0x18] sm:$0xff] }
 0x159   :  { %v5303_v19 = vld [vmem:[%s10015_s10 + $0x8] sm:$0xff] }
 0x175   :  { %v1410_v47 = vpop.f32.mrb[16].mxu1 }
 0x176   :  { %v7790_v48 = vpop.f32.mrb[17].mxu1 }
 0x177   :  { %v1413_v49 = vpop.f32.mrb[18].mxu1 }
 0x178   :  { %v1417_v50 = vpack.c.bf16 %v1413_v49, %v1410_v47  ;;  %v7791_v51 = vpop.f32.mrb[19].mxu1 }
 0x211   :  { %v686_v28 = vpop.f32.mrb[8].mxu0 }
 0x212   :  { %v7686_v29 = vpop.f32.mrb[9].mxu0 }
 0x213   :  { %v689_v30 = vpop.f32.mrb[10].mxu0 }
 0x214   :  { %v693_v31 = vpack.c.bf16 %v689_v30, %v686_v28  ;;  %v7687_v32 = vpop.f32.mrb[11].mxu0 }
 0x215   :  { %v9292_v32 = vld [vmem:[%s10017_s2] sm:$0xff]  }
 0x216   :  { %7688 = vmatprep.subr.bf16.mxu0 %v693_v31  ;;  %7824 = vmatprep.subr.bf16.mxu1 %v9292_v32 }
 0x217   :  { %7689 = vmatpush3.bf16.msra.mxu0 %v693_v31  ;;  %v8655_v31 = vld [vmem:[%s10011_s3 + $0x88] sm:$0xff]   ;;  %7825 = vmatpush3.bf16.msra.mxu1 %v9292_v32 }
 0x218   :  { %7714 = vmatprep.subr.bf16.mxu0 %v874_v11 }
 0x21a   :  { %7691 = vmatmul.mubr.msk.bf16.vlgmr.msra.gmra.mrb[4].mxu0 %vm285_vm1, %v8621_v33  ;;  %v9297_v33 = vld [vmem:[%s10017_s2 + $0x30] sm:$0xff]  }
 0x21b   :  { %7715 = vmatpush3.bf16.msra.mxu0 %v874_v11  ;;  %7716 = vmatprep.mubr.msk.bf16.mxu0 %vm285_vm1, %v8622_v34  ;;  %v2984_v11 = vld [vmem:[%s10013_s6 + $0x10] sm:$0xff]  ;;  %v9306_v34 = vld [vmem:[%s10017_s2 + $0x8] sm:$0xff]  }
 0x21c   :  { %7740 = vmatprep.subr.bf16.mxu0 %v1055_v18  ;;  %7826 = vmatprep.subr.bf16.mxu1 %v9306_v34 }
 0x21d   :  { %7827 = vmatpush3.bf16.msra.mxu1 %v9306_v34 }
 0x226   :  { %7717 = vmatmul.mubr.msk.bf16.vlgmr.msra.gmra.mrb[4].mxu0 %vm285_vm1, %v8623_v35  ;;  %v9311_v35 = vld [vmem:[%s10017_s2 + $0x38] sm:$0xff]  }
 0x227   :  { %7741 = vmatpush3.bf16.msra.mxu0 %v1055_v18  ;;  %7742 = vmatprep.mubr.msk.bf16.mxu0 %vm285_vm1, %v8624_v36  ;;  %v5302_v18 = vld [vmem:[%s10015_s10] sm:$0xff]  ;;  %v9320_v36 = vld [vmem:[%s10017_s2 + $0x10] sm:$0xff]  }
 0x228   :  { %7746 = vmatprep.subr.bf16.mxu0 %v8764_v0  ;;  %7832 = vmatprep.subr.bf16.mxu1 %v9320_v36 }
 0x232   :  { %7743 = vmatmul.mubr.msk.bf16.vlgmr.msra.gmra.mrb[4].mxu0 %vm285_vm1, %v8625_v37  ;;  %v9325_v37 = vld [vmem:[%s10017_s2 + $0x40] sm:$0xff]  }
 0x233   :  { %7747 = vmatpush3.bf16.msra.mxu0 %v8626_v38  ;;  %7762 = vmatprep.mubr.msk.bf16.mxu0 %vm8765_vm0, %v8764_v0 }
 0x234   :  { %7748 = vmatprep.subr.bf16.mxu0 %v8764_v0 }
 0x237   :  { %7749 = vmatpush3.bf16.msra.mxu0 %v8627_v39  ;;  %v1680_v39 = vpop.permute.xlu0 %1679 }
 0x238   :  { %7750 = vmatprep.subr.bf16.mxu0 %v8764_v0 }
 0x23b   :  { %7751 = vmatpush3.bf16.msra.mxu0 %v8628_v40 }
 0x23c   :  { %7752 = vmatprep.subr.bf16.mxu0 %v8764_v0 }
 0x23f   :  { %7753 = vmatpush3.bf16.msra.mxu0 %v8630_v41 }
 0x240   :  { %7754 = vmatprep.subr.bf16.mxu0 %v8764_v0 }
 0x243   :  { %7755 = vmatpush3.bf16.msra.mxu0 %v8632_v42 }
 0x244   :  { %7756 = vmatprep.subr.bf16.mxu0 %v8764_v0 }
 0x247   :  { %7757 = vmatpush3.bf16.msra.mxu0 %v8634_v43 }
 0x248   :  { %7758 = vmatprep.subr.bf16.mxu0 %v8764_v0 }
 0x24b   :  { %7759 = vmatpush3.bf16.msra.mxu0 %v8636_v44 }
 0x24c   :  { %7760 = vmatprep.subr.bf16.mxu0 %v8764_v0 }
 0x24f   :  { %7761 = vmatpush3.bf16.msra.mxu0 %v8638_v45 }
 0x252   :  { %7763 = vmatmul.mubr.bf16.vlgmr.msra.gmra.mrb[12].mxu0 %v8903_v16 }
 0x253   :  { %7768 = vmatprep.mubr.msk.bf16.mxu0 %vm285_vm1, %v8642_v46 }
 0x325   :  { %v1229_v52 = vpop.f32.mrb[12].mxu0 }
 0x326   :  { %v7764_v53 = vpop.f32.mrb[13].mxu0 }
 0x327   :  { %v1232_v54 = vpop.f32.mrb[14].mxu0 }
 0x328   :  { %v1236_v55 = vpack.c.bf16 %v1232_v54, %v1229_v52  ;;  %v7765_v56 = vpop.f32.mrb[15].mxu0 }
 0x329   :  { %v9340_v56 = vld [vmem:[%s10017_s2 + $0x18] sm:$0xff]  }
 0x32a   :  { %7766 = vmatprep.subr.bf16.mxu0 %v1236_v55 }
 0x32b   :  { %7767 = vmatpush3.bf16.msra.mxu0 %v1236_v55 }
 0x32c   :  { %7792 = vmatprep.subr.bf16.mxu0 %v1417_v50 }
 0x32e   :  { %7769 = vmatmul.mubr.msk.bf16.vlgmr.msra.gmra.mrb[4].mxu0 %vm285_vm1, %v8643_v57  ;;  %v9345_v57 = vld [vmem:[%s10017_s2 + $0x48] sm:$0xff]  }
 0x32f   :  { %7793 = vmatpush3.bf16.msra.mxu0 %v1417_v50  ;;  %7794 = vmatprep.mubr.msk.bf16.mxu0 %vm285_vm1, %v8644_v58  ;;  %v9362_v58 = vld [vmem:[%s10017_s2 + $0x50] sm:$0xff]  }
 0x330   :  { %7798 = vmatprep.subr.bf16.mxu0 %v8764_v0 }
 0x33a   :  { %7795 = vmatmul.mubr.msk.bf16.vlgmr.msra.gmra.mrb[4].mxu0 %vm285_vm1, %v8645_v59  ;;  %v9370_v59 = vld [vmem:[%s10017_s2 + $0x58] sm:$0xff]  }
 0x33b   :  { %7799 = vmatpush3.bf16.msra.mxu0 %v8646_v60  ;;  %7814 = vmatprep.mubr.msk.bf16.mxu0 %vm8765_vm0, %v8764_v0  ;;  %v9383_v60 = vld [vmem:[%s10017_s2 + $0x60] sm:$0xff]  }
 0x33c   :  { %7800 = vmatprep.subr.bf16.mxu0 %v8764_v0 }
 0x33f   :  { %7801 = vmatpush3.bf16.msra.mxu0 %v8647_v61  ;;  %v9390_v61 = vld [vmem:[%s10017_s2 + $0x68] sm:$0xff]  }
 0x340   :  { %7802 = vmatprep.subr.bf16.mxu0 %v8764_v0 }
 0x343   :  { %7803 = vmatpush3.bf16.msra.mxu0 %v8648_v62  ;;  %v9401_v62 = vld [vmem:[%s10017_s2 + $0x70] sm:$0xff]  }
 0x344   :  { %7804 = vmatprep.subr.bf16.mxu0 %v8764_v0 }
 0x347   :  { %7805 = vmatpush3.bf16.msra.mxu0 %v8649_v63  ;;  %v9408_v63 = vld [vmem:[%s10017_s2 + $0x78] sm:$0xff]  }
 0x348   :  { %7806 = vmatprep.subr.bf16.mxu0 %v8764_v0 }
 0x34b   :  { %7807 = vmatpush3.bf16.msra.mxu0 %v8650_v1  ;;  %v9419_v1 = vld [vmem:[%s10017_s2 + $0x80] sm:$0xff]  }
 0x34c   :  { %7808 = vmatprep.subr.bf16.mxu0 %v8764_v0 }
 0x34f   :  { %7809 = vmatpush3.bf16.msra.mxu0 %v8651_v2  ;;  %v9426_v2 = vld [vmem:[%s10017_s2 + $0x88] sm:$0xff]  }
 0x350   :  { %7810 = vmatprep.subr.bf16.mxu0 %v8764_v0 }
 0x353   :  { %7811 = vmatpush3.bf16.msra.mxu0 %v8652_v3  ;;  %v8672_v3 = vld [vmem:[%s10018_s5 + $0x10] sm:$0xff]  }
 0x354   :  { %7812 = vmatprep.subr.bf16.mxu0 %v8764_v0  ;;  %v1675_v0 = vld [vmem:[%s10012_s4 + $0x10] sm:$0xff] }
 0x355   :  { %1689 = vperm.xlu1 %8564, %v1675_v0  }
 0x357   :  { %7813 = vmatpush3.bf16.msra.mxu0 %v8653_v4 }
 0x359   :  { %1694 = vperm.xlu1 %8564, %v1676_v8  }
 0x35a   :  { %7815 = vmatmul.mubr.bf16.vlgmr.msra.gmra.mrb[16].mxu0 %v8903_v16  ;;  %v1674_v16 = vld [vmem:[%s10012_s4 + $0x8] sm:$0xff] }
 0x35b   :  { %7820 = vmatprep.mubr.msk.bf16.mxu0 %vm285_vm1, %v8654_v5  ;;  %1684 = vperm.xlu0 %8563, %v1674_v16  }
 0x35d   :  { %2993 = vperm.xlu1 %8564, %v2983_v10  }
 0x35f   :  { %2988 = vperm.xlu0 %8563, %v2982_v9  }
 0x361   :  { %3003 = vperm.xlu1 %8564, %v2985_v12  }
 0x363   :  { %2998 = vperm.xlu0 %8563, %v2984_v11  }
 0x365   :  { %4153 = vperm.xlu1 %8564, %v4143_v14  }
 0x367   :  { %4148 = vperm.xlu0 %8563, %v4142_v13  }
 0x369   :  { %4163 = vperm.xlu1 %8564, %v4145_v17  }
 0x36b   :  { %4158 = vperm.xlu0 %8563, %v4144_v15  }
 0x36d   :  { %5313 = vperm.xlu1 %8564, %v5303_v19  }
 0x36f   :  { %5308 = vperm.xlu0 %8563, %v5302_v18  }
 0x371   :  { %5323 = vperm.xlu1 %8564, %v5305_v21  }
 0x373   :  { %5318 = vperm.xlu0 %8563, %v5304_v20  }
 0x375   :  { %6473 = vperm.xlu1 %8564, %v6463_v23  }
 0x377   :  { %6468 = vperm.xlu0 %8563, %v6462_v22  }
 0x379   :  { %6483 = vperm.xlu1 %8564, %v6465_v25  }
 0x37b   :  { %6478 = vperm.xlu0 %8563, %v6464_v24  }
 0x3d4   :  { %v1690_v38 = vpop.permute.xlu1 %1689 }
 0x3d8   :  { %v1695_v43 = vpop.permute.xlu1 %1694 }
 0x3da   :  { %v1685_v46 = vpop.permute.xlu0 %1684 }
 0x42d   :  { %v1591_v26 = vpop.f32.mrb[16].mxu0 }
 0x42e   :  { %v7816_v27 = vpop.f32.mrb[17].mxu0 }
 0x42f   :  { %v1594_v28 = vpop.f32.mrb[18].mxu0 }
 0x430   :  { %v1598_v29 = vpack.c.bf16 %v1594_v28, %v1591_v26  ;;  %v7817_v30 = vpop.f32.mrb[19].mxu0 }
 0x432   :  { %7818 = vmatprep.subr.bf16.mxu0 %v1598_v29 }
 0x433   :  { %7819 = vmatpush3.bf16.msra.mxu0 %v1598_v29  ;;  %v8673_v29 = vld [vmem:[%s10018_s5 + $0x18] sm:$0xff]  }
 0x434   :  { %7872 = vmatprep.subr.bf16.mxu0 %v9297_v33 }
 0x436   :  { %7821 = vmatmul.mubr.msk.bf16.vlgmr.msra.gmra.mrb[4].mxu0 %vm285_vm1, %v8655_v31  ;;  %v8674_v31 = vld [vmem:[%s10018_s5] sm:$0xff]  }
 0x437   :  { %7873 = vmatpush3.bf16.msra.mxu0 %v9297_v33 }
 0x438   :  { %7874 = vmatprep.subr.bf16.mxu0 %v9311_v35 }
 0x43b   :  { %7875 = vmatpush3.bf16.msra.mxu0 %v9311_v35 }
 0x43c   :  { %7888 = vmatprep.subr.bf16.mxu0 %v9325_v37 }
 0x509   :  { %v7822_v40 = vpop.f32.mrb[4].mxu0 }
 0x50a   :  { %v1699_v41 = vadd.f32 %v7822_v40, %v1690_v38  ;;  %v1654_v42 = vpop.f32.mrb[5].mxu0 }
 0x50b   :  { %v1697_v44 = vadd.f32 %v1680_v39, %v1654_v42  ;;  %v7823_v45 = vpop.f32.mrb[6].mxu0 }
 0x50c   :  { %v1700_v47 = vadd.f32 %v7823_v45, %v1695_v43  ;;  %v1657_v48 = vpop.f32.mrb[7].mxu0  ;;  %v1703_v50 = vmax.f32 %v1699_v41, 0.0  ;;  %v9469_v41 = vld [vmem:[%s10017_s2 + $0x20] sm:$0xff]  }
 0x50d   :  { %v1698_v49 = vadd.f32 %v1685_v46, %v1657_v48  ;;  %v1701_v52 = vmax.f32 %v1697_v44, 0.0  ;;  %v8675_v48 = vld [vmem:[%s10018_s5 + $0x8] sm:$0xff]  }
 0x50e   :  { %v1704_v51 = vmax.f32 %v1700_v47, 0.0 }
 0x50f   :  { %v1702_v53 = vmax.f32 %v1698_v49, 0.0  ;;  %v9480_v49 = vld [vmem:[%s10017_s2 + $0x28] sm:$0xff]  }
 0x510   :  { %v9329_v54 = vpack.c.bf16 %v1704_v51, %v1703_v50 }
 0x511   :  { %v9331_v55 = vpack.c.bf16 %v1702_v53, %v1701_v52 }
 0x513   :  { %7828 = vmatprep.mubr.msk.bf16.mxu1 %vm1723_vm2, %v9331_v55  ;;  %7876 = vmatprep.mubr.msk.bf16.mxu0 %vm1723_vm2, %v9331_v55 }
 0x514   :  { %7829 = vmatmul.mubr.msk.bf16.vlgmr.msra.gmra.mrb[20].mxu1 %vm1723_vm2, %v9329_v54  ;;  %7877 = vmatmul.mubr.msk.bf16.vlgmr.msra.gmra.mrb[20].mxu0 %vm1723_vm2, %v9329_v54 }
 0x515   :  { %7833 = vmatpush3.bf16.msra.mxu1 %v9320_v36  ;;  %7836 = vmatprep.mubr.msk.bf16.mxu1 %vm1723_vm2, %v9331_v55 }
 0x516   :  { %7889 = vmatpush3.bf16.msra.mxu0 %v9325_v37  ;;  %7892 = vmatprep.mubr.msk.bf16.mxu0 %vm1723_vm2, %v9331_v55 }
 0x517   :  { %7834 = vmatprep.subr.bf16.mxu1 %v9340_v56  ;;  %7890 = vmatprep.subr.bf16.mxu0 %v9345_v57 }
 0x519   :  { %7835 = vmatpush3.bf16.msra.mxu1 %v9340_v56 }
 0x51a   :  { %7891 = vmatpush3.bf16.msra.mxu0 %v9345_v57 }
 0x51b   :  { %7904 = vmatprep.subr.bf16.mxu0 %v9362_v58 }
 0x51c   :  { %7837 = vmatmul.mubr.msk.bf16.vlgmr.msra.gmra.mrb[24].mxu1 %vm1723_vm2, %v9329_v54 }
 0x51d   :  { %7893 = vmatmul.mubr.msk.bf16.vlgmr.msra.gmra.mrb[24].mxu0 %vm1723_vm2, %v9329_v54  ;;  %7844 = vmatprep.mubr.msk.bf16.mxu1 %vm1723_vm2, %v8672_v3 }
 0x51e   :  { %7905 = vmatpush3.bf16.msra.mxu0 %v9362_v58  ;;  %7908 = vmatprep.mubr.msk.bf16.mxu0 %vm1723_vm2, %v9331_v55 }
 0x51f   :  { %7906 = vmatprep.subr.bf16.mxu0 %v9370_v59 }
 0x522   :  { %7907 = vmatpush3.bf16.msra.mxu0 %v9370_v59 }
 0x523   :  { %7920 = vmatprep.subr.bf16.mxu0 %v9383_v60 }
 0x525   :  { %7909 = vmatmul.mubr.msk.bf16.vlgmr.msra.gmra.mrb[28].mxu0 %vm1723_vm2, %v9329_v54 }
 0x526   :  { %7921 = vmatpush3.bf16.msra.mxu0 %v9383_v60  ;;  %7924 = vmatprep.mubr.msk.bf16.mxu0 %vm1723_vm2, %v9331_v55 }
 0x527   :  { %7922 = vmatprep.subr.bf16.mxu0 %v9390_v61 }
 0x52a   :  { %7923 = vmatpush3.bf16.msra.mxu0 %v9390_v61 }
 0x52b   :  { %7936 = vmatprep.subr.bf16.mxu0 %v9401_v62 }
 0x52d   :  { %7925 = vmatmul.mubr.msk.bf16.vlgmr.msra.gmra.mrb[32].mxu0 %vm1723_vm2, %v9329_v54 }
 0x52e   :  { %7937 = vmatpush3.bf16.msra.mxu0 %v9401_v62  ;;  %7940 = vmatprep.mubr.msk.bf16.mxu0 %vm1723_vm2, %v9331_v55 }
 0x52f   :  { %7938 = vmatprep.subr.bf16.mxu0 %v9408_v63 }
 0x532   :  { %7939 = vmatpush3.bf16.msra.mxu0 %v9408_v63 }
 0x533   :  { %7952 = vmatprep.subr.bf16.mxu0 %v9419_v1 }
 0x535   :  { %7941 = vmatmul.mubr.msk.bf16.vlgmr.msra.gmra.mrb[36].mxu0 %vm1723_vm2, %v9329_v54 }
 0x536   :  { %7953 = vmatpush3.bf16.msra.mxu0 %v9419_v1  ;;  %7956 = vmatprep.mubr.msk.bf16.mxu0 %vm1723_vm2, %v9331_v55 }
 0x537   :  { %7954 = vmatprep.subr.bf16.mxu0 %v9426_v2 }
 0x53a   :  { %7955 = vmatpush3.bf16.msra.mxu0 %v9426_v2 }
 0x53b   :  { %7968 = vmatprep.subr.bf16.mxu0 %v9292_v32 }
 0x53d   :  { %7957 = vmatmul.mubr.msk.bf16.vlgmr.msra.gmra.mrb[40].mxu0 %vm1723_vm2, %v9329_v54 }
 0x53e   :  { %7969 = vmatpush3.bf16.msra.mxu0 %v9292_v32 }
 0x53f   :  { %7970 = vmatprep.subr.bf16.mxu0 %v9306_v34 }
 0x542   :  { %7971 = vmatpush3.bf16.msra.mxu0 %v9306_v34 }
 0x543   :  { %7976 = vmatprep.subr.bf16.mxu0 %v9320_v36 }
 0x5e7   :  { %v7830_v4 = vpop.f32.mrb[20].mxu1  ;;  %v7878_v5 = vpop.f32.mrb[20].mxu0 }
 0x5e8   :  { %v1764_v6 = vpop.f32.mrb[21].mxu1  ;;  %v2181_v7 = vpop.f32.mrb[21].mxu0 }
 0x5e9   :  { %v7831_v0 = vpop.f32.mrb[22].mxu1  ;;  %v7879_v16 = vpop.f32.mrb[22].mxu0 }
 0x5ea   :  { %v1780_v8 = vpack.c.bf16 %v7831_v0, %v7830_v4  ;;  %v9446_v9 = vpack.c.bf16 %v7879_v16, %v7878_v5  ;;  %v1767_v10 = vpop.f32.mrb[23].mxu1  ;;  %v2184_v11 = vpop.f32.mrb[23].mxu0 }
 0x5eb   :  { %v1779_v12 = vpack.c.bf16 %v1767_v10, %v1764_v6  ;;  %v9448_v13 = vpack.c.bf16 %v2184_v11, %v2181_v7  ;;  %v8678_v10 = vld [vmem:[%s10018_s5 + $0x20] sm:$0xff]  }
 0x5ef   :  { %v7838_v14 = vpop.f32.mrb[24].mxu1 }
 0x5f0   :  { %v7894_v15 = vpop.f32.mrb[24].mxu0  ;;  %v1836_v17 = vpop.f32.mrb[25].mxu1 }
 0x5f1   :  { %v2323_v18 = vpop.f32.mrb[25].mxu0  ;;  %v7839_v19 = vpop.f32.mrb[26].mxu1 }
 0x5f2   :  { %v1852_v20 = vpack.c.bf16 %v7839_v19, %v7838_v14  ;;  %v7895_v21 = vpop.f32.mrb[26].mxu0  ;;  %v1839_v22 = vpop.f32.mrb[27].mxu1  ;;  %v8679_v19 = vld [vmem:[%s10018_s5 + $0x28] sm:$0xff]  }
 0x5f3   :  { %v9450_v23 = vpack.c.bf16 %v7895_v21, %v7894_v15  ;;  %v1851_v24 = vpack.c.bf16 %v1839_v22, %v1836_v17  ;;  %v2326_v25 = vpop.f32.mrb[27].mxu0  ;;  %v8681_v21 = vld [vmem:[%s10018_s5 + $0x38] sm:$0xff]   ;;  %v8682_v22 = vld [vmem:[%s10018_s5 + $0x40] sm:$0xff]  }
 0x5f4   :  { %v9452_v26 = vpack.c.bf16 %v2326_v25, %v2323_v18  ;;  %v8687_v25 = vld [vmem:[%s10018_s5 + $0x68] sm:$0xff]  }
 0x5f5   :  { %7840 = vmatprep.subr.bf16.mxu1 %v1851_v24 }
 0x5f6   :  { %7841 = vmatpush3.bf16.msra.mxu1 %v1851_v24  ;;  %v8686_v24 = vld [vmem:[%s10018_s5 + $0x60] sm:$0xff]  }
 0x5f7   :  { %7842 = vmatprep.subr.bf16.mxu1 %v1852_v20 }
 0x5f8   :  { %v7910_v27 = vpop.f32.mrb[28].mxu0 }
 0x5f9   :  { %v2465_v28 = vpop.f32.mrb[29].mxu0 }
 0x5fa   :  { %v7911_v30 = vpop.f32.mrb[30].mxu0  ;;  %7843 = vmatpush3.bf16.msra.mxu1 %v1852_v20  ;;  %v8680_v20 = vld [vmem:[%s10018_s5 + $0x30] sm:$0xff]  }
 0x5fb   :  { %v9460_v38 = vpack.c.bf16 %v7911_v30, %v7910_v27  ;;  %v2468_v39 = vpop.f32.mrb[31].mxu0  ;;  %7848 = vmatprep.subr.bf16.mxu1 %v1779_v12  ;;  %v8689_v27 = vld [vmem:[%s10018_s5 + $0x78] sm:$0xff]   ;;  %v2989_v30 = vpop.permute.xlu0 %2988 }
 0x5fc   :  { %v9462_v40 = vpack.c.bf16 %v2468_v39, %v2465_v28  ;;  %v8690_v28 = vld [vmem:[%s10018_s5 + $0x80] sm:$0xff]  }
 0x5fd   :  { %7845 = vmatmul.mubr.msk.bf16.vlgmr.msra.gmra.mrb[28].mxu1 %vm1723_vm2, %v8673_v29  ;;  %v8691_v29 = vld [vmem:[%s10018_s5 + $0x88] sm:$0xff]  }
 0x5fe   :  { %7849 = vmatpush3.bf16.msra.mxu1 %v1779_v12  ;;  %7852 = vmatprep.mubr.msk.bf16.mxu1 %vm1723_vm2, %v8674_v31  ;;  %v2994_v31 = vpop.permute.xlu1 %2993 }
 0x5ff   :  { %7850 = vmatprep.subr.bf16.mxu1 %v1780_v8 }
 0x600   :  { %v7926_v42 = vpop.f32.mrb[32].mxu0 }
 0x601   :  { %v2607_v43 = vpop.f32.mrb[33].mxu0 }
 0x602   :  { %v7927_v44 = vpop.f32.mrb[34].mxu0  ;;  %7851 = vmatpush3.bf16.msra.mxu1 %v1780_v8 }
 0x603   :  { %v9471_v45 = vpack.c.bf16 %v7927_v44, %v7926_v42  ;;  %v2610_v46 = vpop.f32.mrb[35].mxu0  ;;  %7856 = vmatprep.subr.bf16.mxu1 %v9469_v41 }
 0x604   :  { %v2622_v47 = vpack.c.bf16 %v2610_v46, %v2607_v43  ;;  %v3004_v43 = vpop.permute.xlu1 %3003 }
 0x608   :  { %v7942_v50 = vpop.f32.mrb[36].mxu0 }
 0x609   :  { %v2749_v51 = vpop.f32.mrb[37].mxu0  ;;  %7853 = vmatmul.mubr.msk.bf16.vlgmr.msra.gmra.mrb[28].mxu1 %vm1723_vm2, %v8675_v48 }
 0x60a   :  { %v7943_v52 = vpop.f32.mrb[38].mxu0  ;;  %7857 = vmatpush3.bf16.msra.mxu1 %v9469_v41  ;;  %7860 = vmatprep.mubr.msk.bf16.mxu1 %vm1723_vm2, %v9331_v55 }
 0x60b   :  { %v2765_v53 = vpack.c.bf16 %v7943_v52, %v7942_v50  ;;  %v2752_v3 = vpop.f32.mrb[39].mxu0  ;;  %7858 = vmatprep.subr.bf16.mxu1 %v9480_v49 }
 0x60c   :  { %v2764_v4 = vpack.c.bf16 %v2752_v3, %v2749_v51 }
 0x60e   :  { %7859 = vmatpush3.bf16.msra.mxu1 %v9480_v49 }
 0x610   :  { %v7958_v5 = vpop.f32.mrb[40].mxu0 }
 0x611   :  { %v2891_v6 = vpop.f32.mrb[41].mxu0  ;;  %7861 = vmatmul.mubr.msk.bf16.vlgmr.msra.gmra.mrb[32].mxu1 %vm1723_vm2, %v9329_v54 }
 0x612   :  { %v7959_v7 = vpop.f32.mrb[42].mxu0  ;;  %7868 = vmatprep.mubr.msk.bf16.mxu1 %vm1723_vm2, %v8678_v10 }
 0x613   :  { %v2907_v0 = vpack.c.bf16 %v7959_v7, %v7958_v5  ;;  %v2894_v16 = vpop.f32.mrb[43].mxu0 }
 0x614   :  { %v2906_v8 = vpack.c.bf16 %v2894_v16, %v2891_v6 }
 0x6e4   :  { %v7862_v11 = vpop.f32.mrb[32].mxu1 }
 0x6e5   :  { %v2039_v12 = vpop.f32.mrb[33].mxu1 }
 0x6e6   :  { %v7863_v14 = vpop.f32.mrb[34].mxu1 }
 0x6e7   :  { %v2055_v15 = vpack.c.bf16 %v7863_v14, %v7862_v11  ;;  %v2042_v17 = vpop.f32.mrb[35].mxu1 }
 0x6e8   :  { %v2054_v18 = vpack.c.bf16 %v2042_v17, %v2039_v12 }
 0x6ea   :  { %7864 = vmatprep.subr.bf16.mxu1 %v2054_v18 }
 0x6eb   :  { %7865 = vmatpush3.bf16.msra.mxu1 %v2054_v18 }
 0x6ec   :  { %7866 = vmatprep.subr.bf16.mxu1 %v2055_v15 }
 0x6ef   :  { %7867 = vmatpush3.bf16.msra.mxu1 %v2055_v15  ;;  %v8693_v15 = vld [vmem:[%s10019_s7 + $0x18] sm:$0xff]  }
 0x6f0   :  { %7880 = vmatprep.subr.bf16.mxu1 %v9448_v13 }
 0x6f2   :  { %7869 = vmatmul.mubr.msk.bf16.vlgmr.msra.gmra.mrb[28].mxu1 %vm1723_vm2, %v8679_v19  ;;  %v8694_v19 = vld [vmem:[%s10019_s7] sm:$0xff]  }
 0x6f3   :  { %7881 = vmatpush3.bf16.msra.mxu1 %v9448_v13  ;;  %7884 = vmatprep.mubr.msk.bf16.mxu1 %vm1723_vm2, %v8680_v20  ;;  %v8684_v13 = vld [vmem:[%s10018_s5 + $0x50] sm:$0xff]  }
 0x6f4   :  { %7882 = vmatprep.subr.bf16.mxu1 %v9446_v9 }
 0x6f7   :  { %7883 = vmatpush3.bf16.msra.mxu1 %v9446_v9  ;;  %v8683_v9 = vld [vmem:[%s10018_s5 + $0x48] sm:$0xff]  }
 0x6f8   :  { %7896 = vmatprep.subr.bf16.mxu1 %v9452_v26 }
 0x6fe   :  { %7885 = vmatmul.mubr.msk.bf16.vlgmr.msra.gmra.mrb[28].mxu1 %vm1723_vm2, %v8681_v21 }
 0x6ff   :  { %7897 = vmatpush3.bf16.msra.mxu1 %v9452_v26  ;;  %7900 = vmatprep.mubr.msk.bf16.mxu1 %vm1723_vm2, %v8682_v22  ;;  %v8688_v26 = vld [vmem:[%s10018_s5 + $0x70] sm:$0xff]  }
 0x700   :  { %7898 = vmatprep.subr.bf16.mxu1 %v9450_v23 }
 0x703   :  { %7899 = vmatpush3.bf16.msra.mxu1 %v9450_v23  ;;  %v8685_v23 = vld [vmem:[%s10018_s5 + $0x58] sm:$0xff]  }
 0x704   :  { %7912 = vmatprep.subr.bf16.mxu1 %v9462_v40 }
 0x70a   :  { %7901 = vmatmul.mubr.msk.bf16.vlgmr.msra.gmra.mrb[28].mxu1 %vm1723_vm2, %v8683_v9 }
 0x70b   :  { %7913 = vmatpush3.bf16.msra.mxu1 %v9462_v40  ;;  %7916 = vmatprep.mubr.msk.bf16.mxu1 %vm1723_vm2, %v8684_v13 }
 0x70c   :  { %7914 = vmatprep.subr.bf16.mxu1 %v9460_v38 }
 0x70f   :  { %7915 = vmatpush3.bf16.msra.mxu1 %v9460_v38  ;;  %v2999_v38 = vpop.permute.xlu0 %2998 }
 0x710   :  { %7928 = vmatprep.subr.bf16.mxu1 %v2622_v47 }
 0x716   :  { %7917 = vmatmul.mubr.msk.bf16.vlgmr.msra.gmra.mrb[28].mxu1 %vm1723_vm2, %v8685_v23 }
 0x717   :  { %7929 = vmatpush3.bf16.msra.mxu1 %v2622_v47  ;;  %7932 = vmatprep.mubr.msk.bf16.mxu1 %vm1723_vm2, %v8686_v24 }
 0x718   :  { %7930 = vmatprep.subr.bf16.mxu1 %v9471_v45 }
 0x71b   :  { %7931 = vmatpush3.bf16.msra.mxu1 %v9471_v45 }
 0x71c   :  { %7944 = vmatprep.subr.bf16.mxu1 %v2764_v4 }
 0x722   :  { %7933 = vmatmul.mubr.msk.bf16.vlgmr.msra.gmra.mrb[28].mxu1 %vm1723_vm2, %v8687_v25  ;;  %v8695_v25 = vld [vmem:[%s10019_s7 + $0x8] sm:$0xff]  }
 0x723   :  { %7945 = vmatpush3.bf16.msra.mxu1 %v2764_v4  ;;  %7948 = vmatprep.mubr.msk.bf16.mxu1 %vm1723_vm2, %v8688_v26  ;;  %v8696_v26 = vld [vmem:[%s10019_s7 + $0x20] sm:$0xff]  }
 0x724   :  { %7946 = vmatprep.subr.bf16.mxu1 %v2765_v53 }
 0x727   :  { %7947 = vmatpush3.bf16.msra.mxu1 %v2765_v53 }
 0x728   :  { %7960 = vmatprep.subr.bf16.mxu1 %v2906_v8 }
 0x72e   :  { %7949 = vmatmul.mubr.msk.bf16.vlgmr.msra.gmra.mrb[28].mxu1 %vm1723_vm2, %v8689_v27 }
 0x72f   :  { %7961 = vmatpush3.bf16.msra.mxu1 %v2906_v8  ;;  %7964 = vmatprep.mubr.msk.bf16.mxu1 %vm1723_vm2, %v8690_v28 }
 0x730   :  { %7962 = vmatprep.subr.bf16.mxu1 %v2907_v0 }
 0x733   :  { %7963 = vmatpush3.bf16.msra.mxu1 %v2907_v0 }
 0x73a   :  { %7965 = vmatmul.mubr.msk.bf16.vlgmr.msra.gmra.mrb[28].mxu1 %vm1723_vm2, %v8691_v29 }
 0x80d   :  { %v7966_v39 = vpop.f32.mrb[28].mxu1 }
 0x80e   :  { %v3008_v40 = vadd.f32 %v7966_v39, %v2999_v38  ;;  %v2963_v42 = vpop.f32.mrb[29].mxu1 }
 0x80f   :  { %v3006_v44 = vadd.f32 %v2989_v30, %v2963_v42  ;;  %v7967_v45 = vpop.f32.mrb[30].mxu1 }
 0x810   :  { %v3009_v46 = vadd.f32 %v7967_v45, %v3004_v43  ;;  %v2966_v47 = vpop.f32.mrb[31].mxu1  ;;  %v3012_v50 = vmax.f32 %v3008_v40, 0.0  ;;  %v8697_v43 = vld [vmem:[%s10019_s7 + $0x28] sm:$0xff]  }
 0x811   :  { %v3007_v48 = vadd.f32 %v2994_v31, %v2966_v47  ;;  %v3010_v52 = vmax.f32 %v3006_v44, 0.0 }
 0x812   :  { %v3013_v51 = vmax.f32 %v3009_v46, 0.0  ;;  %v8698_v46 = vld [vmem:[%s10019_s7 + $0x30] sm:$0xff]  }
 0x813   :  { %v3011_v53 = vmax.f32 %v3007_v48, 0.0 }
 0x814   :  { %v3015_v3 = vpack.c.bf16 %v3013_v51, %v3012_v50 }
 0x815   :  { %v3014_v4 = vpack.c.bf16 %v3011_v53, %v3010_v52 }
 0x817   :  { %7972 = vmatprep.mubr.msk.bf16.mxu0 %vm1723_vm2, %v3014_v4 }
 0x818   :  { %7973 = vmatmul.mubr.msk.bf16.vlgmr.msra.gmra.mrb[44].mxu0 %vm1723_vm2, %v3015_v3 }
 0x819   :  { %7977 = vmatpush3.bf16.msra.mxu0 %v9320_v36  ;;  %7980 = vmatprep.mubr.msk.bf16.mxu0 %vm1723_vm2, %v3014_v4 }
 0x81a   :  { %7978 = vmatprep.subr.bf16.mxu0 %v9340_v56 }
 0x81d   :  { %7979 = vmatpush3.bf16.msra.mxu0 %v9340_v56 }
 0x81e   :  { %8000 = vmatprep.subr.bf16.mxu0 %v9469_v41 }
 0x820   :  { %7981 = vmatmul.mubr.msk.bf16.vlgmr.msra.gmra.mrb[48].mxu0 %vm1723_vm2, %v3015_v3 }
 0x821   :  { %8001 = vmatpush3.bf16.msra.mxu0 %v9469_v41  ;;  %8004 = vmatprep.mubr.msk.bf16.mxu0 %vm1723_vm2, %v3014_v4 }
 0x822   :  { %8002 = vmatprep.subr.bf16.mxu0 %v9480_v49 }
 0x825   :  { %8003 = vmatpush3.bf16.msra.mxu0 %v9480_v49 }
 0x826   :  { %8016 = vmatprep.subr.bf16.mxu0 %v9297_v33 }
 0x828   :  { %8005 = vmatmul.mubr.msk.bf16.vlgmr.msra.gmra.mrb[52].mxu0 %vm1723_vm2, %v3015_v3 }
 0x829   :  { %8017 = vmatpush3.bf16.msra.mxu0 %v9297_v33  ;;  %8020 = vmatprep.mubr.msk.bf16.mxu0 %vm1723_vm2, %v3014_v4  ;;  %v8692_v33 = vld [vmem:[%s10019_s7 + $0x10] sm:$0xff]  }
 0x82a   :  { %8018 = vmatprep.subr.bf16.mxu0 %v9311_v35  ;;  %7988 = vmatprep.mubr.msk.bf16.mxu1 %vm1723_vm2, %v8692_v33  ;;  %v8700_v33 = vld [vmem:[%s10019_s7 + $0x40] sm:$0xff]  }
 0x82d   :  { %8019 = vmatpush3.bf16.msra.mxu0 %v9311_v35 }
 0x82e   :  { %8032 = vmatprep.subr.bf16.mxu0 %v9325_v37 }
 0x830   :  { %8021 = vmatmul.mubr.msk.bf16.vlgmr.msra.gmra.mrb[56].mxu0 %vm1723_vm2, %v3015_v3 }
 0x831   :  { %8033 = vmatpush3.bf16.msra.mxu0 %v9325_v37  ;;  %8036 = vmatprep.mubr.msk.bf16.mxu0 %vm1723_vm2, %v3014_v4 }
 0x832   :  { %8034 = vmatprep.subr.bf16.mxu0 %v9345_v57 }
 0x835   :  { %8035 = vmatpush3.bf16.msra.mxu0 %v9345_v57 }
 0x836   :  { %8048 = vmatprep.subr.bf16.mxu0 %v9362_v58 }
 0x838   :  { %8037 = vmatmul.mubr.msk.bf16.vlgmr.msra.gmra.mrb[60].mxu0 %vm1723_vm2, %v3015_v3 }
 0x839   :  { %8049 = vmatpush3.bf16.msra.mxu0 %v9362_v58  ;;  %8052 = vmatprep.mubr.msk.bf16.mxu0 %vm1723_vm2, %v3014_v4 }
 0x83a   :  { %8050 = vmatprep.subr.bf16.mxu0 %v9370_v59 }
 0x83d   :  { %8051 = vmatpush3.bf16.msra.mxu0 %v9370_v59 }
 0x83e   :  { %8064 = vmatprep.subr.bf16.mxu0 %v9383_v60 }
 0x840   :  { %8053 = vmatmul.mubr.msk.bf16.vlgmr.msra.gmra.mrb[64].mxu0 %vm1723_vm2, %v3015_v3 }
 0x841   :  { %8065 = vmatpush3.bf16.msra.mxu0 %v9383_v60  ;;  %8068 = vmatprep.mubr.msk.bf16.mxu0 %vm1723_vm2, %v3014_v4 }
 0x842   :  { %8066 = vmatprep.subr.bf16.mxu0 %v9390_v61 }
 0x845   :  { %8067 = vmatpush3.bf16.msra.mxu0 %v9390_v61 }
 0x846   :  { %8080 = vmatprep.subr.bf16.mxu0 %v9401_v62 }
 0x848   :  { %8069 = vmatmul.mubr.msk.bf16.vlgmr.msra.gmra.mrb[68].mxu0 %vm1723_vm2, %v3015_v3 }
 0x849   :  { %8081 = vmatpush3.bf16.msra.mxu0 %v9401_v62  ;;  %8084 = vmatprep.mubr.msk.bf16.mxu0 %vm1723_vm2, %v3014_v4 }
 0x84a   :  { %8082 = vmatprep.subr.bf16.mxu0 %v9408_v63 }
 0x84d   :  { %8083 = vmatpush3.bf16.msra.mxu0 %v9408_v63 }
 0x84e   :  { %8096 = vmatprep.subr.bf16.mxu0 %v9419_v1 }
 0x850   :  { %8085 = vmatmul.mubr.msk.bf16.vlgmr.msra.gmra.mrb[72].mxu0 %vm1723_vm2, %v3015_v3 }
 0x851   :  { %8097 = vmatpush3.bf16.msra.mxu0 %v9419_v1  ;;  %8100 = vmatprep.mubr.msk.bf16.mxu0 %vm1723_vm2, %v3014_v4  ;;  %v8699_v4 = vld [vmem:[%s10019_s7 + $0x38] sm:$0xff]  }
 0x852   :  { %8098 = vmatprep.subr.bf16.mxu0 %v9426_v2 }
 0x855   :  { %8099 = vmatpush3.bf16.msra.mxu0 %v9426_v2 }
 0x856   :  { %8112 = vmatprep.subr.bf16.mxu0 %v9292_v32 }
 0x858   :  { %8101 = vmatmul.mubr.msk.bf16.vlgmr.msra.gmra.mrb[76].mxu0 %vm1723_vm2, %v3015_v3 }
 0x859   :  { %8113 = vmatpush3.bf16.msra.mxu0 %v9292_v32 }
 0x85a   :  { %8114 = vmatprep.subr.bf16.mxu0 %v9306_v34 }
 0x85d   :  { %8115 = vmatpush3.bf16.msra.mxu0 %v9306_v34 }
 0x85e   :  { %8120 = vmatprep.subr.bf16.mxu0 %v9320_v36 }
 0x8eb   :  { %v7974_v35 = vpop.f32.mrb[44].mxu0 }
 0x8ec   :  { %v3060_v37 = vpop.f32.mrb[45].mxu0 }
 0x8ed   :  { %v7975_v5 = vpop.f32.mrb[46].mxu0 }
 0x8ee   :  { %v3076_v6 = vpack.c.bf16 %v7975_v5, %v7974_v35  ;;  %v3063_v7 = vpop.f32.mrb[47].mxu0 }
 0x8ef   :  { %v3075_v0 = vpack.c.bf16 %v3063_v7, %v3060_v37 }
 0x8f3   :  { %v7982_v16 = vpop.f32.mrb[48].mxu0 }
 0x8f4   :  { %v3115_v32 = vpop.f32.mrb[49].mxu0 }
 0x8f5   :  { %v7983_v8 = vpop.f32.mrb[50].mxu0 }
 0x8f6   :  { %v3131_v10 = vpack.c.bf16 %v7983_v8, %v7982_v16  ;;  %v3118_v11 = vpop.f32.mrb[51].mxu0 }
 0x8f7   :  { %v3130_v34 = vpack.c.bf16 %v3118_v11, %v3115_v32 }
 0x8f9   :  { %7984 = vmatprep.subr.bf16.mxu1 %v3130_v34 }
 0x8fa   :  { %7985 = vmatpush3.bf16.msra.mxu1 %v3130_v34 }
 0x8fb   :  { %7986 = vmatprep.subr.bf16.mxu1 %v3131_v10  ;;  %v8006_v36 = vpop.f32.mrb[52].mxu0 }
 0x8fc   :  { %v3301_v12 = vpop.f32.mrb[53].mxu0 }
 0x8fd   :  { %v8007_v14 = vpop.f32.mrb[54].mxu0 }
 0x8fe   :  { %v3317_v17 = vpack.c.bf16 %v8007_v14, %v8006_v36  ;;  %7987 = vmatpush3.bf16.msra.mxu1 %v3131_v10  ;;  %v3304_v18 = vpop.f32.mrb[55].mxu0  ;;  %v8701_v10 = vld [vmem:[%s10019_s7 + $0x48] sm:$0xff]   ;;  %v8702_v36 = vld [vmem:[%s10019_s7 + $0x50] sm:$0xff]   ;;  %v8703_v14 = vld [vmem:[%s10019_s7 + $0x58] sm:$0xff]  }
 0x8ff   :  { %v3316_v20 = vpack.c.bf16 %v3304_v18, %v3301_v12  ;;  %7992 = vmatprep.subr.bf16.mxu1 %v3075_v0  ;;  %v8706_v18 = vld [vmem:[%s10019_s7 + $0x70] sm:$0xff]  }
 0x901   :  { %7989 = vmatmul.mubr.msk.bf16.vlgmr.msra.gmra.mrb[36].mxu1 %vm1723_vm2, %v8693_v15  ;;  %v8704_v15 = vld [vmem:[%s10019_s7 + $0x60] sm:$0xff]  }
 0x902   :  { %7993 = vmatpush3.bf16.msra.mxu1 %v3075_v0  ;;  %7996 = vmatprep.mubr.msk.bf16.mxu1 %vm1723_vm2, %v8694_v19  ;;  %v8707_v19 = vld [vmem:[%s10019_s7 + $0x78] sm:$0xff]  }
 0x903   :  { %7994 = vmatprep.subr.bf16.mxu1 %v3076_v6  ;;  %v8022_v21 = vpop.f32.mrb[56].mxu0 }
 0x904   :  { %v3426_v22 = vpop.f32.mrb[57].mxu0 }
 0x905   :  { %v8023_v9 = vpop.f32.mrb[58].mxu0 }
 0x906   :  { %v3442_v13 = vpack.c.bf16 %v8023_v9, %v8022_v21  ;;  %7995 = vmatpush3.bf16.msra.mxu1 %v3076_v6  ;;  %v3429_v23 = vpop.f32.mrb[59].mxu0  ;;  %v8709_v21 = vld [vmem:[%s10019_s7 + $0x88] sm:$0xff]   ;;  %v4154_v9 = vpop.permute.xlu1 %4153 }
 0x907   :  { %v3441_v24 = vpack.c.bf16 %v3429_v23, %v3426_v22  ;;  %8008 = vmatprep.subr.bf16.mxu1 %v3316_v20  ;;  %v4149_v22 = vpop.permute.xlu0 %4148 }
 0x90b   :  { %v8038_v27 = vpop.f32.mrb[60].mxu0 }
 0x90c   :  { %v3551_v28 = vpop.f32.mrb[61].mxu0 }
 0x90d   :  { %7997 = vmatmul.mubr.msk.bf16.vlgmr.msra.gmra.mrb[36].mxu1 %vm1723_vm2, %v8695_v25  ;;  %v8039_v29 = vpop.f32.mrb[62].mxu0 }
 0x90e   :  { %8009 = vmatpush3.bf16.msra.mxu1 %v3316_v20  ;;  %v3567_v30 = vpack.c.bf16 %v8039_v29, %v8038_v27  ;;  %v3554_v31 = vpop.f32.mrb[63].mxu0  ;;  %8012 = vmatprep.mubr.msk.bf16.mxu1 %vm1723_vm2, %v8696_v26  ;;  %v8708_v20 = vld [vmem:[%s10019_s7 + $0x80] sm:$0xff]   ;;  %v4164_v26 = vpop.permute.xlu1 %4163 }
 0x90f   :  { %8010 = vmatprep.subr.bf16.mxu1 %v3317_v17  ;;  %v3566_v38 = vpack.c.bf16 %v3554_v31, %v3551_v28 }
 0x912   :  { %8011 = vmatpush3.bf16.msra.mxu1 %v3317_v17  ;;  %v8705_v17 = vld [vmem:[%s10019_s7 + $0x68] sm:$0xff]  }
 0x913   :  { %8024 = vmatprep.subr.bf16.mxu1 %v3441_v24  ;;  %v8054_v39 = vpop.f32.mrb[64].mxu0 }
 0x914   :  { %v3676_v40 = vpop.f32.mrb[65].mxu0 }
 0x915   :  { %v8055_v42 = vpop.f32.mrb[66].mxu0 }
 0x916   :  { %v3692_v44 = vpack.c.bf16 %v8055_v42, %v8054_v39  ;;  %v3679_v45 = vpop.f32.mrb[67].mxu0  ;;  %v3019_v42 = vunpack.c.h.bf16 %v9329_v54 }
 0x917   :  { %v3691_v47 = vpack.c.bf16 %v3679_v45, %v3676_v40  ;;  %v3018_v40 = vunpack.c.l.bf16 %v9329_v54  ;;  %v3017_v45 = vunpack.c.h.bf16 %v9331_v55  ;;  %v9701_v54 = vld [vmem:[%s10017_s2 + $0x10] sm:$0xff]  }
 0x919   :  { %8013 = vmatmul.mubr.msk.bf16.vlgmr.msra.gmra.mrb[36].mxu1 %vm1723_vm2, %v8697_v43 }
 0x91a   :  { %8025 = vmatpush3.bf16.msra.mxu1 %v3441_v24  ;;  %8028 = vmatprep.mubr.msk.bf16.mxu1 %vm1723_vm2, %v8698_v46 }
 0x91b   :  { %8026 = vmatprep.subr.bf16.mxu1 %v3442_v13  ;;  %v8070_v48 = vpop.f32.mrb[68].mxu0 }
 0x91c   :  { %v3801_v50 = vpop.f32.mrb[69].mxu0 }
 0x91d   :  { %v8071_v51 = vpop.f32.mrb[70].mxu0 }
 0x91e   :  { %8027 = vmatpush3.bf16.msra.mxu1 %v3442_v13  ;;  %v3817_v52 = vpack.c.bf16 %v8071_v51, %v8070_v48  ;;  %v3804_v53 = vpop.f32.mrb[71].mxu0  ;;  %v4159_v13 = vpop.permute.xlu0 %4158 }
 0x91f   :  { %8040 = vmatprep.subr.bf16.mxu1 %v3566_v38  ;;  %v3816_v3 = vpack.c.bf16 %v3804_v53, %v3801_v50 }
 0x923   :  { %v8086_v35 = vpop.f32.mrb[72].mxu0 }
 0x924   :  { %v3926_v37 = vpop.f32.mrb[73].mxu0 }
 0x925   :  { %8029 = vmatmul.mubr.msk.bf16.vlgmr.msra.gmra.mrb[36].mxu1 %vm1723_vm2, %v8699_v4  ;;  %v8087_v5 = vpop.f32.mrb[74].mxu0 }
 0x926   :  { %8041 = vmatpush3.bf16.msra.mxu1 %v3566_v38  ;;  %v3942_v6 = vpack.c.bf16 %v8087_v5, %v8086_v35  ;;  %v3929_v7 = vpop.f32.mrb[75].mxu0  ;;  %8044 = vmatprep.mubr.msk.bf16.mxu1 %vm1723_vm2, %v8700_v33 }
 0x927   :  { %8042 = vmatprep.subr.bf16.mxu1 %v3567_v30  ;;  %v3941_v0 = vpack.c.bf16 %v3929_v7, %v3926_v37 }
 0x92a   :  { %8043 = vmatpush3.bf16.msra.mxu1 %v3567_v30 }
 0x92b   :  { %8056 = vmatprep.subr.bf16.mxu1 %v3691_v47  ;;  %v8102_v16 = vpop.f32.mrb[76].mxu0 }
 0x92c   :  { %v4051_v32 = vpop.f32.mrb[77].mxu0 }
 0x92d   :  { %v8103_v8 = vpop.f32.mrb[78].mxu0 }
 0x92e   :  { %v4067_v11 = vpack.c.bf16 %v8103_v8, %v8102_v16  ;;  %v4054_v34 = vpop.f32.mrb[79].mxu0  ;;  %v8712_v8 = vld [vmem:[%s10020_s9] sm:$0xff]  }
 0x92f   :  { %v4066_v12 = vpack.c.bf16 %v4054_v34, %v4051_v32 }
 0x931   :  { %8045 = vmatmul.mubr.msk.bf16.vlgmr.msra.gmra.mrb[36].mxu1 %vm1723_vm2, %v8701_v10 }
 0x932   :  { %8057 = vmatpush3.bf16.msra.mxu1 %v3691_v47  ;;  %8060 = vmatprep.mubr.msk.bf16.mxu1 %vm1723_vm2, %v8702_v36 }
 0x933   :  { %8058 = vmatprep.subr.bf16.mxu1 %v3692_v44 }
 0x936   :  { %8059 = vmatpush3.bf16.msra.mxu1 %v3692_v44  ;;  %v3016_v44 = vunpack.c.l.bf16 %v9331_v55  ;;  %v9719_v55 = vld [vmem:[%s10017_s2 + $0x30] sm:$0xff]  }
 0x937   :  { %8072 = vmatprep.subr.bf16.mxu1 %v3816_v3 }
 0x93d   :  { %8061 = vmatmul.mubr.msk.bf16.vlgmr.msra.gmra.mrb[36].mxu1 %vm1723_vm2, %v8703_v14 }
 0x93e   :  { %8073 = vmatpush3.bf16.msra.mxu1 %v3816_v3  ;;  %8076 = vmatprep.mubr.msk.bf16.mxu1 %vm1723_vm2, %v8704_v15 }
 0x93f   :  { %8074 = vmatprep.subr.bf16.mxu1 %v3817_v52 }
 0x942   :  { %8075 = vmatpush3.bf16.msra.mxu1 %v3817_v52 }
 0x943   :  { %8088 = vmatprep.subr.bf16.mxu1 %v3941_v0 }
 0x949   :  { %8077 = vmatmul.mubr.msk.bf16.vlgmr.msra.gmra.mrb[36].mxu1 %vm1723_vm2, %v8705_v17  ;;  %v8713_v17 = vld [vmem:[%s10020_s9 + $0x8] sm:$0xff]  }
 0x94a   :  { %8089 = vmatpush3.bf16.msra.mxu1 %v3941_v0  ;;  %8092 = vmatprep.mubr.msk.bf16.mxu1 %vm1723_vm2, %v8706_v18  ;;  %v8711_v0 = vld [vmem:[%s10020_s9 + $0x18] sm:$0xff]   ;;  %v8714_v18 = vld [vmem:[%s10020_s9 + $0x20] sm:$0xff]  }
 0x94b   :  { %8090 = vmatprep.subr.bf16.mxu1 %v3942_v6 }
 0x94e   :  { %8091 = vmatpush3.bf16.msra.mxu1 %v3942_v6 }
 0x94f   :  { %8104 = vmatprep.subr.bf16.mxu1 %v4066_v12 }
 0x955   :  { %8093 = vmatmul.mubr.msk.bf16.vlgmr.msra.gmra.mrb[36].mxu1 %vm1723_vm2, %v8707_v19 }
 0x956   :  { %8105 = vmatpush3.bf16.msra.mxu1 %v4066_v12  ;;  %8108 = vmatprep.mubr.msk.bf16.mxu1 %vm1723_vm2, %v8708_v20 }
 0x957   :  { %8106 = vmatprep.subr.bf16.mxu1 %v4067_v11 }
 0x95a   :  { %8107 = vmatpush3.bf16.msra.mxu1 %v4067_v11 }
 0x961   :  { %8109 = vmatmul.mubr.msk.bf16.vlgmr.msra.gmra.mrb[36].mxu1 %vm1723_vm2, %v8709_v21 }
 0xa34   :  { %v8110_v23 = vpop.f32.mrb[36].mxu1 }
 0xa35   :  { %v4168_v24 = vadd.f32 %v8110_v23, %v4159_v13  ;;  %v4123_v25 = vpop.f32.mrb[37].mxu1 }
 0xa36   :  { %v4166_v27 = vadd.f32 %v4149_v22, %v4123_v25  ;;  %v8111_v28 = vpop.f32.mrb[38].mxu1 }
 0xa37   :  { %v4172_v29 = vmax.f32 %v4168_v24, 0.0  ;;  %v4169_v30 = vadd.f32 %v8111_v28, %v4164_v26  ;;  %v4126_v31 = vpop.f32.mrb[39].mxu1  ;;  %v8715_v26 = vld [vmem:[%s10020_s9 + $0x28] sm:$0xff]  }
 0xa38   :  { %v4170_v38 = vmax.f32 %v4166_v27, 0.0  ;;  %v4167_v39 = vadd.f32 %v4154_v9, %v4126_v31 }
 0xa39   :  { %v4173_v43 = vmax.f32 %v4169_v30, 0.0  ;;  %v4176_v47 = vadd.f32 %v4172_v29, %v3018_v40  ;;  %v8716_v29 = vld [vmem:[%s10020_s9 + $0x30] sm:$0xff]  }
 0xa3a   :  { %v4171_v46 = vmax.f32 %v4167_v39, 0.0  ;;  %v4174_v50 = vadd.f32 %v4170_v38, %v3016_v44  ;;  %v8717_v44 = vld [vmem:[%s10020_s9 + $0x38] sm:$0xff]  }
 0xa3b   :  { %v4177_v48 = vadd.f32 %v4173_v43, %v3019_v42 }
 0xa3c   :  { %v4175_v51 = vadd.f32 %v4171_v46, %v3017_v45  ;;  %v8718_v45 = vld [vmem:[%s10020_s9 + $0x40] sm:$0xff]  }
 0xa3d   :  { %v9690_v52 = vpack.c.bf16 %v4177_v48, %v4176_v47 }
 0xa3e   :  { %v9692_v53 = vpack.c.bf16 %v4175_v51, %v4174_v50 }
 0xa40   :  { %8116 = vmatprep.mubr.msk.bf16.mxu0 %vm1723_vm2, %v9692_v53 }
 0xa41   :  { %8117 = vmatmul.mubr.msk.bf16.vlgmr.msra.gmra.mrb[80].mxu0 %vm1723_vm2, %v9690_v52 }
 0xa42   :  { %8121 = vmatpush3.bf16.msra.mxu0 %v9701_v54  ;;  %8124 = vmatprep.mubr.msk.bf16.mxu0 %vm1723_vm2, %v9692_v53 }
 0xa43   :  { %8122 = vmatprep.subr.bf16.mxu0 %v9340_v56 }
 0xa46   :  { %8123 = vmatpush3.bf16.msra.mxu0 %v9340_v56  ;;  %v9730_v56 = vld [vmem:[%s10017_s2 + $0x38] sm:$0xff]  }
 0xa47   :  { %8144 = vmatprep.subr.bf16.mxu0 %v9469_v41 }
 0xa49   :  { %8125 = vmatmul.mubr.msk.bf16.vlgmr.msra.gmra.mrb[84].mxu0 %vm1723_vm2, %v9690_v52 }
 0xa4a   :  { %8145 = vmatpush3.bf16.msra.mxu0 %v9469_v41  ;;  %8148 = vmatprep.mubr.msk.bf16.mxu0 %vm1723_vm2, %v9692_v53  ;;  %v9737_v41 = vld [vmem:[%s10017_s2 + $0x40] sm:$0xff]  }
 0xa4b   :  { %8146 = vmatprep.subr.bf16.mxu0 %v9480_v49 }
 0xa4e   :  { %8147 = vmatpush3.bf16.msra.mxu0 %v9480_v49 }
 0xa4f   :  { %8160 = vmatprep.subr.bf16.mxu0 %v9719_v55 }
 0xa51   :  { %8149 = vmatmul.mubr.msk.bf16.vlgmr.msra.gmra.mrb[88].mxu0 %vm1723_vm2, %v9690_v52 }
 0xa52   :  { %8161 = vmatpush3.bf16.msra.mxu0 %v9719_v55  ;;  %8164 = vmatprep.mubr.msk.bf16.mxu0 %vm1723_vm2, %v9692_v53 }
 0xa53   :  { %8162 = vmatprep.subr.bf16.mxu0 %v9730_v56 }
 0xa56   :  { %8163 = vmatpush3.bf16.msra.mxu0 %v9730_v56 }
 0xa57   :  { %8176 = vmatprep.subr.bf16.mxu0 %v9737_v41 }
 0xa59   :  { %8165 = vmatmul.mubr.msk.bf16.vlgmr.msra.gmra.mrb[92].mxu0 %vm1723_vm2, %v9690_v52 }
 0xa5a   :  { %8177 = vmatpush3.bf16.msra.mxu0 %v9737_v41  ;;  %8180 = vmatprep.mubr.msk.bf16.mxu0 %vm1723_vm2, %v9692_v53 }
 0xa5b   :  { %8178 = vmatprep.subr.bf16.mxu0 %v9345_v57 }
 0xa5e   :  { %8179 = vmatpush3.bf16.msra.mxu0 %v9345_v57  ;;  %v8750_v57 = vld [vmem:[%s10017_s2] sm:$0xff]  }
 0xa5f   :  { %8192 = vmatprep.subr.bf16.mxu0 %v9362_v58 }
 0xa61   :  { %8181 = vmatmul.mubr.msk.bf16.vlgmr.msra.gmra.mrb[96].mxu0 %vm1723_vm2, %v9690_v52 }
 0xa62   :  { %8193 = vmatpush3.bf16.msra.mxu0 %v9362_v58  ;;  %8196 = vmatprep.mubr.msk.bf16.mxu0 %vm1723_vm2, %v9692_v53  ;;  %v8751_v58 = vld [vmem:[%s10017_s2 + $0x8] sm:$0xff]  }
 0xa63   :  { %8194 = vmatprep.subr.bf16.mxu0 %v9370_v59 }
 0xa66   :  { %8195 = vmatpush3.bf16.msra.mxu0 %v9370_v59  ;;  %v8710_v59 = vld [vmem:[%s10020_s9 + $0x10] sm:$0xff]  }
 0xa67   :  { %8208 = vmatprep.subr.bf16.mxu0 %v9383_v60  ;;  %8132 = vmatprep.mubr.msk.bf16.mxu1 %vm1723_vm2, %v8710_v59 }
 0xa69   :  { %8197 = vmatmul.mubr.msk.bf16.vlgmr.msra.gmra.mrb[100].mxu0 %vm1723_vm2, %v9690_v52 }
 0xa6a   :  { %8209 = vmatpush3.bf16.msra.mxu0 %v9383_v60  ;;  %8212 = vmatprep.mubr.msk.bf16.mxu0 %vm1723_vm2, %v9692_v53 }
 0xa6b   :  { %8210 = vmatprep.subr.bf16.mxu0 %v9390_v61 }
 0xa6e   :  { %8211 = vmatpush3.bf16.msra.mxu0 %v9390_v61 }
 0xa6f   :  { %8224 = vmatprep.subr.bf16.mxu0 %v9401_v62 }
 0xa71   :  { %8213 = vmatmul.mubr.msk.bf16.vlgmr.msra.gmra.mrb[104].mxu0 %vm1723_vm2, %v9690_v52 }
 0xa72   :  { %8225 = vmatpush3.bf16.msra.mxu0 %v9401_v62  ;;  %8228 = vmatprep.mubr.msk.bf16.mxu0 %vm1723_vm2, %v9692_v53 }
 0xa73   :  { %8226 = vmatprep.subr.bf16.mxu0 %v9408_v63 }
 0xa76   :  { %8227 = vmatpush3.bf16.msra.mxu0 %v9408_v63 }
 0xa77   :  { %8240 = vmatprep.subr.bf16.mxu0 %v9419_v1 }
 0xa79   :  { %8229 = vmatmul.mubr.msk.bf16.vlgmr.msra.gmra.mrb[108].mxu0 %vm1723_vm2, %v9690_v52 }
 0xa7a   :  { %8241 = vmatpush3.bf16.msra.mxu0 %v9419_v1  ;;  %8244 = vmatprep.mubr.msk.bf16.mxu0 %vm1723_vm2, %v9692_v53 }
 0xa7b   :  { %8242 = vmatprep.subr.bf16.mxu0 %v9426_v2 }
 0xa7e   :  { %8243 = vmatpush3.bf16.msra.mxu0 %v9426_v2 }
 0xa7f   :  { %8256 = vmatprep.subr.bf16.mxu0 %v8750_v57 }
 0xa81   :  { %8245 = vmatmul.mubr.msk.bf16.vlgmr.msra.gmra.mrb[112].mxu0 %vm1723_vm2, %v9690_v52 }
 0xa82   :  { %8257 = vmatpush3.bf16.msra.mxu0 %v8750_v57 }
 0xa83   :  { %8258 = vmatprep.subr.bf16.mxu0 %v8751_v58 }
 0xa86   :  { %8259 = vmatpush3.bf16.msra.mxu0 %v8751_v58 }
 0xa87   :  { %8264 = vmatprep.subr.bf16.mxu0 %v9701_v54 }
 0xb14   :  { %v8118_v60 = vpop.f32.mrb[80].mxu0 }
 0xb15   :  { %v4220_v61 = vpop.f32.mrb[81].mxu0 }
 0xb16   :  { %v8119_v62 = vpop.f32.mrb[82].mxu0 }
 0xb17   :  { %v4236_v63 = vpack.c.bf16 %v8119_v62, %v8118_v60  ;;  %v4223_v1 = vpop.f32.mrb[83].mxu0 }
 0xb18   :  { %v4235_v2 = vpack.c.bf16 %v4223_v1, %v4220_v61  ;;  %v8719_v61 = vld [vmem:[%s10020_s9 + $0x48] sm:$0xff]   ;;  %v8720_v1 = vld [vmem:[%s10020_s9 + $0x50] sm:$0xff]  }
 0xb1c   :  { %v8126_v49 = vpop.f32.mrb[84].mxu0 }
 0xb1d   :  { %v4275_v3 = vpop.f32.mrb[85].mxu0 }
 0xb1e   :  { %v8127_v4 = vpop.f32.mrb[86].mxu0 }
 0xb1f   :  { %v4291_v33 = vpack.c.bf16 %v8127_v4, %v8126_v49  ;;  %v4278_v35 = vpop.f32.mrb[87].mxu0  ;;  %v8721_v49 = vld [vmem:[%s10020_s9 + $0x58] sm:$0xff]   ;;  %v8723_v4 = vld [vmem:[%s10020_s9 + $0x68] sm:$0xff]  }
 0xb20   :  { %v4290_v37 = vpack.c.bf16 %v4278_v35, %v4275_v3  ;;  %v8722_v3 = vld [vmem:[%s10020_s9 + $0x60] sm:$0xff]   ;;  %v8725_v35 = vld [vmem:[%s10020_s9 + $0x78] sm:$0xff]  }
 0xb22   :  { %8128 = vmatprep.subr.bf16.mxu1 %v4290_v37 }
 0xb23   :  { %8129 = vmatpush3.bf16.msra.mxu1 %v4290_v37  ;;  %v8726_v37 = vld [vmem:[%s10020_s9 + $0x80] sm:$0xff]  }
 0xb24   :  { %8130 = vmatprep.subr.bf16.mxu1 %v4291_v33  ;;  %v8150_v5 = vpop.f32.mrb[88].mxu0 }
 0xb25   :  { %v4461_v6 = vpop.f32.mrb[89].mxu0 }
 0xb26   :  { %v8151_v7 = vpop.f32.mrb[90].mxu0 }
 0xb27   :  { %v4477_v16 = vpack.c.bf16 %v8151_v7, %v8150_v5  ;;  %8131 = vmatpush3.bf16.msra.mxu1 %v4291_v33  ;;  %v4464_v32 = vpop.f32.mrb[91].mxu0  ;;  %v8724_v33 = vld [vmem:[%s10020_s9 + $0x70] sm:$0xff]   ;;  %v8727_v5 = vld [vmem:[%s10020_s9 + $0x88] sm:$0xff]   ;;  %v5314_v7 = vpop.permute.xlu1 %5313 }
 0xb28   :  { %v4476_v10 = vpack.c.bf16 %v4464_v32, %v4461_v6  ;;  %8136 = vmatprep.subr.bf16.mxu1 %v4235_v2  ;;  %v5309_v6 = vpop.permute.xlu0 %5308 }
 0xb2a   :  { %8133 = vmatmul.mubr.msk.bf16.vlgmr.msra.gmra.mrb[40].mxu1 %vm1723_vm2, %v8711_v0 }
 0xb2b   :  { %8137 = vmatpush3.bf16.msra.mxu1 %v4235_v2  ;;  %8140 = vmatprep.mubr.msk.bf16.mxu1 %vm1723_vm2, %v8712_v8 }
 0xb2c   :  { %8138 = vmatprep.subr.bf16.mxu1 %v4236_v63  ;;  %v8166_v11 = vpop.f32.mrb[92].mxu0  ;;  %v5319_v0 = vpop.permute.xlu0 %5318 }
 0xb2d   :  { %v4586_v34 = vpop.f32.mrb[93].mxu0 }
 0xb2e   :  { %v8167_v36 = vpop.f32.mrb[94].mxu0 }
 0xb2f   :  { %v4602_v12 = vpack.c.bf16 %v8167_v36, %v8166_v11  ;;  %8139 = vmatpush3.bf16.msra.mxu1 %v4236_v63  ;;  %v4589_v14 = vpop.f32.mrb[95].mxu0 }
 0xb30   :  { %v4601_v15 = vpack.c.bf16 %v4589_v14, %v4586_v34  ;;  %8152 = vmatprep.subr.bf16.mxu1 %v4476_v10 }
 0xb34   :  { %v8182_v19 = vpop.f32.mrb[96].mxu0 }
 0xb35   :  { %v4711_v20 = vpop.f32.mrb[97].mxu0 }
 0xb36   :  { %8141 = vmatmul.mubr.msk.bf16.vlgmr.msra.gmra.mrb[40].mxu1 %vm1723_vm2, %v8713_v17  ;;  %v8183_v21 = vpop.f32.mrb[98].mxu0 }
 0xb37   :  { %8153 = vmatpush3.bf16.msra.mxu1 %v4476_v10  ;;  %v4727_v22 = vpack.c.bf16 %v8183_v21, %v8182_v19  ;;  %v4714_v9 = vpop.f32.mrb[99].mxu0  ;;  %8156 = vmatprep.mubr.msk.bf16.mxu1 %vm1723_vm2, %v8714_v18  ;;  %v5324_v10 = vpop.permute.xlu1 %5323 }
 0xb38   :  { %8154 = vmatprep.subr.bf16.mxu1 %v4477_v16  ;;  %v4726_v13 = vpack.c.bf16 %v4714_v9, %v4711_v20  ;;  %v8753_v9 = vld [vmem:[%s10017_s2 + $0x20] sm:$0xff]  }
 0xb3b   :  { %8155 = vmatpush3.bf16.msra.mxu1 %v4477_v16 }
 0xb3c   :  { %8168 = vmatprep.subr.bf16.mxu1 %v4601_v15  ;;  %v8198_v23 = vpop.f32.mrb[100].mxu0 }
 0xb3d   :  { %v4836_v24 = vpop.f32.mrb[101].mxu0 }
 0xb3e   :  { %v8199_v25 = vpop.f32.mrb[102].mxu0 }
 0xb3f   :  { %v4852_v27 = vpack.c.bf16 %v8199_v25, %v8198_v23  ;;  %v4839_v28 = vpop.f32.mrb[103].mxu0  ;;  %v8759_v23 = vld [vmem:[%s10017_s2 + $0x68] sm:$0xff]   ;;  %v8761_v25 = vld [vmem:[%s10017_s2 + $0x78] sm:$0xff]  }
 0xb40   :  { %v4851_v30 = vpack.c.bf16 %v4839_v28, %v4836_v24  ;;  %v8760_v24 = vld [vmem:[%s10017_s2 + $0x70] sm:$0xff]  }
 0xb41   :  { %v8728_v28 = vld [vmem:[%s10021_s11 + $0x10] sm:$0xff]  }
 0xb42   :  { %8157 = vmatmul.mubr.msk.bf16.vlgmr.msra.gmra.mrb[40].mxu1 %vm1723_vm2, %v8715_v26  ;;  %v8762_v26 = vld [vmem:[%s10017_s2 + $0x80] sm:$0xff]  }
 0xb43   :  { %8169 = vmatpush3.bf16.msra.mxu1 %v4601_v15  ;;  %8172 = vmatprep.mubr.msk.bf16.mxu1 %vm1723_vm2, %v8716_v29 }
 0xb44   :  { %8170 = vmatprep.subr.bf16.mxu1 %v4602_v12  ;;  %v8214_v31 = vpop.f32.mrb[104].mxu0 }
 0xb45   :  { %v4961_v38 = vpop.f32.mrb[105].mxu0 }
 0xb46   :  { %v8215_v39 = vpop.f32.mrb[106].mxu0 }
 0xb47   :  { %8171 = vmatpush3.bf16.msra.mxu1 %v4602_v12  ;;  %v4977_v40 = vpack.c.bf16 %v8215_v39, %v8214_v31  ;;  %v4964_v42 = vpop.f32.mrb[107].mxu0 }
 0xb48   :  { %8184 = vmatprep.subr.bf16.mxu1 %v4726_v13  ;;  %v4976_v43 = vpack.c.bf16 %v4964_v42, %v4961_v38 }
 0xb4c   :  { %v8230_v46 = vpop.f32.mrb[108].mxu0 }
 0xb4d   :  { %v5086_v47 = vpop.f32.mrb[109].mxu0 }
 0xb4e   :  { %8173 = vmatmul.mubr.msk.bf16.vlgmr.msra.gmra.mrb[40].mxu1 %vm1723_vm2, %v8717_v44  ;;  %v8231_v48 = vpop.f32.mrb[110].mxu0 }
 0xb4f   :  { %8185 = vmatpush3.bf16.msra.mxu1 %v4726_v13  ;;  %v5102_v50 = vpack.c.bf16 %v8231_v48, %v8230_v46  ;;  %v5089_v51 = vpop.f32.mrb[111].mxu0  ;;  %8188 = vmatprep.mubr.msk.bf16.mxu1 %vm1723_vm2, %v8718_v45  ;;  %v8755_v13 = vld [vmem:[%s10017_s2 + $0x48] sm:$0xff]  }
 0xb50   :  { %8186 = vmatprep.subr.bf16.mxu1 %v4727_v22  ;;  %v5101_v57 = vpack.c.bf16 %v5089_v51, %v5086_v47 }
 0xb53   :  { %8187 = vmatpush3.bf16.msra.mxu1 %v4727_v22  ;;  %v8752_v22 = vld [vmem:[%s10017_s2 + $0x18] sm:$0xff]  }
 0xb54   :  { %8200 = vmatprep.subr.bf16.mxu1 %v4851_v30  ;;  %v8246_v58 = vpop.f32.mrb[112].mxu0 }
 0xb55   :  { %v5211_v59 = vpop.f32.mrb[113].mxu0 }
 0xb56   :  { %v8247_v60 = vpop.f32.mrb[114].mxu0 }
 0xb57   :  { %v5227_v62 = vpack.c.bf16 %v8247_v60, %v8246_v58  ;;  %v5214_v63 = vpop.f32.mrb[115].mxu0  ;;  %v8730_v60 = vld [vmem:[%s10021_s11] sm:$0xff]  }
 0xb58   :  { %v5226_v2 = vpack.c.bf16 %v5214_v63, %v5211_v59 }
 0xb5a   :  { %8189 = vmatmul.mubr.msk.bf16.vlgmr.msra.gmra.mrb[40].mxu1 %vm1723_vm2, %v8719_v61 }
 0xb5b   :  { %8201 = vmatpush3.bf16.msra.mxu1 %v4851_v30  ;;  %8204 = vmatprep.mubr.msk.bf16.mxu1 %vm1723_vm2, %v8720_v1 }
 0xb5c   :  { %8202 = vmatprep.subr.bf16.mxu1 %v4852_v27 }
 0xb5f   :  { %8203 = vmatpush3.bf16.msra.mxu1 %v4852_v27  ;;  %v8763_v27 = vld [vmem:[%s10017_s2 + $0x88] sm:$0xff]  }
 0xb60   :  { %8216 = vmatprep.subr.bf16.mxu1 %v4976_v43 }
 0xb66   :  { %8205 = vmatmul.mubr.msk.bf16.vlgmr.msra.gmra.mrb[40].mxu1 %vm1723_vm2, %v8721_v49 }
 0xb67   :  { %8217 = vmatpush3.bf16.msra.mxu1 %v4976_v43  ;;  %8220 = vmatprep.mubr.msk.bf16.mxu1 %vm1723_vm2, %v8722_v3 }
 0xb68   :  { %8218 = vmatprep.subr.bf16.mxu1 %v4977_v40 }
 0xb6b   :  { %8219 = vmatpush3.bf16.msra.mxu1 %v4977_v40 }
 0xb6c   :  { %8232 = vmatprep.subr.bf16.mxu1 %v5101_v57 }
 0xb72   :  { %8221 = vmatmul.mubr.msk.bf16.vlgmr.msra.gmra.mrb[40].mxu1 %vm1723_vm2, %v8723_v4  ;;  %v8731_v4 = vld [vmem:[%s10021_s11 + $0x8] sm:$0xff]  }
 0xb73   :  { %8233 = vmatpush3.bf16.msra.mxu1 %v5101_v57  ;;  %8236 = vmatprep.mubr.msk.bf16.mxu1 %vm1723_vm2, %v8724_v33  ;;  %v8729_v57 = vld [vmem:[%s10021_s11 + $0x18] sm:$0xff]   ;;  %v8732_v33 = vld [vmem:[%s10021_s11 + $0x20] sm:$0xff]  }
 0xb74   :  { %8234 = vmatprep.subr.bf16.mxu1 %v5102_v50 }
 0xb77   :  { %8235 = vmatpush3.bf16.msra.mxu1 %v5102_v50 }
 0xb78   :  { %8248 = vmatprep.subr.bf16.mxu1 %v5226_v2 }
 0xb7e   :  { %8237 = vmatmul.mubr.msk.bf16.vlgmr.msra.gmra.mrb[40].mxu1 %vm1723_vm2, %v8725_v35 }
 0xb7f   :  { %8249 = vmatpush3.bf16.msra.mxu1 %v5226_v2  ;;  %8252 = vmatprep.mubr.msk.bf16.mxu1 %vm1723_vm2, %v8726_v37 }
 0xb80   :  { %8250 = vmatprep.subr.bf16.mxu1 %v5227_v62 }
 0xb83   :  { %8251 = vmatpush3.bf16.msra.mxu1 %v5227_v62 }
 0xb8a   :  { %8253 = vmatmul.mubr.msk.bf16.vlgmr.msra.gmra.mrb[40].mxu1 %vm1723_vm2, %v8727_v5 }
 0xb8b   :  { %8276 = vmatprep.mubr.msk.bf16.mxu1 %vm1723_vm2, %v8728_v28 }
 0xc5d   :  { %v8254_v16 = vpop.f32.mrb[40].mxu1 }
 0xc5e   :  { %v5328_v32 = vadd.f32 %v8254_v16, %v5319_v0  ;;  %v5283_v8 = vpop.f32.mrb[41].mxu1 }
 0xc5f   :  { %v5326_v11 = vadd.f32 %v5309_v6, %v5283_v8  ;;  %v8255_v34 = vpop.f32.mrb[42].mxu1 }
 0xc60   :  { %v5329_v36 = vadd.f32 %v8255_v34, %v5324_v10  ;;  %v5286_v12 = vpop.f32.mrb[43].mxu1  ;;  %v5332_v15 = vmax.f32 %v5328_v32, 0.0  ;;  %v8733_v10 = vld [vmem:[%s10021_s11 + $0x28] sm:$0xff]  }
 0xc61   :  { %v5327_v14 = vadd.f32 %v5314_v7, %v5286_v12  ;;  %v5330_v18 = vmax.f32 %v5326_v11, 0.0 }
 0xc62   :  { %v5333_v17 = vmax.f32 %v5329_v36, 0.0  ;;  %v8734_v36 = vld [vmem:[%s10021_s11 + $0x30] sm:$0xff]  }
 0xc63   :  { %v5331_v19 = vmax.f32 %v5327_v14, 0.0 }
 0xc64   :  { %v5335_v20 = vpack.c.bf16 %v5333_v17, %v5332_v15 }
 0xc65   :  { %v5334_v21 = vpack.c.bf16 %v5331_v19, %v5330_v18 }
 0xc67   :  { %8260 = vmatprep.mubr.msk.bf16.mxu0 %vm1723_vm2, %v5334_v21 }
 0xc68   :  { %8261 = vmatmul.mubr.msk.bf16.vlgmr.msra.gmra.mrb[116].mxu0 %vm1723_vm2, %v5335_v20 }
 0xc69   :  { %8265 = vmatpush3.bf16.msra.mxu0 %v9701_v54  ;;  %8268 = vmatprep.mubr.msk.bf16.mxu0 %vm1723_vm2, %v5334_v21  ;;  %v8754_v54 = vld [vmem:[%s10017_s2 + $0x28] sm:$0xff]  }
 0xc6a   :  { %8266 = vmatprep.subr.bf16.mxu0 %v8752_v22 }
 0xc6d   :  { %8267 = vmatpush3.bf16.msra.mxu0 %v8752_v22  ;;  %v8736_v22 = vld [vmem:[%s10021_s11 + $0x40] sm:$0xff]  }
 0xc6e   :  { %8288 = vmatprep.subr.bf16.mxu0 %v8753_v9 }
 0xc70   :  { %8269 = vmatmul.mubr.msk.bf16.vlgmr.msra.gmra.mrb[120].mxu0 %vm1723_vm2, %v5335_v20 }
 0xc71   :  { %8289 = vmatpush3.bf16.msra.mxu0 %v8753_v9  ;;  %8292 = vmatprep.mubr.msk.bf16.mxu0 %vm1723_vm2, %v5334_v21 }
 0xc72   :  { %8290 = vmatprep.subr.bf16.mxu0 %v8754_v54 }
 0xc75   :  { %8291 = vmatpush3.bf16.msra.mxu0 %v8754_v54 }
 0xc76   :  { %8304 = vmatprep.subr.bf16.mxu0 %v9719_v55 }
 0xc78   :  { %8293 = vmatmul.mubr.msk.bf16.vlgmr.msra.gmra.mrb[124].mxu0 %vm1723_vm2, %v5335_v20 }
 0xc79   :  { %8305 = vmatpush3.bf16.msra.mxu0 %v9719_v55  ;;  %8308 = vmatprep.mubr.msk.bf16.mxu0 %vm1723_vm2, %v5334_v21  ;;  %v8756_v55 = vld [vmem:[%s10017_s2 + $0x50] sm:$0xff]  }
 0xc7a   :  { %8306 = vmatprep.subr.bf16.mxu0 %v9730_v56 }
 0xc7d   :  { %8307 = vmatpush3.bf16.msra.mxu0 %v9730_v56  ;;  %v8757_v56 = vld [vmem:[%s10017_s2 + $0x58] sm:$0xff]  }
 0xc7e   :  { %8320 = vmatprep.subr.bf16.mxu0 %v9737_v41 }
 0xc80   :  { %8309 = vmatmul.mubr.msk.bf16.vlgmr.msra.gmra.mrb[128].mxu0 %vm1723_vm2, %v5335_v20 }
 0xc81   :  { %8321 = vmatpush3.bf16.msra.mxu0 %v9737_v41  ;;  %8324 = vmatprep.mubr.msk.bf16.mxu0 %vm1723_vm2, %v5334_v21  ;;  %v8758_v41 = vld [vmem:[%s10017_s2 + $0x60] sm:$0xff]  }
 0xc82   :  { %8322 = vmatprep.subr.bf16.mxu0 %v8755_v13 }
 0xc85   :  { %8323 = vmatpush3.bf16.msra.mxu0 %v8755_v13 }
 0xc86   :  { %8336 = vmatprep.subr.bf16.mxu0 %v8756_v55 }
 0xc88   :  { %8325 = vmatmul.mubr.msk.bf16.vlgmr.msra.gmra.mrb[132].mxu0 %vm1723_vm2, %v5335_v20 }
 0xc89   :  { %8337 = vmatpush3.bf16.msra.mxu0 %v8756_v55  ;;  %8340 = vmatprep.mubr.msk.bf16.mxu0 %vm1723_vm2, %v5334_v21 }
 0xc8a   :  { %8338 = vmatprep.subr.bf16.mxu0 %v8757_v56 }
 0xc8d   :  { %8339 = vmatpush3.bf16.msra.mxu0 %v8757_v56 }
 0xc8e   :  { %8352 = vmatprep.subr.bf16.mxu0 %v8758_v41 }
 0xc90   :  { %8341 = vmatmul.mubr.msk.bf16.vlgmr.msra.gmra.mrb[136].mxu0 %vm1723_vm2, %v5335_v20 }
 0xc91   :  { %8353 = vmatpush3.bf16.msra.mxu0 %v8758_v41  ;;  %8356 = vmatprep.mubr.msk.bf16.mxu0 %vm1723_vm2, %v5334_v21 }
 0xc92   :  { %8354 = vmatprep.subr.bf16.mxu0 %v8759_v23 }
 0xc95   :  { %8355 = vmatpush3.bf16.msra.mxu0 %v8759_v23 }
 0xc96   :  { %8368 = vmatprep.subr.bf16.mxu0 %v8760_v24 }
 0xc98   :  { %8357 = vmatmul.mubr.msk.bf16.vlgmr.msra.gmra.mrb[140].mxu0 %vm1723_vm2, %v5335_v20 }
 0xc99   :  { %8369 = vmatpush3.bf16.msra.mxu0 %v8760_v24  ;;  %8372 = vmatprep.mubr.msk.bf16.mxu0 %vm1723_vm2, %v5334_v21 }
 0xc9a   :  { %8370 = vmatprep.subr.bf16.mxu0 %v8761_v25 }
 0xc9d   :  { %8371 = vmatpush3.bf16.msra.mxu0 %v8761_v25 }
 0xc9e   :  { %8384 = vmatprep.subr.bf16.mxu0 %v8762_v26 }
 0xca0   :  { %8373 = vmatmul.mubr.msk.bf16.vlgmr.msra.gmra.mrb[144].mxu0 %vm1723_vm2, %v5335_v20 }
 0xca1   :  { %8385 = vmatpush3.bf16.msra.mxu0 %v8762_v26  ;;  %8388 = vmatprep.mubr.msk.bf16.mxu0 %vm1723_vm2, %v5334_v21  ;;  %v8735_v21 = vld [vmem:[%s10021_s11 + $0x38] sm:$0xff]   ;;  %v8737_v26 = vld [vmem:[%s10021_s11 + $0x48] sm:$0xff]  }
 0xca2   :  { %8386 = vmatprep.subr.bf16.mxu0 %v8763_v27 }
 0xca5   :  { %8387 = vmatpush3.bf16.msra.mxu0 %v8763_v27 }
 0xca8   :  { %8389 = vmatmul.mubr.msk.bf16.vlgmr.msra.gmra.mrb[148].mxu0 %vm1723_vm2, %v5335_v20 }
 0xd3b   :  { %v8262_v29 = vpop.f32.mrb[116].mxu0 }
 0xd3c   :  { %v5380_v30 = vpop.f32.mrb[117].mxu0 }
 0xd3d   :  { %v8263_v31 = vpop.f32.mrb[118].mxu0 }
 0xd3e   :  { %v5396_v38 = vpack.c.bf16 %v8263_v31, %v8262_v29  ;;  %v5383_v39 = vpop.f32.mrb[119].mxu0  ;;  %v8738_v29 = vld [vmem:[%s10021_s11 + $0x50] sm:$0xff]   ;;  %v8739_v31 = vld [vmem:[%s10021_s11 + $0x58] sm:$0xff]  }
 0xd3f   :  { %v5395_v40 = vpack.c.bf16 %v5383_v39, %v5380_v30  ;;  %v8741_v39 = vld [vmem:[%s10021_s11 + $0x68] sm:$0xff]  }
 0xd43   :  { %v8270_v42 = vpop.f32.mrb[120].mxu0 }
 0xd44   :  { %v5435_v43 = vpop.f32.mrb[121].mxu0 }
 0xd45   :  { %v8271_v44 = vpop.f32.mrb[122].mxu0 }
 0xd46   :  { %v5451_v45 = vpack.c.bf16 %v8271_v44, %v8270_v42  ;;  %v5438_v46 = vpop.f32.mrb[123].mxu0  ;;  %v8743_v42 = vld [vmem:[%s10021_s11 + $0x78] sm:$0xff]   ;;  %v8745_v44 = vld [vmem:[%s10021_s11 + $0x88] sm:$0xff]  }
 0xd47   :  { %v5450_v47 = vpack.c.bf16 %v5438_v46, %v5435_v43  ;;  %v8744_v43 = vld [vmem:[%s10021_s11 + $0x80] sm:$0xff]   ;;  %v6474_v46 = vpop.permute.xlu1 %6473 }
 0xd49   :  { %8272 = vmatprep.subr.bf16.mxu1 %v5450_v47 }
 0xd4a   :  { %8273 = vmatpush3.bf16.msra.mxu1 %v5450_v47 }
 0xd4b   :  { %8274 = vmatprep.subr.bf16.mxu1 %v5451_v45  ;;  %v8294_v48 = vpop.f32.mrb[124].mxu0 }
 0xd4c   :  { %v5621_v50 = vpop.f32.mrb[125].mxu0 }
 0xd4d   :  { %v8295_v51 = vpop.f32.mrb[126].mxu0 }
 0xd4e   :  { %v5637_v58 = vpack.c.bf16 %v8295_v51, %v8294_v48  ;;  %8275 = vmatpush3.bf16.msra.mxu1 %v5451_v45  ;;  %v5624_v59 = vpop.f32.mrb[127].mxu0  ;;  %v6469_v45 = vpop.permute.xlu0 %6468 }
 0xd4f   :  { %v5636_v61 = vpack.c.bf16 %v5624_v59, %v5621_v50  ;;  %8280 = vmatprep.subr.bf16.mxu1 %v5395_v40 }
 0xd51   :  { %8277 = vmatmul.mubr.msk.bf16.vlgmr.msra.gmra.mrb[44].mxu1 %vm1723_vm2, %v8729_v57  ;;  %v6484_v57 = vpop.permute.xlu1 %6483 }
 0xd52   :  { %8281 = vmatpush3.bf16.msra.mxu1 %v5395_v40  ;;  %8284 = vmatprep.mubr.msk.bf16.mxu1 %vm1723_vm2, %v8730_v60  ;;  %v8742_v40 = vld [vmem:[%s10021_s11 + $0x70] sm:$0xff]   ;;  %v6479_v47 = vpop.permute.xlu0 %6478  ;;  %v5338_v60 = vunpack.c.l.bf16 %v9690_v52 }
 0xd53   :  { %8282 = vmatprep.subr.bf16.mxu1 %v5396_v38  ;;  %v8310_v62 = vpop.f32.mrb[128].mxu0 }
 0xd54   :  { %v5746_v63 = vpop.f32.mrb[129].mxu0 }
 0xd55   :  { %v8311_v1 = vpop.f32.mrb[130].mxu0 }
 0xd56   :  { %v5762_v2 = vpack.c.bf16 %v8311_v1, %v8310_v62  ;;  %8283 = vmatpush3.bf16.msra.mxu1 %v5396_v38  ;;  %v5749_v49 = vpop.f32.mrb[131].mxu0  ;;  %v8740_v38 = vld [vmem:[%s10021_s11 + $0x60] sm:$0xff]   ;;  %v5336_v1 = vunpack.c.l.bf16 %v9692_v53 }
 0xd57   :  { %v5761_v3 = vpack.c.bf16 %v5749_v49, %v5746_v63  ;;  %8296 = vmatprep.subr.bf16.mxu1 %v5636_v61 }
 0xd5b   :  { %v8326_v35 = vpop.f32.mrb[132].mxu0 }
 0xd5c   :  { %v5871_v37 = vpop.f32.mrb[133].mxu0 }
 0xd5d   :  { %8285 = vmatmul.mubr.msk.bf16.vlgmr.msra.gmra.mrb[44].mxu1 %vm1723_vm2, %v8731_v4  ;;  %v8327_v5 = vpop.f32.mrb[134].mxu0  ;;  %v5339_v4 = vunpack.c.h.bf16 %v9690_v52 }
 0xd5e   :  { %8297 = vmatpush3.bf16.msra.mxu1 %v5636_v61  ;;  %v5887_v6 = vpack.c.bf16 %v8327_v5, %v8326_v35  ;;  %v5874_v7 = vpop.f32.mrb[135].mxu0  ;;  %8300 = vmatprep.mubr.msk.bf16.mxu1 %vm1723_vm2, %v8732_v33 }
 0xd5f   :  { %8298 = vmatprep.subr.bf16.mxu1 %v5637_v58  ;;  %v5886_v0 = vpack.c.bf16 %v5874_v7, %v5871_v37  ;;  %v5337_v37 = vunpack.c.h.bf16 %v9692_v53 }
 0xd62   :  { %8299 = vmatpush3.bf16.msra.mxu1 %v5637_v58 }
 0xd63   :  { %8312 = vmatprep.subr.bf16.mxu1 %v5761_v3  ;;  %v8342_v16 = vpop.f32.mrb[136].mxu0 }
 0xd64   :  { %v5996_v32 = vpop.f32.mrb[137].mxu0 }
 0xd65   :  { %v8343_v8 = vpop.f32.mrb[138].mxu0 }
 0xd66   :  { %v6012_v11 = vpack.c.bf16 %v8343_v8, %v8342_v16  ;;  %v5999_v34 = vpop.f32.mrb[139].mxu0 }
 0xd67   :  { %v6011_v12 = vpack.c.bf16 %v5999_v34, %v5996_v32 }
 0xd69   :  { %8301 = vmatmul.mubr.msk.bf16.vlgmr.msra.gmra.mrb[44].mxu1 %vm1723_vm2, %v8733_v10 }
 0xd6a   :  { %8313 = vmatpush3.bf16.msra.mxu1 %v5761_v3  ;;  %8316 = vmatprep.mubr.msk.bf16.mxu1 %vm1723_vm2, %v8734_v36 }
 0xd6b   :  { %8314 = vmatprep.subr.bf16.mxu1 %v5762_v2  ;;  %v8358_v14 = vpop.f32.mrb[140].mxu0 }
 0xd6c   :  { %v6121_v15 = vpop.f32.mrb[141].mxu0 }
 0xd6d   :  { %v8359_v17 = vpop.f32.mrb[142].mxu0 }
 0xd6e   :  { %8315 = vmatpush3.bf16.msra.mxu1 %v5762_v2  ;;  %v6137_v18 = vpack.c.bf16 %v8359_v17, %v8358_v14  ;;  %v6124_v19 = vpop.f32.mrb[143].mxu0 }
 0xd6f   :  { %8328 = vmatprep.subr.bf16.mxu1 %v5886_v0  ;;  %v6136_v20 = vpack.c.bf16 %v6124_v19, %v6121_v15 }
 0xd73   :  { %v8374_v9 = vpop.f32.mrb[144].mxu0 }
 0xd74   :  { %v6246_v54 = vpop.f32.mrb[145].mxu0 }
 0xd75   :  { %8317 = vmatmul.mubr.msk.bf16.vlgmr.msra.gmra.mrb[44].mxu1 %vm1723_vm2, %v8735_v21  ;;  %v8375_v13 = vpop.f32.mrb[146].mxu0 }
 0xd76   :  { %8329 = vmatpush3.bf16.msra.mxu1 %v5886_v0  ;;  %v6262_v55 = vpack.c.bf16 %v8375_v13, %v8374_v9  ;;  %v6249_v56 = vpop.f32.mrb[147].mxu0  ;;  %8332 = vmatprep.mubr.msk.bf16.mxu1 %vm1723_vm2, %v8736_v22 }
 0xd77   :  { %8330 = vmatprep.subr.bf16.mxu1 %v5887_v6  ;;  %v6261_v41 = vpack.c.bf16 %v6249_v56, %v6246_v54 }
 0xd7a   :  { %8331 = vmatpush3.bf16.msra.mxu1 %v5887_v6 }
 0xd7b   :  { %8344 = vmatprep.subr.bf16.mxu1 %v6011_v12  ;;  %v8390_v23 = vpop.f32.mrb[148].mxu0 }
 0xd7c   :  { %v6371_v24 = vpop.f32.mrb[149].mxu0 }
 0xd7d   :  { %v8391_v25 = vpop.f32.mrb[150].mxu0 }
 0xd7e   :  { %v6387_v27 = vpack.c.bf16 %v8391_v25, %v8390_v23  ;;  %v6374_v28 = vpop.f32.mrb[151].mxu0 }
 0xd7f   :  { %v6386_v30 = vpack.c.bf16 %v6374_v28, %v6371_v24 }
 0xd81   :  { %8333 = vmatmul.mubr.msk.bf16.vlgmr.msra.gmra.mrb[44].mxu1 %vm1723_vm2, %v8737_v26 }
 0xd82   :  { %8345 = vmatpush3.bf16.msra.mxu1 %v6011_v12  ;;  %8348 = vmatprep.mubr.msk.bf16.mxu1 %vm1723_vm2, %v8738_v29 }
 0xd83   :  { %8346 = vmatprep.subr.bf16.mxu1 %v6012_v11 }
 0xd86   :  { %8347 = vmatpush3.bf16.msra.mxu1 %v6012_v11 }
 0xd87   :  { %8360 = vmatprep.subr.bf16.mxu1 %v6136_v20 }
 0xd8d   :  { %8349 = vmatmul.mubr.msk.bf16.vlgmr.msra.gmra.mrb[44].mxu1 %vm1723_vm2, %v8739_v31 }
 0xd8e   :  { %8361 = vmatpush3.bf16.msra.mxu1 %v6136_v20  ;;  %8364 = vmatprep.mubr.msk.bf16.mxu1 %vm1723_vm2, %v8740_v38 }
 0xd8f   :  { %8362 = vmatprep.subr.bf16.mxu1 %v6137_v18 }
 0xd92   :  { %8363 = vmatpush3.bf16.msra.mxu1 %v6137_v18 }
 0xd93   :  { %8376 = vmatprep.subr.bf16.mxu1 %v6261_v41 }
 0xd99   :  { %8365 = vmatmul.mubr.msk.bf16.vlgmr.msra.gmra.mrb[44].mxu1 %vm1723_vm2, %v8741_v39 }
 0xd9a   :  { %8377 = vmatpush3.bf16.msra.mxu1 %v6261_v41  ;;  %8380 = vmatprep.mubr.msk.bf16.mxu1 %vm1723_vm2, %v8742_v40 }
 0xd9b   :  { %8378 = vmatprep.subr.bf16.mxu1 %v6262_v55 }
 0xd9e   :  { %8379 = vmatpush3.bf16.msra.mxu1 %v6262_v55 }
 0xd9f   :  { %8392 = vmatprep.subr.bf16.mxu1 %v6386_v30 }
 0xda5   :  { %8381 = vmatmul.mubr.msk.bf16.vlgmr.msra.gmra.mrb[44].mxu1 %vm1723_vm2, %v8743_v42 }
 0xda6   :  { %8393 = vmatpush3.bf16.msra.mxu1 %v6386_v30  ;;  %8396 = vmatprep.mubr.msk.bf16.mxu1 %vm1723_vm2, %v8744_v43 }
 0xda7   :  { %8394 = vmatprep.subr.bf16.mxu1 %v6387_v27 }
 0xdaa   :  { %8395 = vmatpush3.bf16.msra.mxu1 %v6387_v27 }
 0xdb1   :  { %8397 = vmatmul.mubr.msk.bf16.vlgmr.msra.gmra.mrb[44].mxu1 %vm1723_vm2, %v8745_v44 }
 0xe84   :  { %v8398_v48 = vpop.f32.mrb[44].mxu1 }
 0xe85   :  { %v6488_v50 = vadd.f32 %v8398_v48, %v6479_v47  ;;  %v6443_v51 = vpop.f32.mrb[45].mxu1 }
 0xe86   :  { %v6486_v58 = vadd.f32 %v6469_v45, %v6443_v51  ;;  %v8399_v59 = vpop.f32.mrb[46].mxu1 }
 0xe87   :  { %v6492_v61 = vmax.f32 %v6488_v50, 0.0  ;;  %v6489_v62 = vadd.f32 %v8399_v59, %v6484_v57  ;;  %v6446_v63 = vpop.f32.mrb[47].mxu1 }
 0xe88   :  { %v6490_v2 = vmax.f32 %v6486_v58, 0.0  ;;  %v6487_v49 = vadd.f32 %v6474_v46, %v6446_v63 }
 0xe89   :  { %v6496_v3 = vadd.f32 %v6492_v61, %v5338_v60  ;;  %v6493_v33 = vmax.f32 %v6489_v62, 0.0 }
 0xe8a   :  { %v6494_v35 = vadd.f32 %v6490_v2, %v5336_v1  ;;  %v6491_v5 = vmax.f32 %v6487_v49, 0.0 }
 0xe8b   :  { %v7192_v6 = vpack.c.bf16 %v6496_v3, %v6496_v3  ;;  %v6497_v7 = vadd.f32 %v6493_v33, %v5339_v4 }
 0xe8c   :  { %v7190_v0 = vpack.c.bf16 %v6494_v35, %v6494_v35  ;;  %v6495_v16 = vadd.f32 %v6491_v5, %v5337_v37 }
 0xe8d   :  { %6517 = vst.msk [vmem:[%s10022_s13 + $0x8] sm:$0xf] %vm6514_vm3, %v7192_v6  ;;  %v7193_v32 = vpack.c.bf16 %v6497_v7, %v6497_v7 }
 0xe8e   :  { %6515 = vst.msk [vmem:[%s10022_s13] sm:$0xf] %vm6514_vm3, %v7190_v0  ;;  %v7191_v52 = vpack.c.bf16 %v6495_v16, %v6495_v16 }
 0xe8f   :  { %6518 = vst.msk [vmem:[%s10022_s13 + $0xc] sm:$0xf] %vm6514_vm3, %v7193_v32 }
 0xe90   :  { %6516 = vst.msk [vmem:[%s10022_s13 + $0x4] sm:$0xf] %vm6514_vm3, %v7191_v52 }

// kernel: lama_forward.10
= control target key start
LH: loop header
LB: loop body
LE: loop exit
PB: predicated region body
PF: predicated region fallthrough
CT: control target
= control target key end

     0   :  { %v223_v1 = vmov 0   ;;  %vm85_vm0 = vcmask 523264   ;;  %s282_s0 = inlined_call_operand.vmem [shape: bf16[64,128], index: 0, kind: input, shape index: {}]   ;;  %s283_s1 = inlined_call_operand.vmem [shape: bf16[32,64], index: 1, kind: input, shape index: {}]   ;;  %s284_s2 = inlined_call_operand.vmem [shape: f32[32,1], index: 2, kind: input, shape index: {}]   ;;  %s285_s3 = inlined_call_operand.vmem [shape: bf16[32,128], index: 3, kind: output, shape index: {}]  }
   0x1   :  { %v217_v0 = vld [vmem:[%s282_s0] sm:$0xff]   ;;  %216 = vset.pattern.permute.xlu1 %v223_v1  ;;  %215 = vset.pattern.permute.xlu0 %v223_v1  ;;  %v218_v2 = vld [vmem:[%s282_s0 + $0x8] sm:$0xff]   ;;  %v219_v3 = vld [vmem:[%s282_s0 + $0x10] sm:$0xff]  }
   0x2   :  { %202 = vmatprep.subr.bf16.mxu0 %v217_v0  ;;  %v221_v4 = vld [vmem:[%s283_s1] sm:$0xff]   ;;  %v29_v5 = vld [vmem:[%s284_s2 + $0x10] sm:$0xff]  ;;  %v220_v7 = vld [vmem:[%s282_s0 + $0x18] sm:$0xff]  }
   0x3   :  { %203 = vmatpush3.bf16.msra.mxu0 %v217_v0  ;;  %210 = vmatprep.mubr.msk.bf16.mxu0 %vm85_vm0, %v221_v4  ;;  %v27_v6 = vld [vmem:[%s284_s2] sm:$0xff]  ;;  %v30_v8 = vld [vmem:[%s284_s2 + $0x18] sm:$0xff]  ;;  %v28_v9 = vld [vmem:[%s284_s2 + $0x8] sm:$0xff] }
   0x4   :  { %204 = vmatprep.subr.bf16.mxu0 %v218_v2  ;;  %43 = vperm.xlu1 %216, %v29_v5   ;;  %v222_v10 = vld [vmem:[%s283_s1 + $0x8] sm:$0xff]  }
   0x5   :  { %33 = vperm.xlu0 %215, %v27_v6  }
   0x7   :  { %205 = vmatpush3.bf16.msra.mxu0 %v218_v2 }
   0x8   :  { %206 = vmatprep.subr.bf16.mxu0 %v219_v3  ;;  %48 = vperm.xlu1 %216, %v30_v8  }
   0x9   :  { %38 = vperm.xlu0 %215, %v28_v9  }
   0xb   :  { %207 = vmatpush3.bf16.msra.mxu0 %v219_v3 }
   0xc   :  { %208 = vmatprep.subr.bf16.mxu0 %v220_v7 }
   0xf   :  { %209 = vmatpush3.bf16.msra.mxu0 %v220_v7 }
  0x12   :  { %211 = vmatmul.mubr.msk.bf16.vlgmr.msra.gmra.mrb[0].mxu0 %vm85_vm0, %v222_v10 }
  0x83   :  { %v44_v11 = vpop.permute.xlu1 %43 }
  0x84   :  { %v34_v12 = vpop.permute.xlu0 %33 }
  0x87   :  { %v49_v16 = vpop.permute.xlu1 %48 }
  0x88   :  { %v39_v19 = vpop.permute.xlu0 %38 }
  0xe5   :  { %v212_v13 = vpop.f32.mrb[0].mxu0 }
  0xe6   :  { %v135_v14 = vadd.f32 %v212_v13, %v44_v11  ;;  %v126_v15 = vpop.f32.mrb[1].mxu0 }
  0xe7   :  { %v127_v17 = vadd.f32 %v126_v15, %v34_v12  ;;  %v213_v18 = vpop.f32.mrb[2].mxu0 }
  0xe8   :  { %v138_v20 = vadd.f32 %v213_v18, %v49_v16  ;;  %v129_v21 = vpop.f32.mrb[3].mxu0  ;;  %v143_v23 = vmax.f32 %v135_v14, 0.0 }
  0xe9   :  { %v130_v22 = vadd.f32 %v129_v21, %v39_v19  ;;  %v141_v25 = vmax.f32 %v127_v17, 0.0 }
  0xea   :  { %v144_v24 = vmax.f32 %v138_v20, 0.0 }
  0xeb   :  { %v142_v26 = vmax.f32 %v130_v22, 0.0 }
  0xec   :  { %v193_v27 = vpack.c.bf16 %v144_v24, %v143_v23 }
  0xed   :  { %v188_v28 = vpack.c.bf16 %v142_v26, %v141_v25 }
  0xee   :  { %195 = vst [vmem:[%s285_s3 + $0x8] sm:$0xff] %v193_v27  }
  0xef   :  { %189 = vst [vmem:[%s285_s3] sm:$0xff] %v188_v28  }

// kernel: lama_forward.11
= control target key start
LH: loop header
LB: loop body
LE: loop exit
PB: predicated region body
PF: predicated region fallthrough
CT: control target
= control target key end

     0   :  { %v1142_v2 = vmov 0   ;;  %v1143_v37 = vmov 1983009808   ;;  %v125_v39 = vlaneseq  ;;  %vm631_vm0 = vcmask 64512   ;;  %s1482_s0 = inlined_call_operand.vmem [shape: bf16[392,512], index: 0, kind: input, shape index: {}]   ;;  %s1483_s1 = inlined_call_operand.vmem [shape: bf16[3,392], index: 1, kind: input, shape index: {}]   ;;  %s1484_s2 = inlined_call_operand.vmem [shape: f32[3,1], index: 2, kind: input, shape index: {}]   ;;  %s1485_s3 = inlined_call_operand.vmem [shape: bf16[3,512], index: 3, kind: output, shape index: {}]  }
   0x1   :  { %v985_v0 = vld [vmem:[%s1482_s0 + $0x4] ss:$16 sps:$4 sm:$0xff]   ;;  %v987_v1 = vld [vmem:[%s1482_s0 + $0xc] ss:$16 sps:$4 sm:$0xff]   ;;  %984 = vset.pattern.permute.xlu0 %v1142_v2  ;;  %v989_v3 = vld [vmem:[%s1482_s0] ss:$16 sps:$4 sm:$0xff]   ;;  %v123_v38 = vunpack.c.l.s4 %v1143_v37 }
   0x2   :  { %648 = vmatprep.subr.bf16.mxu0 %v985_v0  ;;  %v990_v4 = vld [vmem:[%s1482_s0 + $0x8] ss:$16 sps:$4 sm:$0xff]   ;;  %730 = vmatprep.subr.bf16.mxu1 %v987_v1  ;;  %v991_v5 = vld [vmem:[%s1482_s0 + $0x24] ss:$16 sps:$4 sm:$0xff]   ;;  %v993_v6 = vld [vmem:[%s1482_s0 + $0x2c] ss:$16 sps:$4 sm:$0xff]  }
   0x3   :  { %649 = vmatpush1.bf16.msra.mxu0 %v989_v3  ;;  %731 = vmatpush1.bf16.msra.mxu1 %v990_v4  ;;  %v995_v7 = vld [vmem:[%s1482_s0 + $0x20] ss:$16 sps:$4 sm:$0xff]   ;;  %v996_v8 = vld [vmem:[%s1482_s0 + $0x28] ss:$16 sps:$4 sm:$0xff]   ;;  %v997_v9 = vld [vmem:[%s1482_s0 + $0x44] ss:$16 sps:$4 sm:$0xff]   ;;  %v124_v43 = vunpack.c.0.s8 %v123_v38 }
   0x4   :  { %650 = vmatprep.subr.bf16.mxu0 %v991_v5  ;;  %732 = vmatprep.subr.bf16.mxu1 %v993_v6  ;;  %v999_v10 = vld [vmem:[%s1482_s0 + $0x4c] ss:$16 sps:$4 sm:$0xff]   ;;  %v1001_v11 = vld [vmem:[%s1482_s0 + $0x40] ss:$16 sps:$4 sm:$0xff]   ;;  %v1002_v12 = vld [vmem:[%s1482_s0 + $0x48] ss:$16 sps:$4 sm:$0xff]  }
   0x5   :  { %v1003_v13 = vld [vmem:[%s1482_s0 + $0x64] ss:$16 sps:$4 sm:$0xff]   ;;  %v1005_v14 = vld [vmem:[%s1482_s0 + $0x6c] ss:$16 sps:$4 sm:$0xff]   ;;  %v1007_v15 = vld [vmem:[%s1482_s0 + $0x60] ss:$16 sps:$4 sm:$0xff]  }
   0x6   :  { %v1008_v16 = vld [vmem:[%s1482_s0 + $0x68] ss:$16 sps:$4 sm:$0xff]   ;;  %v1009_v17 = vld [vmem:[%s1482_s0 + $0x84] ss:$16 sps:$4 sm:$0xff]   ;;  %v1011_v18 = vld [vmem:[%s1482_s0 + $0x8c] ss:$16 sps:$4 sm:$0xff]  }
   0x7   :  { %651 = vmatpush1.bf16.msra.mxu0 %v995_v7  ;;  %733 = vmatpush1.bf16.msra.mxu1 %v996_v8  ;;  %v1013_v19 = vld [vmem:[%s1482_s0 + $0x80] ss:$16 sps:$4 sm:$0xff]   ;;  %v1014_v20 = vld [vmem:[%s1482_s0 + $0x88] ss:$16 sps:$4 sm:$0xff]   ;;  %v1015_v21 = vld [vmem:[%s1482_s0 + $0xa4] ss:$16 sps:$4 sm:$0xff]  }
   0x8   :  { %652 = vmatprep.subr.bf16.mxu0 %v997_v9  ;;  %734 = vmatprep.subr.bf16.mxu1 %v999_v10  ;;  %v1017_v22 = vld [vmem:[%s1482_s0 + $0xac] ss:$16 sps:$4 sm:$0xff]   ;;  %v1019_v23 = vld [vmem:[%s1482_s0 + $0xa0] ss:$16 sps:$4 sm:$0xff]   ;;  %v1020_v24 = vld [vmem:[%s1482_s0 + $0xa8] ss:$16 sps:$4 sm:$0xff]  }
   0x9   :  { %v1021_v25 = vld [vmem:[%s1482_s0 + $0xc4] ss:$16 sps:$4 sm:$0xff]   ;;  %v1023_v26 = vld [vmem:[%s1482_s0 + $0xcc] ss:$16 sps:$4 sm:$0xff]   ;;  %v1025_v27 = vld [vmem:[%s1482_s0 + $0xc0] ss:$16 sps:$4 sm:$0xff]  }
   0xa   :  { %v1026_v28 = vld [vmem:[%s1482_s0 + $0xc8] ss:$16 sps:$4 sm:$0xff]   ;;  %v1027_v29 = vld [vmem:[%s1482_s0 + $0xe4] ss:$16 sps:$4 sm:$0xff]   ;;  %v1029_v30 = vld [vmem:[%s1482_s0 + $0xec] ss:$16 sps:$4 sm:$0xff]  }
   0xb   :  { %653 = vmatpush1.bf16.msra.mxu0 %v1001_v11  ;;  %735 = vmatpush1.bf16.msra.mxu1 %v1002_v12  ;;  %v1031_v31 = vld [vmem:[%s1482_s0 + $0xe0] ss:$16 sps:$4 sm:$0xff]   ;;  %v1032_v32 = vld [vmem:[%s1482_s0 + $0xe8] ss:$16 sps:$4 sm:$0xff]   ;;  %v1033_v33 = vld [vmem:[%s1482_s0 + $0x104] ss:$16 sps:$4 sm:$0xff]  }
   0xc   :  { %654 = vmatprep.subr.bf16.mxu0 %v1003_v13  ;;  %736 = vmatprep.subr.bf16.mxu1 %v1005_v14  ;;  %v1035_v34 = vld [vmem:[%s1482_s0 + $0x10c] ss:$16 sps:$4 sm:$0xff]   ;;  %v1037_v35 = vld [vmem:[%s1482_s0 + $0x100] ss:$16 sps:$4 sm:$0xff]   ;;  %v1038_v36 = vld [vmem:[%s1482_s0 + $0x108] ss:$16 sps:$4 sm:$0xff]  }
   0xd   :  { %v1039_v40 = vld [vmem:[%s1482_s0 + $0x124] ss:$16 sps:$4 sm:$0xff]   ;;  %v1041_v41 = vld [vmem:[%s1482_s0 + $0x12c] ss:$16 sps:$4 sm:$0xff]   ;;  %v1043_v42 = vld [vmem:[%s1482_s0 + $0x120] ss:$16 sps:$4 sm:$0xff]  }
   0xe   :  { %v126_v44 = vshrl.u32 %v125_v39, 7  ;;  %v1044_v45 = vld [vmem:[%s1482_s0 + $0x128] ss:$16 sps:$4 sm:$0xff]   ;;  %v1045_v46 = vld [vmem:[%s1482_s0 + $0x144] ss:$16 sps:$4 sm:$0xff]   ;;  %vm635_vm1 = vcmask 1043456  }
   0xf   :  { %655 = vmatpush1.bf16.msra.mxu0 %v1007_v15  ;;  %737 = vmatpush1.bf16.msra.mxu1 %v1008_v16  ;;  %v1047_v47 = vld [vmem:[%s1482_s0 + $0x14c] ss:$16 sps:$4 sm:$0xff]   ;;  %v1049_v48 = vld [vmem:[%s1482_s0 + $0x140] ss:$16 sps:$4 sm:$0xff]   ;;  %v1050_v49 = vld [vmem:[%s1482_s0 + $0x148] ss:$16 sps:$4 sm:$0xff]  }
  0x10   :  { %656 = vmatprep.subr.bf16.mxu0 %v1009_v17  ;;  %738 = vmatprep.subr.bf16.mxu1 %v1011_v18  ;;  %v1296_v50 = vsub.s32 %v124_v43, %v126_v44  ;;  %v1051_v51 = vld [vmem:[%s1482_s0 + $0x164] ss:$16 sps:$4 sm:$0xff]   ;;  %v1053_v52 = vld [vmem:[%s1482_s0 + $0x16c] ss:$16 sps:$4 sm:$0xff]   ;;  %v1055_v54 = vld [vmem:[%s1482_s0 + $0x160] ss:$16 sps:$4 sm:$0xff]  }
  0x11   :  { %v15_v53 = vld [vmem:[%s1483_s1] sm:$0xff]  ;;  %v1056_v56 = vld [vmem:[%s1482_s0 + $0x168] ss:$16 sps:$4 sm:$0xff]   ;;  %v1059_v58 = vld [vmem:[%s1482_s0 + $0x18c] ss:$16 sps:$4 sm:$0xff]   ;;  %vm842_vm2 = vcmask 1041408  }
  0x12   :  { %v128_v55 = vrot.slane %v15_v53, %v1296_v50  ;;  %v1057_v57 = vld [vmem:[%s1482_s0 + $0x184] ss:$16 sps:$4 sm:$0xff]   ;;  %v1061_v60 = vld [vmem:[%s1482_s0 + $0x180] ss:$16 sps:$4 sm:$0xff]   ;;  %v1062_v61 = vld [vmem:[%s1482_s0 + $0x188] ss:$16 sps:$4 sm:$0xff]   ;;  %v121_v8 = vcombine.high %v15_v53, %v15_v53 }
  0x13   :  { %657 = vmatpush1.bf16.msra.mxu0 %v1013_v19  ;;  %739 = vmatpush1.bf16.msra.mxu1 %v1014_v20  ;;  %v1063_v62 = vld [vmem:[%s1482_s0 + $0x1a4] ss:$16 sps:$4 sm:$0xff]   ;;  %v1065_v63 = vld [vmem:[%s1482_s0 + $0x1ac] ss:$16 sps:$4 sm:$0xff]   ;;  %v1067_v0 = vld [vmem:[%s1482_s0 + $0x1a0] ss:$16 sps:$4 sm:$0xff]  }
  0x14   :  { %658 = vmatprep.subr.bf16.mxu0 %v1015_v21  ;;  %740 = vmatprep.subr.bf16.mxu1 %v1017_v22  ;;  %v136_v59 = vcombine.high %v128_v55, %v128_v55  ;;  %v1068_v1 = vld [vmem:[%s1482_s0 + $0x1a8] ss:$16 sps:$4 sm:$0xff]   ;;  %v1069_v2 = vld [vmem:[%s1482_s0 + $0x1c4] ss:$16 sps:$4 sm:$0xff]   ;;  %v1071_v3 = vld [vmem:[%s1482_s0 + $0x1cc] ss:$16 sps:$4 sm:$0xff]   ;;  %v1369_v13 = vrot.slane %v121_v8, %v1296_v50 }
  0x15   :  { %v1073_v4 = vld [vmem:[%s1482_s0 + $0x1c0] ss:$16 sps:$4 sm:$0xff]   ;;  %v1074_v5 = vld [vmem:[%s1482_s0 + $0x1c8] ss:$16 sps:$4 sm:$0xff]   ;;  %v1075_v6 = vld [vmem:[%s1482_s0 + $0x1e4] ss:$16 sps:$4 sm:$0xff]  }
  0x16   :  { %680 = vmatprep.mubr.bf16.mxu0 %v136_v59  ;;  %762 = vmatprep.mubr.bf16.mxu1 %v136_v59  ;;  %v1077_v7 = vld [vmem:[%s1482_s0 + $0x1ec] ss:$16 sps:$4 sm:$0xff]   ;;  %v1079_v9 = vld [vmem:[%s1482_s0 + $0x1e0] ss:$16 sps:$4 sm:$0xff]   ;;  %v1080_v10 = vld [vmem:[%s1482_s0 + $0x1e8] ss:$16 sps:$4 sm:$0xff]   ;;  %v137_v19 = vcombine.high %v1369_v13, %v1369_v13 }
  0x17   :  { %659 = vmatpush1.bf16.msra.mxu0 %v1019_v23  ;;  %741 = vmatpush1.bf16.msra.mxu1 %v1020_v24  ;;  %v1084_v11 = vld [vmem:[%s1482_s0 + $0x204] ss:$16 sps:$4 sm:$0xff]   ;;  %v1087_v12 = vld [vmem:[%s1482_s0 + $0x20c] ss:$16 sps:$4 sm:$0xff]   ;;  %v1082_v14 = vld [vmem:[%s1482_s0 + $0x200] ss:$16 sps:$4 sm:$0xff]  }
  0x18   :  { %660 = vmatprep.subr.bf16.mxu0 %v1021_v25  ;;  %742 = vmatprep.subr.bf16.mxu1 %v1023_v26  ;;  %v1085_v15 = vld [vmem:[%s1482_s0 + $0x208] ss:$16 sps:$4 sm:$0xff]   ;;  %v1090_v16 = vld [vmem:[%s1482_s0 + $0x224] ss:$16 sps:$4 sm:$0xff]   ;;  %v1093_v17 = vld [vmem:[%s1482_s0 + $0x22c] ss:$16 sps:$4 sm:$0xff]  }
  0x19   :  { %v114_v18 = vld [vmem:[%s1484_s2] sm:$0x7]  ;;  %v1091_v21 = vld [vmem:[%s1482_s0 + $0x228] ss:$16 sps:$4 sm:$0xff]   ;;  %v1096_v22 = vld [vmem:[%s1482_s0 + $0x244] ss:$16 sps:$4 sm:$0xff]  }
  0x1a   :  { %117 = vperm.xlu0 %984, %v114_v18   ;;  %v1088_v20 = vld [vmem:[%s1482_s0 + $0x220] ss:$16 sps:$4 sm:$0xff]   ;;  %v1099_v23 = vld [vmem:[%s1482_s0 + $0x24c] ss:$16 sps:$4 sm:$0xff]   ;;  %v1097_v25 = vld [vmem:[%s1482_s0 + $0x248] ss:$16 sps:$4 sm:$0xff]  }
  0x1b   :  { %661 = vmatpush1.bf16.msra.mxu0 %v1025_v27  ;;  %743 = vmatpush1.bf16.msra.mxu1 %v1026_v28  ;;  %v1094_v24 = vld [vmem:[%s1482_s0 + $0x240] ss:$16 sps:$4 sm:$0xff]   ;;  %v1102_v26 = vld [vmem:[%s1482_s0 + $0x264] ss:$16 sps:$4 sm:$0xff]   ;;  %v1105_v27 = vld [vmem:[%s1482_s0 + $0x26c] ss:$16 sps:$4 sm:$0xff]  }
  0x1c   :  { %662 = vmatprep.subr.bf16.mxu0 %v1027_v29  ;;  %744 = vmatprep.subr.bf16.mxu1 %v1029_v30  ;;  %v1100_v28 = vld [vmem:[%s1482_s0 + $0x260] ss:$16 sps:$4 sm:$0xff]   ;;  %v1103_v29 = vld [vmem:[%s1482_s0 + $0x268] ss:$16 sps:$4 sm:$0xff]   ;;  %v1108_v30 = vld [vmem:[%s1482_s0 + $0x284] ss:$16 sps:$4 sm:$0xff]  }
  0x1d   :  { %v1115_v37 = vld [vmem:[%s1482_s0 + $0x2a8] ss:$16 sps:$4 sm:$0xff]   ;;  %v1120_v38 = vld [vmem:[%s1482_s0 + $0x2c4] ss:$16 sps:$4 sm:$0xff]   ;;  %v1123_v39 = vld [vmem:[%s1482_s0 + $0x2cc] ss:$16 sps:$4 sm:$0xff]  }
  0x1e   :  { %v1129_v43 = vld [vmem:[%s1482_s0 + $0x2ec] ss:$16 sps:$4 sm:$0xff]   ;;  %v112_v44 = vld [vmem:[%s1482_s0 + $0x300] sm:$0xff]  ;;  %vm843_vm3 = vsmask.f32 1280  ;;  %vm845_vm4 = vcmask 1043458  }
  0x1f   :  { %663 = vmatpush1.bf16.msra.mxu0 %v1031_v31  ;;  %745 = vmatpush1.bf16.msra.mxu1 %v1032_v32  ;;  %v1111_v31 = vld [vmem:[%s1482_s0 + $0x28c] ss:$16 sps:$4 sm:$0xff]   ;;  %v1106_v32 = vld [vmem:[%s1482_s0 + $0x280] ss:$16 sps:$4 sm:$0xff]   ;;  %vm846_vm5 = vsmask.f32 3328  ;;  %vm844_vm6 = vmand %vm842_vm2, %vm843_vm3 }
  0x20   :  { %664 = vmatprep.subr.bf16.mxu0 %v1033_v33  ;;  %746 = vmatprep.subr.bf16.mxu1 %v1035_v34  ;;  %v1109_v33 = vld [vmem:[%s1482_s0 + $0x288] ss:$16 sps:$4 sm:$0xff]   ;;  %v1114_v34 = vld [vmem:[%s1482_s0 + $0x2a4] ss:$16 sps:$4 sm:$0xff]   ;;  %vm847_vm7 = vmand %vm845_vm4, %vm846_vm5  ;;  %vm849_vm8 = vcmask 1045508   ;;  %vm853_vm12 = vcmask 1047558  }
  0x21   :  { %vm850_vm9 = vsmask.f32 5376  ;;  %vm848_vm10 = vmor %vm847_vm7, %vm844_vm6  ;;  %vm854_vm13 = vsmask.f32 7424 }
  0x22   :  { %vm851_vm11 = vmand %vm849_vm8, %vm850_vm9 }
  0x23   :  { %665 = vmatpush1.bf16.msra.mxu0 %v1037_v35  ;;  %747 = vmatpush1.bf16.msra.mxu1 %v1038_v36  ;;  %v1117_v35 = vld [vmem:[%s1482_s0 + $0x2ac] ss:$16 sps:$4 sm:$0xff]   ;;  %v1112_v36 = vld [vmem:[%s1482_s0 + $0x2a0] ss:$16 sps:$4 sm:$0xff]   ;;  %vm852_vm14 = vmor %vm851_vm11, %vm848_vm10 }
  0x24   :  { %666 = vmatprep.subr.bf16.mxu0 %v1039_v40  ;;  %748 = vmatprep.subr.bf16.mxu1 %v1041_v41  ;;  %v1118_v40 = vld [vmem:[%s1482_s0 + $0x2c0] ss:$16 sps:$4 sm:$0xff]   ;;  %v1121_v41 = vld [vmem:[%s1482_s0 + $0x2c8] ss:$16 sps:$4 sm:$0xff]   ;;  %vm855_vm15 = vmand %vm853_vm12, %vm854_vm13 }
  0x27   :  { %667 = vmatpush1.bf16.msra.mxu0 %v1043_v42  ;;  %749 = vmatpush1.bf16.msra.mxu1 %v1044_v45  ;;  %v1126_v42 = vld [vmem:[%s1482_s0 + $0x2e4] ss:$16 sps:$4 sm:$0xff]   ;;  %v113_v45 = vld [vmem:[%s1482_s0 + $0x308] sm:$0xff] }
  0x28   :  { %668 = vmatprep.subr.bf16.mxu0 %v1045_v46  ;;  %750 = vmatprep.subr.bf16.mxu1 %v1047_v47  ;;  %v1124_v46 = vld [vmem:[%s1482_s0 + $0x2e0] ss:$16 sps:$4 sm:$0xff]   ;;  %v1127_v47 = vld [vmem:[%s1482_s0 + $0x2e8] ss:$16 sps:$4 sm:$0xff]  }
  0x2b   :  { %669 = vmatpush1.bf16.msra.mxu0 %v1049_v48  ;;  %751 = vmatpush1.bf16.msra.mxu1 %v1050_v49  ;;  %v961_v48 = vcombine.high %v112_v44, %v112_v44  ;;  %v963_v49 = vcombine.high %v113_v45, %v113_v45 }
  0x2c   :  { %670 = vmatprep.subr.bf16.mxu0 %v1051_v51  ;;  %752 = vmatprep.subr.bf16.mxu1 %v1053_v52  ;;  %v960_v51 = vcombine.low %v112_v44, %v112_v44  ;;  %v962_v52 = vcombine.low %v113_v45, %v113_v45 }
  0x2e   :  { %v637_v53 = vsel %vm635_vm1, %v960_v51, 0 }
  0x2f   :  { %671 = vmatpush1.bf16.msra.mxu0 %v1055_v54  ;;  %753 = vmatpush1.bf16.msra.mxu1 %v1056_v56  ;;  %v643_v54 = vsel %vm635_vm1, %v962_v52, 0 }
  0x30   :  { %672 = vmatprep.subr.bf16.mxu0 %v1057_v57  ;;  %754 = vmatprep.subr.bf16.mxu1 %v1059_v58 }
  0x33   :  { %673 = vmatpush1.bf16.msra.mxu0 %v1061_v60  ;;  %755 = vmatpush1.bf16.msra.mxu1 %v1062_v61 }
  0x34   :  { %674 = vmatprep.subr.bf16.mxu0 %v1063_v62  ;;  %756 = vmatprep.subr.bf16.mxu1 %v1065_v63 }
  0x37   :  { %675 = vmatpush1.bf16.msra.mxu0 %v1067_v0  ;;  %757 = vmatpush1.bf16.msra.mxu1 %v1068_v1 }
  0x38   :  { %676 = vmatprep.subr.bf16.mxu0 %v1069_v2  ;;  %758 = vmatprep.subr.bf16.mxu1 %v1071_v3 }
  0x3b   :  { %677 = vmatpush1.bf16.msra.mxu0 %v1073_v4  ;;  %759 = vmatpush1.bf16.msra.mxu1 %v1074_v5 }
  0x3c   :  { %678 = vmatprep.subr.bf16.mxu0 %v1075_v6  ;;  %760 = vmatprep.subr.bf16.mxu1 %v1077_v7 }
  0x3f   :  { %679 = vmatpush1.bf16.msra.mxu0 %v1079_v9  ;;  %761 = vmatpush1.bf16.msra.mxu1 %v1080_v10 }
  0x40   :  { %689 = vmatprep.subr.bf16.mxu0 %v1084_v11  ;;  %771 = vmatprep.subr.bf16.mxu1 %v1087_v12  ;;  %v857_v12 = vld [vmem:[%s1485_s3] sm:$0xff] }
  0x42   :  { %681 = vmatmul.mubr.bf16.vlgmr.msra.gmra.mrb[0].mxu0 %v128_v55  ;;  %763 = vmatmul.mubr.bf16.vlgmr.msra.gmra.mrb[0].mxu1 %v128_v55 }
  0x43   :  { %690 = vmatpush1.bf16.msra.mxu0 %v1082_v14  ;;  %772 = vmatpush1.bf16.msra.mxu1 %v1085_v15 }
  0x44   :  { %691 = vmatprep.subr.bf16.mxu0 %v1090_v16  ;;  %773 = vmatprep.subr.bf16.mxu1 %v1093_v17 }
  0x45   :  { %965 = vmatprep.mubr.msk.bf16.mxu0 %vm631_vm0, %v137_v19  ;;  %967 = vmatprep.mubr.msk.bf16.mxu1 %vm631_vm0, %v137_v19  ;;  %vm856_vm0 = vmor %vm855_vm15, %vm852_vm14 }
  0x47   :  { %692 = vmatpush1.bf16.msra.mxu0 %v1088_v20  ;;  %774 = vmatpush1.bf16.msra.mxu1 %v1091_v21 }
  0x48   :  { %693 = vmatprep.subr.bf16.mxu0 %v1096_v22  ;;  %775 = vmatprep.subr.bf16.mxu1 %v1099_v23 }
  0x4b   :  { %694 = vmatpush1.bf16.msra.mxu0 %v1094_v24  ;;  %776 = vmatpush1.bf16.msra.mxu1 %v1097_v25 }
  0x4c   :  { %695 = vmatprep.subr.bf16.mxu0 %v1102_v26  ;;  %777 = vmatprep.subr.bf16.mxu1 %v1105_v27 }
  0x4f   :  { %696 = vmatpush1.bf16.msra.mxu0 %v1100_v28  ;;  %778 = vmatpush1.bf16.msra.mxu1 %v1103_v29 }
  0x50   :  { %697 = vmatprep.subr.bf16.mxu0 %v1108_v30  ;;  %779 = vmatprep.subr.bf16.mxu1 %v1111_v31 }
  0x53   :  { %698 = vmatpush1.bf16.msra.mxu0 %v1106_v32  ;;  %780 = vmatpush1.bf16.msra.mxu1 %v1109_v33 }
  0x54   :  { %699 = vmatprep.subr.bf16.mxu0 %v1114_v34  ;;  %781 = vmatprep.subr.bf16.mxu1 %v1117_v35 }
  0x57   :  { %700 = vmatpush1.bf16.msra.mxu0 %v1112_v36  ;;  %782 = vmatpush1.bf16.msra.mxu1 %v1115_v37 }
  0x58   :  { %701 = vmatprep.subr.bf16.mxu0 %v1120_v38  ;;  %783 = vmatprep.subr.bf16.mxu1 %v1123_v39 }
  0x5b   :  { %702 = vmatpush1.bf16.msra.mxu0 %v1118_v40  ;;  %784 = vmatpush1.bf16.msra.mxu1 %v1121_v41 }
  0x5c   :  { %703 = vmatprep.subr.bf16.mxu0 %v1126_v42  ;;  %785 = vmatprep.subr.bf16.mxu1 %v1129_v43 }
  0x5f   :  { %704 = vmatpush1.bf16.msra.mxu0 %v1124_v46  ;;  %786 = vmatpush1.bf16.msra.mxu1 %v1127_v47 }
  0x60   :  { %964 = vmatprep.subr.msk.bf16.mxu0 %vm635_vm1, %v961_v48  ;;  %966 = vmatprep.subr.msk.bf16.mxu1 %vm635_vm1, %v963_v49 }
  0x63   :  { %706 = vmatpush1.bf16.msra.mxu0 %v637_v53  ;;  %788 = vmatpush1.bf16.msra.mxu1 %v643_v54 }
  0x66   :  { %722 = vmatmul.mubr.bf16.vlgmr.msra.gmra.mrb[0].mxu0 %v1369_v13  ;;  %804 = vmatmul.mubr.bf16.vlgmr.msra.gmra.mrb[0].mxu1 %v1369_v13 }
  0x99   :  { %v118_v55 = vpop.permute.xlu0 %117 }
 0x139   :  { %v723_v56 = vpop.f32.mrb[0].mxu0  ;;  %v805_v57 = vpop.f32.mrb[0].mxu1 }
 0x13a   :  { %v970_v58 = vadd.f32 %v723_v56, %v118_v55  ;;  %v972_v59 = vadd.f32 %v805_v57, %v118_v55  ;;  %v725_v60 = vpop.f32.mrb[1].mxu0  ;;  %v807_v61 = vpop.f32.mrb[1].mxu1 }
 0x13b   :  { %v971_v62 = vadd.f32 %v725_v60, %v118_v55  ;;  %v973_v63 = vadd.f32 %v807_v61, %v118_v55  ;;  %v727_v0 = vpop.f32.mrb[2].mxu0  ;;  %v809_v1 = vpop.f32.mrb[2].mxu1 }
 0x13c   :  { %1134 = vtanh.f32 %v970_v58  ;;  %v728_v2 = vpop.f32.mrb[3].mxu0  ;;  %v810_v3 = vpop.f32.mrb[3].mxu1 }
 0x13d   :  { %1136 = vtanh.f32 %v972_v59 }
 0x13e   :  { %1138 = vtanh.f32 %v971_v62 }
 0x13f   :  { %1140 = vtanh.f32 %v973_v63 }
 0x146   :  { %v1135_v4 = vpop.eup %1134 }
 0x147   :  { %v1137_v5 = vpop.eup %1136 }
 0x148   :  { %v1139_v6 = vpop.eup %1138 }
 0x149   :  { %v1141_v7 = vpop.eup %1140  ;;  %v968_v8 = vpack.c.bf16 %v1139_v6, %v1135_v4 }
 0x14a   :  { %v969_v9 = vpack.c.bf16 %v1141_v7, %v1137_v5 }
 0x14b   :  { %v832_v10 = vrot.slane %v968_v8, %v1296_v50 }
 0x14c   :  { %v839_v11 = vrot.slane %v969_v9, %v1296_v50 }
 0x14e   :  { %v840_v13 = vcombine.low %v832_v10, %v839_v11 }
 0x150   :  { %v858_v14 = vsel %vm856_vm0, %v840_v13, %v857_v12 }
 0x151   :  { %859 = vst [vmem:[%s1485_s3] sm:$0xff] %v858_v14 }

</bundles_post_ra>
